<compile_context>
chip_gen: v6e
topology: v6e:2x2x1
jax: 0.10.0
libtpu: 0.0.40
codegen_flags: <defaults>
</compile_context>

<pallas_src>
import functools

import numpy as np
import jax
import jax.numpy as jnp
from jax import lax
from jax.experimental import pallas as pl
from jax.experimental.pallas import tpu as pltpu

_NEG = -1e30      # Python float (NOT a jnp scalar) so it is not captured as a const
_PACK = 4         # nodes packed per lane-dense row: 4 * hidden(32) = 128 lanes


def _round_up(x, m):
    return (x + m - 1) // m * m


def nostructure_kernel(
    meta_ref,                       # (3, B) int32: [starts; ends; selected global idx]
    xg_ref,                         # (TILE_R, PACK*(F+G)) packed [x | goal] per node
    win_ref, bin_ref,               # (PACK*(F+G), 128), (1, 128)   block-diag InputModel
    w1h_ref, w1g_ref, b1_ref,       # (128, 128), (PACK*(F+G), 128), (1, 128)  fused L1
    w2_ref, b2_ref,                 # (128, 2*PACK), (1, 2*PACK)    fused block-diag L2
    ns_ref,                         # (TILE_R, 128) lane-dense node_states out
    v_ref, lp_ref, ent_ref,         # (1, B) outputs
    m_sc, sz_sc, szl_sc, sel_sc, cmax_sc, csum_sc,     # (1, B) f32 scratch
    *, critic_weight, ch_r, pack):
    t = pl.program_id(0)
    nt = pl.num_programs(0)
    tile_r = xg_ref.shape[0]
    nch = tile_r // ch_r

    starts = meta_ref[0:1, :]
    ends = meta_ref[1:2, :]
    sel = meta_ref[2:3, :]

    # ---- init running per-graph state on first node tile ----
    @pl.when(t == 0)
    def _():
        m_sc[...] = jnp.full_like(m_sc, _NEG)
        cmax_sc[...] = jnp.full_like(cmax_sc, _NEG)
        sz_sc[...] = jnp.zeros_like(sz_sc)
        szl_sc[...] = jnp.zeros_like(szl_sc)
        sel_sc[...] = jnp.zeros_like(sel_sc)
        csum_sc[...] = jnp.zeros_like(csum_sc)

    def chunk(c, carry):
        r0 = c * ch_r
        if not isinstance(r0, int):
            r0 = pl.multiple_of(r0, ch_r)
        xg = xg_ref[pl.ds(r0, ch_r), :]                              # (ch_r, PACK*FG)

        # ---- InputModel (block-diag over 4 packed nodes): lane-dense hidden ----
        h_p = jnp.maximum(
            jnp.dot(xg, win_ref[...], preferred_element_type=jnp.float32)
            + bin_ref[...], 0.0)                                     # (ch_r, 128)
        ns_ref[pl.ds(r0, ch_r), :] = h_p.astype(ns_ref.dtype)        # unmasked 128-lane vst

        # ---- Fused actor|critic MLP, still in packed block-diag form ----
        h1 = jnp.maximum(
            jnp.dot(h_p, w1h_ref[...], preferred_element_type=jnp.float32)
            + jnp.dot(xg, w1g_ref[...], preferred_element_type=jnp.float32)
            + b1_ref[...], 0.0)                                      # (ch_r, 128)
        out2 = jnp.dot(h1, w2_ref[...],
                       preferred_element_type=jnp.float32) + b2_ref[...]  # (ch_r, 2*PACK)

        base = (t * tile_r + r0) * pack
        row_idx = base + pack * lax.broadcasted_iota(jnp.int32, (ch_r, 1), 0)  # (ch_r, 1)

        # Per packed sub-node j: logits in column j, critic in column pack + j.
        for j in range(pack):
            idx = row_idx + j                                        # (ch_r, 1)
            logit = out2[:, j:j + 1]                                 # (ch_r, 1)
            crit = out2[:, pack + j:pack + j + 1]                    # (ch_r, 1)
            mask = (idx >= starts) & (idx < ends)                    # (ch_r, B)
            selm = idx == sel                                        # (ch_r, B)
            logit_b = jnp.broadcast_to(logit, mask.shape)            # hoisted broadcasts
            crit_b = jnp.broadcast_to(crit, mask.shape)

            # critic segment aggregation (running max / sum)
            cmax_sc[...] = jnp.maximum(
                cmax_sc[...],
                jnp.max(jnp.where(mask, crit_b, _NEG), axis=0, keepdims=True))
            csum_sc[...] += jnp.sum(jnp.where(mask, crit_b, 0.0), axis=0, keepdims=True)

            # online softmax streamed across tiles / chunks / sub-nodes
            lmask = jnp.where(mask, logit_b, _NEG)                   # mask BEFORE exp
            m_new = jnp.maximum(m_sc[...], jnp.max(lmask, axis=0, keepdims=True))
            resc = jnp.exp(m_sc[...] - m_new)                        # exponent <= 0
            z = jnp.where(mask, jnp.exp(lmask - m_new), 0.0)
            sz_sc[...] = sz_sc[...] * resc + jnp.sum(z, axis=0, keepdims=True)
            szl_sc[...] = szl_sc[...] * resc + jnp.sum(z * logit_b, axis=0, keepdims=True)
            sel_sc[...] += jnp.sum(jnp.where(selm, logit_b, 0.0), axis=0, keepdims=True)
            m_sc[...] = m_new
        return carry

    if nch == 1:
        chunk(0, 0)
    else:
        lax.fori_loop(0, nch, chunk, 0)

    # ---- finalize per-graph outputs on the last node tile ----
    @pl.when(t == nt - 1)
    def _():
        lens = (ends - starts).astype(jnp.float32)                   # graphs must be non-empty
        mean_out = csum_sc[...] / lens
        v_ref[...] = cmax_sc[...] * critic_weight + mean_out * (1.0 - critic_weight)
        logsum = m_sc[...] + jnp.log(sz_sc[...])
        lp_ref[...] = sel_sc[...] - logsum
        ent_ref[...] = logsum - szl_sc[...] / sz_sc[...]


def no_structure_forward(params, inputs, goal, num_nodes, actions, critic_weight,
                         tile_n=4096, chunk_n=256):
    """send_input=True, get_output=True path of NoStructure_baseline.forward."""
    N, F = inputs.shape
    G = goal.shape[1]
    H = params["W_in"].shape[1]
    A = params["Wa2"].shape[0]                  # actor/critic hidden width (16)
    B = len(num_nodes)
    pack = _PACK
    assert pack * H == 128 and pack * 2 * A == 128, \
        "packed layout assumes hidden_size=32 and actor/critic hidden=16"

    num_nodes = np.asarray(num_nodes, np.int32)
    actions = np.asarray(actions, np.int32)
    assert np.all(num_nodes >= 1), "empty graphs are not supported (PyTorch would also fail)"
    assert np.all((actions >= 0) & (actions < num_nodes)), "action index out of range"
    starts = np.concatenate([[0], np.cumsum(num_nodes)[:-1]]).astype(np.int32)
    ends = (starts + num_nodes).astype(np.int32)
    sel = (starts + actions).astype(np.int32)
    meta = jnp.asarray(np.stack([starts, ends, sel], axis=0))        # (3, B)

    # tiling: chunk_n nodes per inner chunk (multiple of 32), tile_n nodes per grid step
    chunk_n = _round_up(max(int(chunk_n), pack * 8), pack * 8)
    tile_n = _round_up(max(int(tile_n), chunk_n), chunk_n)
    TILE_N = min(tile_n, _round_up(N, chunk_n))
    N_pad = _round_up(N, TILE_N)
    TILE_R = TILE_N // pack
    R_pad = N_pad // pack
    CH_R = chunk_n // pack
    num_tiles = N_pad // TILE_N

    # ---- pack inputs: [x | goal] per node, 4 nodes per row (free reshapes) ----
    FG = F + G
    xg = jnp.concatenate([inputs, goal], axis=1)
    xg = jnp.pad(xg, ((0, N_pad - N), (0, 0))).reshape(R_pad, pack * FG)

    # ---- fused / block-diagonal packed weights (tiny, built once host-side) ----
    A2 = 2 * A
    W1f = jnp.concatenate([params["Wa1"], params["Wc1"]], axis=1)    # (H+G, 2A)
    b1f = jnp.concatenate([params["ba1"], params["bc1"]], axis=1)    # (1, 2A)
    win_big = jnp.zeros((pack * FG, pack * H), jnp.float32)
    w1h_big = jnp.zeros((pack * H, pack * A2), jnp.float32)
    w1g_big = jnp.zeros((pack * FG, pack * A2), jnp.float32)
    w2_big = jnp.zeros((pack * A2, 2 * pack), jnp.float32)
    for j in range(pack):
        win_big = win_big.at[j * FG:j * FG + F, j * H:(j + 1) * H].set(params["W_in"])
        w1h_big = w1h_big.at[j * H:(j + 1) * H, j * A2:(j + 1) * A2].set(W1f[:H])
        w1g_big = w1g_big.at[j * FG + F:(j + 1) * FG, j * A2:(j + 1) * A2].set(W1f[H:])
        w2_big = w2_big.at[j * A2:j * A2 + A, j].set(params["Wa2"][:, 0])
        w2_big = w2_big.at[j * A2 + A:(j + 1) * A2, pack + j].set(params["Wc2"][:, 0])
    bin_big = jnp.tile(params["b_in"], (1, pack))                    # (1, 128)
    b1_big = jnp.tile(b1f, (1, pack))                                # (1, 128)
    b2_big = jnp.concatenate([jnp.tile(params["ba2"], (1, pack)),
                              jnp.tile(params["bc2"], (1, pack))], axis=1)  # (1, 2*pack)

    kernel = functools.partial(nostructure_kernel,
                               critic_weight=float(critic_weight),
                               ch_r=CH_R, pack=pack)

    pinned = lambda t: (0, 0)
    node_tile = lambda t: (t, 0)

    in_specs = [
        pl.BlockSpec((3, B), pinned),                     # meta (starts/ends/sel)
        pl.BlockSpec((TILE_R, pack * FG), node_tile),     # packed [x|goal]
        pl.BlockSpec((pack * FG, pack * H), pinned),      # block-diag W_in
        pl.BlockSpec((1, pack * H), pinned),              # b_in (tiled)
        pl.BlockSpec((pack * H, pack * A2), pinned),      # fused L1 (node part)
        pl.BlockSpec((pack * FG, pack * A2), pinned),     # fused L1 (goal part)
        pl.BlockSpec((1, pack * A2), pinned),             # fused b1
        pl.BlockSpec((pack * A2, 2 * pack), pinned),      # fused block-diag L2
        pl.BlockSpec((1, 2 * pack), pinned),              # fused b2
    ]
    out_specs = (
        pl.BlockSpec((TILE_R, pack * H), node_tile),      # node_states (lane-dense packed)
        pl.BlockSpec((1, B), pinned),                     # v
        pl.BlockSpec((1, B), pinned),                     # log_pi_a
        pl.BlockSpec((1, B), pinned),                     # entropy
    )
    out_shapes = (
        jax.ShapeDtypeStruct((R_pad, pack * H), jnp.float32),
        jax.ShapeDtypeStruct((1, B), jnp.float32),
        jax.ShapeDtypeStruct((1, B), jnp.float32),
        jax.ShapeDtypeStruct((1, B), jnp.float32),
    )
    scratch = [pltpu.VMEM((1, B), jnp.float32) for _ in range(6)]    # six distinct buffers

    flops = 2 * N_pad * (FG * H + (H + G) * A2 + A2 * 2)
    bytes_accessed = 4 * (R_pad * pack * (FG + H)                    # packed input + ns out
                          + pack * FG * pack * (H + A2)              # W_in / W1 goal blocks
                          + pack * H * pack * A2 + pack * A2 * 2 * pack
                          + 6 * B)
    cost = pl.CostEstimate(flops=flops, transcendentals=N_pad * B,
                           bytes_accessed=bytes_accessed)

    grid_spec = pltpu.PrefetchScalarGridSpec(
        num_scalar_prefetch=0,
        grid=(num_tiles,),
        in_specs=in_specs,
        out_specs=out_specs,
        scratch_shapes=scratch,
    )

    ns_packed, v, lp, ent = pl.pallas_call(
        kernel,
        out_shape=out_shapes,
        grid_spec=grid_spec,
        compiler_params=pltpu.CompilerParams(
            dimension_semantics=("arbitrary",),           # node axis carries reductions
            vmem_limit_bytes=32 * 1024 * 1024),
        cost_estimate=cost,
    )(meta, xg, win_big, bin_big, w1h_big, w1g_big, b1_big, w2_big, b2_big)

    node_states = ns_packed.reshape(N_pad, H)[:N]         # free row-major reinterpretation

    # TODO(synk): Categorical .sample() path (actions=None) is not implemented;
    # actions must be supplied, as the PyTorch module allows.
    pred = {
        "a": jnp.asarray(actions, jnp.int32),             # (B,)
        "log_pi_a": lp.reshape(B, 1),                     # (B,1)
        "ent": ent.reshape(B, 1),                         # (B,1)
        "v": v.reshape(B, 1),                             # (B,1)
    }
    return node_states, pred


def reference_forward(params, x, goal, num_nodes, actions, w):
    """Pure-JAX replica of the PyTorch forward for a correctness check."""
    h = jnp.maximum(x @ params["W_in"] + params["b_in"], 0.0)
    concat = jnp.concatenate([h, goal], axis=1)
    logits = (jnp.maximum(concat @ params["Wa1"] + params["ba1"], 0.0)
              @ params["Wa2"] + params["ba2"])[:, 0]
    crit = (jnp.maximum(concat @ params["Wc1"] + params["bc1"], 0.0)
            @ params["Wc2"] + params["bc2"])[:, 0]
    vs, lps, ents = [], [], []
    start = 0
    for i, n in enumerate(num_nodes):
        seg_c = crit[start:start + n]
        vs.append(jnp.max(seg_c) * w + jnp.mean(seg_c) * (1.0 - w))
        seg_l = logits[start:start + n]
        logZ = jax.scipy.special.logsumexp(seg_l)
        logp = seg_l - logZ
        lps.append(logp[actions[i]])
        p = jnp.exp(logp)
        ents.append(-jnp.sum(p * logp))
        start += n
    return (h,
            jnp.stack(vs)[:, None],
            jnp.stack(lps)[:, None],
            jnp.stack(ents)[:, None])


def _check(params, x, goal, num_nodes, actions, w, tile_n, chunk_n):
    node_states, pred = no_structure_forward(params, x, goal, num_nodes, actions, w,
                                             tile_n=tile_n, chunk_n=chunk_n)
    jax.block_until_ready((node_states, pred))
    ns_r, v_r, lp_r, ent_r = reference_forward(params, x, goal, num_nodes, actions, w)
    np.testing.assert_allclose(np.asarray(node_states), np.asarray(ns_r), rtol=1e-4, atol=1e-4)
    np.testing.assert_allclose(np.asarray(pred["v"]), np.asarray(v_r), rtol=1e-4, atol=1e-4)
    np.testing.assert_allclose(np.asarray(pred["log_pi_a"]), np.asarray(lp_r), rtol=1e-4, atol=1e-4)
    np.testing.assert_allclose(np.asarray(pred["ent"]), np.asarray(ent_r), rtol=1e-4, atol=1e-4)


if __name__ == "__main__":
    # Module config: feat_size=8, hidden_size=32, goal_size=4, goal_opt=2,
    # critic_agg_weight=0.6, combined_a_c=False.
    F, H, G = 8, 32, 4
    critic_weight = 0.6

    key = jax.random.PRNGKey(0)
    ks = jax.random.split(key, 16)

    def init(k, shape, scale=0.1):
        return (scale * jax.random.normal(k, shape)).astype(jnp.float32)

    params = {
        "W_in": init(ks[0], (F, H)), "b_in": init(ks[1], (1, H)),
        "Wa1": init(ks[2], (H + G, 16)), "ba1": init(ks[3], (1, 16)),
        "Wa2": init(ks[4], (16, 1)), "ba2": init(ks[5], (1, 1)),
        "Wc1": init(ks[6], (H + G, 16)), "bc1": init(ks[7], (1, 16)),
        "Wc2": init(ks[8], (16, 1)), "bc2": init(ks[9], (1, 1)),
    }

    # Case 1: tiny (two graphs, 8 nodes), default tile/chunk -> single grid step.
    num_nodes1 = [3, 5]
    actions1 = [1, 2]
    N1 = int(sum(num_nodes1))
    x1 = jax.random.normal(ks[10], (N1, F), dtype=jnp.float32)
    goal1 = jax.random.normal(ks[11], (N1, G), dtype=jnp.float32)
    _check(params, x1, goal1, num_nodes1, actions1, critic_weight,
           tile_n=4096, chunk_n=256)

    # Case 2: segments spanning multiple GRID steps (streaming accumulators).
    num_nodes2 = [5, 40, 19]
    actions2 = [4, 17, 0]
    N2 = int(sum(num_nodes2))
    x2 = jax.random.normal(ks[12], (N2, F), dtype=jnp.float32)
    goal2 = jax.random.normal(ks[13], (N2, G), dtype=jnp.float32)
    _check(params, x2, goal2, num_nodes2, actions2, critic_weight,
           tile_n=32, chunk_n=32)

    # Case 3: multiple grid steps AND multiple inner chunks per step, B=5.
    num_nodes3 = [37, 200, 3, 120, 260]
    actions3 = [10, 150, 0, 7, 255]
    N3 = int(sum(num_nodes3))
    x3 = jax.random.normal(ks[14], (N3, F), dtype=jnp.float32)
    goal3 = jax.random.normal(ks[15], (N3, G), dtype=jnp.float32)
    _check(params, x3, goal3, num_nodes3, actions3, critic_weight,
           tile_n=256, chunk_n=64)

    print("KERNEL_OK")
</pallas_src>

<mosaic_0001>
module attributes {stable_mosaic.version = 11 : i64} {
  func.func @nostructure_kernel(%arg0: i32, %arg1: memref<3x2xi32, #tpu.memory_space<vmem>>, %arg2: memref<64x48xf32, #tpu.memory_space<vmem>>, %arg3: memref<48x128xf32, #tpu.memory_space<vmem>>, %arg4: memref<1x128xf32, #tpu.memory_space<vmem>>, %arg5: memref<128x128xf32, #tpu.memory_space<vmem>>, %arg6: memref<48x128xf32, #tpu.memory_space<vmem>>, %arg7: memref<1x128xf32, #tpu.memory_space<vmem>>, %arg8: memref<128x8xf32, #tpu.memory_space<vmem>>, %arg9: memref<1x8xf32, #tpu.memory_space<vmem>>, %arg10: memref<64x128xf32, #tpu.memory_space<vmem>>, %arg11: memref<1x2xf32, #tpu.memory_space<vmem>>, %arg12: memref<1x2xf32, #tpu.memory_space<vmem>>, %arg13: memref<1x2xf32, #tpu.memory_space<vmem>>, %arg14: memref<1x2xf32, #tpu.memory_space<vmem>>, %arg15: memref<1x2xf32, #tpu.memory_space<vmem>>, %arg16: memref<1x2xf32, #tpu.memory_space<vmem>>, %arg17: memref<1x2xf32, #tpu.memory_space<vmem>>, %arg18: memref<1x2xf32, #tpu.memory_space<vmem>>, %arg19: memref<1x2xf32, #tpu.memory_space<vmem>>) attributes {dimension_semantics = [#tpu.dimension_semantics<arbitrary>], iteration_bounds = array<i64: 1>, scalar_prefetch = 0 : i64, scratch_operands = 6 : i64, tpu.core_type = #tpu.core_type<tc>, window_params = [{pipeline_mode = #tpu.pipeline_mode<synchronous>, transform_indices = @transform_0, window_bounds = array<i64: 3, 2>}, {transform_indices = @transform_1, window_bounds = array<i64: 64, 48>}, {pipeline_mode = #tpu.pipeline_mode<synchronous>, transform_indices = @transform_2, window_bounds = array<i64: 48, 128>}, {pipeline_mode = #tpu.pipeline_mode<synchronous>, transform_indices = @transform_3, window_bounds = array<i64: 1, 128>}, {pipeline_mode = #tpu.pipeline_mode<synchronous>, transform_indices = @transform_4, window_bounds = array<i64: 128, 128>}, {pipeline_mode = #tpu.pipeline_mode<synchronous>, transform_indices = @transform_5, window_bounds = array<i64: 48, 128>}, {pipeline_mode = #tpu.pipeline_mode<synchronous>, transform_indices = @transform_6, window_bounds = array<i64: 1, 128>}, {pipeline_mode = #tpu.pipeline_mode<synchronous>, transform_indices = @transform_7, window_bounds = array<i64: 128, 8>}, {pipeline_mode = #tpu.pipeline_mode<synchronous>, transform_indices = @transform_8, window_bounds = array<i64: 1, 8>}, {transform_indices = @transform_9, window_bounds = array<i64: 64, 128>}, {pipeline_mode = #tpu.pipeline_mode<synchronous>, transform_indices = @transform_10, window_bounds = array<i64: 1, 2>}, {pipeline_mode = #tpu.pipeline_mode<synchronous>, transform_indices = @transform_11, window_bounds = array<i64: 1, 2>}, {pipeline_mode = #tpu.pipeline_mode<synchronous>, transform_indices = @transform_12, window_bounds = array<i64: 1, 2>}]} {
    %c0 = arith.constant 0 : index
    %c0_0 = arith.constant 0 : index
    %0 = vector.load %arg1[%c0, %c0_0] : memref<3x2xi32, #tpu.memory_space<vmem>>, vector<1x2xi32>
    %c1 = arith.constant 1 : index
    %c0_1 = arith.constant 0 : index
    %1 = vector.load %arg1[%c1, %c0_1] : memref<3x2xi32, #tpu.memory_space<vmem>>, vector<1x2xi32>
    %c2 = arith.constant 2 : index
    %c0_2 = arith.constant 0 : index
    %2 = vector.load %arg1[%c2, %c0_2] : memref<3x2xi32, #tpu.memory_space<vmem>>, vector<1x2xi32>
    %c0_i32 = arith.constant 0 : i32
    %3 = arith.cmpi eq, %arg0, %c0_i32 : i32
    %4 = arith.extui %3 : i1 to i32
    %c0_i32_3 = arith.constant 0 : i32
    %5 = arith.cmpi ne, %4, %c0_i32_3 : i32
    scf.if %5 {
      %cst_180 = arith.constant -1.000000e+30 : f32
      %309 = vector.broadcast %cst_180 : f32 to vector<1x2xf32>
      %c0_181 = arith.constant 0 : index
      %c0_182 = arith.constant 0 : index
      %310 = vector.load %arg14[%c0_181, %c0_182] : memref<1x2xf32, #tpu.memory_space<vmem>>, vector<1x2xf32>
      tpu.vector_store %arg14[%c0_181, %c0_182], %309 {strides = array<i32>} : memref<1x2xf32, #tpu.memory_space<vmem>>, vector<1x2xf32>,
      %cst_183 = arith.constant -1.000000e+30 : f32
      %311 = vector.broadcast %cst_183 : f32 to vector<1x2xf32>
      %c0_184 = arith.constant 0 : index
      %c0_185 = arith.constant 0 : index
      %312 = vector.load %arg18[%c0_184, %c0_185] : memref<1x2xf32, #tpu.memory_space<vmem>>, vector<1x2xf32>
      tpu.vector_store %arg18[%c0_184, %c0_185], %311 {strides = array<i32>} : memref<1x2xf32, #tpu.memory_space<vmem>>, vector<1x2xf32>,
      %cst_186 = arith.constant 0.000000e+00 : f32
      %313 = vector.broadcast %cst_186 : f32 to vector<1x2xf32>
      %c0_187 = arith.constant 0 : index
      %c0_188 = arith.constant 0 : index
      %314 = vector.load %arg15[%c0_187, %c0_188] : memref<1x2xf32, #tpu.memory_space<vmem>>, vector<1x2xf32>
      tpu.vector_store %arg15[%c0_187, %c0_188], %313 {strides = array<i32>} : memref<1x2xf32, #tpu.memory_space<vmem>>, vector<1x2xf32>,
      %cst_189 = arith.constant 0.000000e+00 : f32
      %315 = vector.broadcast %cst_189 : f32 to vector<1x2xf32>
      %c0_190 = arith.constant 0 : index
      %c0_191 = arith.constant 0 : index
      %316 = vector.load %arg16[%c0_190, %c0_191] : memref<1x2xf32, #tpu.memory_space<vmem>>, vector<1x2xf32>
      tpu.vector_store %arg16[%c0_190, %c0_191], %315 {strides = array<i32>} : memref<1x2xf32, #tpu.memory_space<vmem>>, vector<1x2xf32>,
      %cst_192 = arith.constant 0.000000e+00 : f32
      %317 = vector.broadcast %cst_192 : f32 to vector<1x2xf32>
      %c0_193 = arith.constant 0 : index
      %c0_194 = arith.constant 0 : index
      %318 = vector.load %arg17[%c0_193, %c0_194] : memref<1x2xf32, #tpu.memory_space<vmem>>, vector<1x2xf32>
      tpu.vector_store %arg17[%c0_193, %c0_194], %317 {strides = array<i32>} : memref<1x2xf32, #tpu.memory_space<vmem>>, vector<1x2xf32>,
      %cst_195 = arith.constant 0.000000e+00 : f32
      %319 = vector.broadcast %cst_195 : f32 to vector<1x2xf32>
      %c0_196 = arith.constant 0 : index
      %c0_197 = arith.constant 0 : index
      %320 = vector.load %arg19[%c0_196, %c0_197] : memref<1x2xf32, #tpu.memory_space<vmem>>, vector<1x2xf32>
      tpu.vector_store %arg19[%c0_196, %c0_197], %319 {strides = array<i32>} : memref<1x2xf32, #tpu.memory_space<vmem>>, vector<1x2xf32>,
    } else {
    }
    %c0_4 = arith.constant 0 : index
    %c0_5 = arith.constant 0 : index
    %6 = vector.load %arg2[%c0_4, %c0_5] : memref<64x48xf32, #tpu.memory_space<vmem>>, vector<64x48xf32>
    %c0_6 = arith.constant 0 : index
    %c0_7 = arith.constant 0 : index
    %7 = vector.load %arg3[%c0_6, %c0_7] : memref<48x128xf32, #tpu.memory_space<vmem>>, vector<48x128xf32>
    %cst = arith.constant dense<0.000000e+00> : vector<64x128xf32>
    %8 = tpu.matmul %6, %7, %cst {dimension_numbers = #tpu.dot_dimension_numbers<[1], [0], [0], [1], [0, 0, 1, 1], [], []>} : vector<64x48xf32>, vector<48x128xf32>, vector<64x128xf32> -> vector<64x128xf32>
    %c0_8 = arith.constant 0 : index
    %c0_9 = arith.constant 0 : index
    %9 = vector.load %arg4[%c0_8, %c0_9] : memref<1x128xf32, #tpu.memory_space<vmem>>, vector<1x128xf32>
    %10 = vector.broadcast %9 : vector<1x128xf32> to vector<64x128xf32>
    %11 = arith.addf %8, %10 : vector<64x128xf32>
    %cst_10 = arith.constant 0.000000e+00 : f32
    %12 = vector.broadcast %cst_10 : f32 to vector<64x128xf32>
    %13 = arith.maximumf %11, %12 : vector<64x128xf32>
    %c0_11 = arith.constant 0 : index
    %c0_12 = arith.constant 0 : index
    %14 = vector.load %arg10[%c0_11, %c0_12] : memref<64x128xf32, #tpu.memory_space<vmem>>, vector<64x128xf32>
    tpu.vector_store %arg10[%c0_11, %c0_12], %13 {strides = array<i32>} : memref<64x128xf32, #tpu.memory_space<vmem>>, vector<64x128xf32>,
    %c0_13 = arith.constant 0 : index
    %c0_14 = arith.constant 0 : index
    %15 = vector.load %arg5[%c0_13, %c0_14] : memref<128x128xf32, #tpu.memory_space<vmem>>, vector<128x128xf32>
    %cst_15 = arith.constant dense<0.000000e+00> : vector<64x128xf32>
    %16 = tpu.matmul %13, %15, %cst_15 {dimension_numbers = #tpu.dot_dimension_numbers<[1], [0], [0], [1], [0, 0, 1, 1], [], []>} : vector<64x128xf32>, vector<128x128xf32>, vector<64x128xf32> -> vector<64x128xf32>
    %c0_16 = arith.constant 0 : index
    %c0_17 = arith.constant 0 : index
    %17 = vector.load %arg6[%c0_16, %c0_17] : memref<48x128xf32, #tpu.memory_space<vmem>>, vector<48x128xf32>
    %cst_18 = arith.constant dense<0.000000e+00> : vector<64x128xf32>
    %18 = tpu.matmul %6, %17, %cst_18 {dimension_numbers = #tpu.dot_dimension_numbers<[1], [0], [0], [1], [0, 0, 1, 1], [], []>} : vector<64x48xf32>, vector<48x128xf32>, vector<64x128xf32> -> vector<64x128xf32>
    %19 = arith.addf %16, %18 : vector<64x128xf32>
    %c0_19 = arith.constant 0 : index
    %c0_20 = arith.constant 0 : index
    %20 = vector.load %arg7[%c0_19, %c0_20] : memref<1x128xf32, #tpu.memory_space<vmem>>, vector<1x128xf32>
    %21 = vector.broadcast %20 : vector<1x128xf32> to vector<64x128xf32>
    %22 = arith.addf %19, %21 : vector<64x128xf32>
    %cst_21 = arith.constant 0.000000e+00 : f32
    %23 = vector.broadcast %cst_21 : f32 to vector<64x128xf32>
    %24 = arith.maximumf %22, %23 : vector<64x128xf32>
    %c0_22 = arith.constant 0 : index
    %c0_23 = arith.constant 0 : index
    %25 = vector.load %arg8[%c0_22, %c0_23] : memref<128x8xf32, #tpu.memory_space<vmem>>, vector<128x8xf32>
    %cst_24 = arith.constant dense<0.000000e+00> : vector<64x8xf32>
    %26 = tpu.matmul %24, %25, %cst_24 {dimension_numbers = #tpu.dot_dimension_numbers<[1], [0], [0], [1], [0, 0, 1, 1], [], []>} : vector<64x128xf32>, vector<128x8xf32>, vector<64x8xf32> -> vector<64x8xf32>
    %c0_25 = arith.constant 0 : index
    %c0_26 = arith.constant 0 : index
    %27 = vector.load %arg9[%c0_25, %c0_26] : memref<1x8xf32, #tpu.memory_space<vmem>>, vector<1x8xf32>
    %28 = vector.broadcast %27 : vector<1x8xf32> to vector<64x8xf32>
    %29 = arith.addf %26, %28 : vector<64x8xf32>
    %c64_i32 = arith.constant 64 : i32
    %30 = arith.muli %arg0, %c64_i32 : i32
    %c0_i32_27 = arith.constant 0 : i32
    %31 = arith.addi %30, %c0_i32_27 : i32
    %c4_i32 = arith.constant 4 : i32
    %32 = arith.muli %31, %c4_i32 : i32
    %33 = tpu.iota {dimensions = array<i32: 0>} : vector<64x1xi32>
    %c4_i32_28 = arith.constant 4 : i32
    %34 = vector.broadcast %c4_i32_28 : i32 to vector<64x1xi32>
    %35 = arith.muli %34, %33 : vector<64x1xi32>
    %36 = vector.broadcast %32 : i32 to vector<64x1xi32>
    %37 = arith.addi %36, %35 : vector<64x1xi32>
    %c0_i32_29 = arith.constant 0 : i32
    %38 = vector.broadcast %c0_i32_29 : i32 to vector<64x1xi32>
    %39 = arith.addi %37, %38 : vector<64x1xi32>
    %40 = vector.extract_strided_slice %29 {offsets = [0, 0], sizes = [64, 1], strides = [1, 1]} : vector<64x8xf32> to vector<64x1xf32>
    %41 = vector.extract_strided_slice %29 {offsets = [0, 4], sizes = [64, 1], strides = [1, 1]} : vector<64x8xf32> to vector<64x1xf32>
    %42 = vector.broadcast %39 : vector<64x1xi32> to vector<64x2xi32>
    %43 = vector.broadcast %0 : vector<1x2xi32> to vector<64x2xi32>
    %44 = arith.cmpi sge, %42, %43 : vector<64x2xi32>
    %45 = vector.broadcast %39 : vector<64x1xi32> to vector<64x2xi32>
    %46 = vector.broadcast %1 : vector<1x2xi32> to vector<64x2xi32>
    %47 = arith.cmpi slt, %45, %46 : vector<64x2xi32>
    %48 = arith.andi %44, %47 : vector<64x2xi1>
    %49 = vector.broadcast %39 : vector<64x1xi32> to vector<64x2xi32>
    %50 = vector.broadcast %2 : vector<1x2xi32> to vector<64x2xi32>
    %51 = arith.cmpi eq, %49, %50 : vector<64x2xi32>
    %52 = vector.shape_cast %40 : vector<64x1xf32> to vector<64x1xf32>
    %53 = vector.broadcast %52 : vector<64x1xf32> to vector<64x2xf32>
    %54 = vector.shape_cast %41 : vector<64x1xf32> to vector<64x1xf32>
    %55 = vector.broadcast %54 : vector<64x1xf32> to vector<64x2xf32>
    %c0_30 = arith.constant 0 : index
    %c0_31 = arith.constant 0 : index
    %56 = vector.load %arg18[%c0_30, %c0_31] : memref<1x2xf32, #tpu.memory_space<vmem>>, vector<1x2xf32>
    %cst_32 = arith.constant -1.000000e+30 : f32
    %57 = vector.broadcast %cst_32 : f32 to vector<64x2xf32>
    %58 = arith.select %48, %55, %57 : vector<64x2xi1>, vector<64x2xf32>
    %cst_33 = arith.constant dense<0xFF800000> : vector<2xf32>
    %59 = vector.multi_reduction <maximumf>, %58, %cst_33 [0] : vector<64x2xf32> to vector<2xf32>
    %60 = vector.shape_cast %59 : vector<2xf32> to vector<1x2xf32>
    %61 = arith.maximumf %56, %60 : vector<1x2xf32>
    %c0_34 = arith.constant 0 : index
    %c0_35 = arith.constant 0 : index
    %62 = vector.load %arg18[%c0_34, %c0_35] : memref<1x2xf32, #tpu.memory_space<vmem>>, vector<1x2xf32>
    tpu.vector_store %arg18[%c0_34, %c0_35], %61 {strides = array<i32>} : memref<1x2xf32, #tpu.memory_space<vmem>>, vector<1x2xf32>,
    %c0_36 = arith.constant 0 : index
    %c0_37 = arith.constant 0 : index
    %63 = vector.load %arg19[%c0_36, %c0_37] : memref<1x2xf32, #tpu.memory_space<vmem>>, vector<1x2xf32>
    %cst_38 = arith.constant 0.000000e+00 : f32
    %64 = vector.broadcast %cst_38 : f32 to vector<64x2xf32>
    %65 = arith.select %48, %55, %64 : vector<64x2xi1>, vector<64x2xf32>
    %cst_39 = arith.constant dense<0.000000e+00> : vector<2xf32>
    %66 = vector.multi_reduction <add>, %65, %cst_39 [0] : vector<64x2xf32> to vector<2xf32>
    %67 = vector.shape_cast %66 : vector<2xf32> to vector<1x2xf32>
    %68 = arith.addf %63, %67 : vector<1x2xf32>
    %c0_40 = arith.constant 0 : index
    %c0_41 = arith.constant 0 : index
    %69 = vector.load %arg19[%c0_40, %c0_41] : memref<1x2xf32, #tpu.memory_space<vmem>>, vector<1x2xf32>
    tpu.vector_store %arg19[%c0_40, %c0_41], %68 {strides = array<i32>} : memref<1x2xf32, #tpu.memory_space<vmem>>, vector<1x2xf32>,
    %cst_42 = arith.constant -1.000000e+30 : f32
    %70 = vector.broadcast %cst_42 : f32 to vector<64x2xf32>
    %71 = arith.select %48, %53, %70 : vector<64x2xi1>, vector<64x2xf32>
    %c0_43 = arith.constant 0 : index
    %c0_44 = arith.constant 0 : index
    %72 = vector.load %arg14[%c0_43, %c0_44] : memref<1x2xf32, #tpu.memory_space<vmem>>, vector<1x2xf32>
    %cst_45 = arith.constant dense<0xFF800000> : vector<2xf32>
    %73 = vector.multi_reduction <maximumf>, %71, %cst_45 [0] : vector<64x2xf32> to vector<2xf32>
    %74 = vector.shape_cast %73 : vector<2xf32> to vector<1x2xf32>
    %75 = arith.maximumf %72, %74 : vector<1x2xf32>
    %c0_46 = arith.constant 0 : index
    %c0_47 = arith.constant 0 : index
    %76 = vector.load %arg14[%c0_46, %c0_47] : memref<1x2xf32, #tpu.memory_space<vmem>>, vector<1x2xf32>
    %77 = arith.subf %76, %75 : vector<1x2xf32>
    %78 = math.exp %77 : vector<1x2xf32>
    %79 = vector.broadcast %75 : vector<1x2xf32> to vector<64x2xf32>
    %80 = arith.subf %71, %79 : vector<64x2xf32>
    %81 = math.exp %80 : vector<64x2xf32>
    %cst_48 = arith.constant 0.000000e+00 : f32
    %82 = vector.broadcast %cst_48 : f32 to vector<64x2xf32>
    %83 = arith.select %48, %81, %82 : vector<64x2xi1>, vector<64x2xf32>
    %c0_49 = arith.constant 0 : index
    %c0_50 = arith.constant 0 : index
    %84 = vector.load %arg15[%c0_49, %c0_50] : memref<1x2xf32, #tpu.memory_space<vmem>>, vector<1x2xf32>
    %85 = arith.mulf %84, %78 : vector<1x2xf32>
    %cst_51 = arith.constant dense<0.000000e+00> : vector<2xf32>
    %86 = vector.multi_reduction <add>, %83, %cst_51 [0] : vector<64x2xf32> to vector<2xf32>
    %87 = vector.shape_cast %86 : vector<2xf32> to vector<1x2xf32>
    %88 = arith.addf %85, %87 : vector<1x2xf32>
    %c0_52 = arith.constant 0 : index
    %c0_53 = arith.constant 0 : index
    %89 = vector.load %arg15[%c0_52, %c0_53] : memref<1x2xf32, #tpu.memory_space<vmem>>, vector<1x2xf32>
    tpu.vector_store %arg15[%c0_52, %c0_53], %88 {strides = array<i32>} : memref<1x2xf32, #tpu.memory_space<vmem>>, vector<1x2xf32>,
    %c0_54 = arith.constant 0 : index
    %c0_55 = arith.constant 0 : index
    %90 = vector.load %arg16[%c0_54, %c0_55] : memref<1x2xf32, #tpu.memory_space<vmem>>, vector<1x2xf32>
    %91 = arith.mulf %90, %78 : vector<1x2xf32>
    %92 = arith.mulf %83, %53 : vector<64x2xf32>
    %cst_56 = arith.constant dense<0.000000e+00> : vector<2xf32>
    %93 = vector.multi_reduction <add>, %92, %cst_56 [0] : vector<64x2xf32> to vector<2xf32>
    %94 = vector.shape_cast %93 : vector<2xf32> to vector<1x2xf32>
    %95 = arith.addf %91, %94 : vector<1x2xf32>
    %c0_57 = arith.constant 0 : index
    %c0_58 = arith.constant 0 : index
    %96 = vector.load %arg16[%c0_57, %c0_58] : memref<1x2xf32, #tpu.memory_space<vmem>>, vector<1x2xf32>
    tpu.vector_store %arg16[%c0_57, %c0_58], %95 {strides = array<i32>} : memref<1x2xf32, #tpu.memory_space<vmem>>, vector<1x2xf32>,
    %c0_59 = arith.constant 0 : index
    %c0_60 = arith.constant 0 : index
    %97 = vector.load %arg17[%c0_59, %c0_60] : memref<1x2xf32, #tpu.memory_space<vmem>>, vector<1x2xf32>
    %cst_61 = arith.constant 0.000000e+00 : f32
    %98 = vector.broadcast %cst_61 : f32 to vector<64x2xf32>
    %99 = arith.select %51, %53, %98 : vector<64x2xi1>, vector<64x2xf32>
    %cst_62 = arith.constant dense<0.000000e+00> : vector<2xf32>
    %100 = vector.multi_reduction <add>, %99, %cst_62 [0] : vector<64x2xf32> to vector<2xf32>
    %101 = vector.shape_cast %100 : vector<2xf32> to vector<1x2xf32>
    %102 = arith.addf %97, %101 : vector<1x2xf32>
    %c0_63 = arith.constant 0 : index
    %c0_64 = arith.constant 0 : index
    %103 = vector.load %arg17[%c0_63, %c0_64] : memref<1x2xf32, #tpu.memory_space<vmem>>, vector<1x2xf32>
    tpu.vector_store %arg17[%c0_63, %c0_64], %102 {strides = array<i32>} : memref<1x2xf32, #tpu.memory_space<vmem>>, vector<1x2xf32>,
    %c0_65 = arith.constant 0 : index
    %c0_66 = arith.constant 0 : index
    %104 = vector.load %arg14[%c0_65, %c0_66] : memref<1x2xf32, #tpu.memory_space<vmem>>, vector<1x2xf32>
    tpu.vector_store %arg14[%c0_65, %c0_66], %75 {strides = array<i32>} : memref<1x2xf32, #tpu.memory_space<vmem>>, vector<1x2xf32>,
    %c1_i32 = arith.constant 1 : i32
    %105 = vector.broadcast %c1_i32 : i32 to vector<64x1xi32>
    %106 = arith.addi %37, %105 : vector<64x1xi32>
    %107 = vector.extract_strided_slice %29 {offsets = [0, 1], sizes = [64, 1], strides = [1, 1]} : vector<64x8xf32> to vector<64x1xf32>
    %108 = vector.extract_strided_slice %29 {offsets = [0, 5], sizes = [64, 1], strides = [1, 1]} : vector<64x8xf32> to vector<64x1xf32>
    %109 = vector.broadcast %106 : vector<64x1xi32> to vector<64x2xi32>
    %110 = vector.broadcast %0 : vector<1x2xi32> to vector<64x2xi32>
    %111 = arith.cmpi sge, %109, %110 : vector<64x2xi32>
    %112 = vector.broadcast %106 : vector<64x1xi32> to vector<64x2xi32>
    %113 = vector.broadcast %1 : vector<1x2xi32> to vector<64x2xi32>
    %114 = arith.cmpi slt, %112, %113 : vector<64x2xi32>
    %115 = arith.andi %111, %114 : vector<64x2xi1>
    %116 = vector.broadcast %106 : vector<64x1xi32> to vector<64x2xi32>
    %117 = vector.broadcast %2 : vector<1x2xi32> to vector<64x2xi32>
    %118 = arith.cmpi eq, %116, %117 : vector<64x2xi32>
    %119 = vector.shape_cast %107 : vector<64x1xf32> to vector<64x1xf32>
    %120 = vector.broadcast %119 : vector<64x1xf32> to vector<64x2xf32>
    %121 = vector.shape_cast %108 : vector<64x1xf32> to vector<64x1xf32>
    %122 = vector.broadcast %121 : vector<64x1xf32> to vector<64x2xf32>
    %c0_67 = arith.constant 0 : index
    %c0_68 = arith.constant 0 : index
    %123 = vector.load %arg18[%c0_67, %c0_68] : memref<1x2xf32, #tpu.memory_space<vmem>>, vector<1x2xf32>
    %cst_69 = arith.constant -1.000000e+30 : f32
    %124 = vector.broadcast %cst_69 : f32 to vector<64x2xf32>
    %125 = arith.select %115, %122, %124 : vector<64x2xi1>, vector<64x2xf32>
    %cst_70 = arith.constant dense<0xFF800000> : vector<2xf32>
    %126 = vector.multi_reduction <maximumf>, %125, %cst_70 [0] : vector<64x2xf32> to vector<2xf32>
    %127 = vector.shape_cast %126 : vector<2xf32> to vector<1x2xf32>
    %128 = arith.maximumf %123, %127 : vector<1x2xf32>
    %c0_71 = arith.constant 0 : index
    %c0_72 = arith.constant 0 : index
    %129 = vector.load %arg18[%c0_71, %c0_72] : memref<1x2xf32, #tpu.memory_space<vmem>>, vector<1x2xf32>
    tpu.vector_store %arg18[%c0_71, %c0_72], %128 {strides = array<i32>} : memref<1x2xf32, #tpu.memory_space<vmem>>, vector<1x2xf32>,
    %c0_73 = arith.constant 0 : index
    %c0_74 = arith.constant 0 : index
    %130 = vector.load %arg19[%c0_73, %c0_74] : memref<1x2xf32, #tpu.memory_space<vmem>>, vector<1x2xf32>
    %cst_75 = arith.constant 0.000000e+00 : f32
    %131 = vector.broadcast %cst_75 : f32 to vector<64x2xf32>
    %132 = arith.select %115, %122, %131 : vector<64x2xi1>, vector<64x2xf32>
    %cst_76 = arith.constant dense<0.000000e+00> : vector<2xf32>
    %133 = vector.multi_reduction <add>, %132, %cst_76 [0] : vector<64x2xf32> to vector<2xf32>
    %134 = vector.shape_cast %133 : vector<2xf32> to vector<1x2xf32>
    %135 = arith.addf %130, %134 : vector<1x2xf32>
    %c0_77 = arith.constant 0 : index
    %c0_78 = arith.constant 0 : index
    %136 = vector.load %arg19[%c0_77, %c0_78] : memref<1x2xf32, #tpu.memory_space<vmem>>, vector<1x2xf32>
    tpu.vector_store %arg19[%c0_77, %c0_78], %135 {strides = array<i32>} : memref<1x2xf32, #tpu.memory_space<vmem>>, vector<1x2xf32>,
    %cst_79 = arith.constant -1.000000e+30 : f32
    %137 = vector.broadcast %cst_79 : f32 to vector<64x2xf32>
    %138 = arith.select %115, %120, %137 : vector<64x2xi1>, vector<64x2xf32>
    %c0_80 = arith.constant 0 : index
    %c0_81 = arith.constant 0 : index
    %139 = vector.load %arg14[%c0_80, %c0_81] : memref<1x2xf32, #tpu.memory_space<vmem>>, vector<1x2xf32>
    %cst_82 = arith.constant dense<0xFF800000> : vector<2xf32>
    %140 = vector.multi_reduction <maximumf>, %138, %cst_82 [0] : vector<64x2xf32> to vector<2xf32>
    %141 = vector.shape_cast %140 : vector<2xf32> to vector<1x2xf32>
    %142 = arith.maximumf %139, %141 : vector<1x2xf32>
    %c0_83 = arith.constant 0 : index
    %c0_84 = arith.constant 0 : index
    %143 = vector.load %arg14[%c0_83, %c0_84] : memref<1x2xf32, #tpu.memory_space<vmem>>, vector<1x2xf32>
    %144 = arith.subf %143, %142 : vector<1x2xf32>
    %145 = math.exp %144 : vector<1x2xf32>
    %146 = vector.broadcast %142 : vector<1x2xf32> to vector<64x2xf32>
    %147 = arith.subf %138, %146 : vector<64x2xf32>
    %148 = math.exp %147 : vector<64x2xf32>
    %cst_85 = arith.constant 0.000000e+00 : f32
    %149 = vector.broadcast %cst_85 : f32 to vector<64x2xf32>
    %150 = arith.select %115, %148, %149 : vector<64x2xi1>, vector<64x2xf32>
    %c0_86 = arith.constant 0 : index
    %c0_87 = arith.constant 0 : index
    %151 = vector.load %arg15[%c0_86, %c0_87] : memref<1x2xf32, #tpu.memory_space<vmem>>, vector<1x2xf32>
    %152 = arith.mulf %151, %145 : vector<1x2xf32>
    %cst_88 = arith.constant dense<0.000000e+00> : vector<2xf32>
    %153 = vector.multi_reduction <add>, %150, %cst_88 [0] : vector<64x2xf32> to vector<2xf32>
    %154 = vector.shape_cast %153 : vector<2xf32> to vector<1x2xf32>
    %155 = arith.addf %152, %154 : vector<1x2xf32>
    %c0_89 = arith.constant 0 : index
    %c0_90 = arith.constant 0 : index
    %156 = vector.load %arg15[%c0_89, %c0_90] : memref<1x2xf32, #tpu.memory_space<vmem>>, vector<1x2xf32>
    tpu.vector_store %arg15[%c0_89, %c0_90], %155 {strides = array<i32>} : memref<1x2xf32, #tpu.memory_space<vmem>>, vector<1x2xf32>,
    %c0_91 = arith.constant 0 : index
    %c0_92 = arith.constant 0 : index
    %157 = vector.load %arg16[%c0_91, %c0_92] : memref<1x2xf32, #tpu.memory_space<vmem>>, vector<1x2xf32>
    %158 = arith.mulf %157, %145 : vector<1x2xf32>
    %159 = arith.mulf %150, %120 : vector<64x2xf32>
    %cst_93 = arith.constant dense<0.000000e+00> : vector<2xf32>
    %160 = vector.multi_reduction <add>, %159, %cst_93 [0] : vector<64x2xf32> to vector<2xf32>
    %161 = vector.shape_cast %160 : vector<2xf32> to vector<1x2xf32>
    %162 = arith.addf %158, %161 : vector<1x2xf32>
    %c0_94 = arith.constant 0 : index
    %c0_95 = arith.constant 0 : index
    %163 = vector.load %arg16[%c0_94, %c0_95] : memref<1x2xf32, #tpu.memory_space<vmem>>, vector<1x2xf32>
    tpu.vector_store %arg16[%c0_94, %c0_95], %162 {strides = array<i32>} : memref<1x2xf32, #tpu.memory_space<vmem>>, vector<1x2xf32>,
    %c0_96 = arith.constant 0 : index
    %c0_97 = arith.constant 0 : index
    %164 = vector.load %arg17[%c0_96, %c0_97] : memref<1x2xf32, #tpu.memory_space<vmem>>, vector<1x2xf32>
    %cst_98 = arith.constant 0.000000e+00 : f32
    %165 = vector.broadcast %cst_98 : f32 to vector<64x2xf32>
    %166 = arith.select %118, %120, %165 : vector<64x2xi1>, vector<64x2xf32>
    %cst_99 = arith.constant dense<0.000000e+00> : vector<2xf32>
    %167 = vector.multi_reduction <add>, %166, %cst_99 [0] : vector<64x2xf32> to vector<2xf32>
    %168 = vector.shape_cast %167 : vector<2xf32> to vector<1x2xf32>
    %169 = arith.addf %164, %168 : vector<1x2xf32>
    %c0_100 = arith.constant 0 : index
    %c0_101 = arith.constant 0 : index
    %170 = vector.load %arg17[%c0_100, %c0_101] : memref<1x2xf32, #tpu.memory_space<vmem>>, vector<1x2xf32>
    tpu.vector_store %arg17[%c0_100, %c0_101], %169 {strides = array<i32>} : memref<1x2xf32, #tpu.memory_space<vmem>>, vector<1x2xf32>,
    %c0_102 = arith.constant 0 : index
    %c0_103 = arith.constant 0 : index
    %171 = vector.load %arg14[%c0_102, %c0_103] : memref<1x2xf32, #tpu.memory_space<vmem>>, vector<1x2xf32>
    tpu.vector_store %arg14[%c0_102, %c0_103], %142 {strides = array<i32>} : memref<1x2xf32, #tpu.memory_space<vmem>>, vector<1x2xf32>,
    %c2_i32 = arith.constant 2 : i32
    %172 = vector.broadcast %c2_i32 : i32 to vector<64x1xi32>
    %173 = arith.addi %37, %172 : vector<64x1xi32>
    %174 = vector.extract_strided_slice %29 {offsets = [0, 2], sizes = [64, 1], strides = [1, 1]} : vector<64x8xf32> to vector<64x1xf32>
    %175 = vector.extract_strided_slice %29 {offsets = [0, 6], sizes = [64, 1], strides = [1, 1]} : vector<64x8xf32> to vector<64x1xf32>
    %176 = vector.broadcast %173 : vector<64x1xi32> to vector<64x2xi32>
    %177 = vector.broadcast %0 : vector<1x2xi32> to vector<64x2xi32>
    %178 = arith.cmpi sge, %176, %177 : vector<64x2xi32>
    %179 = vector.broadcast %173 : vector<64x1xi32> to vector<64x2xi32>
    %180 = vector.broadcast %1 : vector<1x2xi32> to vector<64x2xi32>
    %181 = arith.cmpi slt, %179, %180 : vector<64x2xi32>
    %182 = arith.andi %178, %181 : vector<64x2xi1>
    %183 = vector.broadcast %173 : vector<64x1xi32> to vector<64x2xi32>
    %184 = vector.broadcast %2 : vector<1x2xi32> to vector<64x2xi32>
    %185 = arith.cmpi eq, %183, %184 : vector<64x2xi32>
    %186 = vector.shape_cast %174 : vector<64x1xf32> to vector<64x1xf32>
    %187 = vector.broadcast %186 : vector<64x1xf32> to vector<64x2xf32>
    %188 = vector.shape_cast %175 : vector<64x1xf32> to vector<64x1xf32>
    %189 = vector.broadcast %188 : vector<64x1xf32> to vector<64x2xf32>
    %c0_104 = arith.constant 0 : index
    %c0_105 = arith.constant 0 : index
    %190 = vector.load %arg18[%c0_104, %c0_105] : memref<1x2xf32, #tpu.memory_space<vmem>>, vector<1x2xf32>
    %cst_106 = arith.constant -1.000000e+30 : f32
    %191 = vector.broadcast %cst_106 : f32 to vector<64x2xf32>
    %192 = arith.select %182, %189, %191 : vector<64x2xi1>, vector<64x2xf32>
    %cst_107 = arith.constant dense<0xFF800000> : vector<2xf32>
    %193 = vector.multi_reduction <maximumf>, %192, %cst_107 [0] : vector<64x2xf32> to vector<2xf32>
    %194 = vector.shape_cast %193 : vector<2xf32> to vector<1x2xf32>
    %195 = arith.maximumf %190, %194 : vector<1x2xf32>
    %c0_108 = arith.constant 0 : index
    %c0_109 = arith.constant 0 : index
    %196 = vector.load %arg18[%c0_108, %c0_109] : memref<1x2xf32, #tpu.memory_space<vmem>>, vector<1x2xf32>
    tpu.vector_store %arg18[%c0_108, %c0_109], %195 {strides = array<i32>} : memref<1x2xf32, #tpu.memory_space<vmem>>, vector<1x2xf32>,
    %c0_110 = arith.constant 0 : index
    %c0_111 = arith.constant 0 : index
    %197 = vector.load %arg19[%c0_110, %c0_111] : memref<1x2xf32, #tpu.memory_space<vmem>>, vector<1x2xf32>
    %cst_112 = arith.constant 0.000000e+00 : f32
    %198 = vector.broadcast %cst_112 : f32 to vector<64x2xf32>
    %199 = arith.select %182, %189, %198 : vector<64x2xi1>, vector<64x2xf32>
    %cst_113 = arith.constant dense<0.000000e+00> : vector<2xf32>
    %200 = vector.multi_reduction <add>, %199, %cst_113 [0] : vector<64x2xf32> to vector<2xf32>
    %201 = vector.shape_cast %200 : vector<2xf32> to vector<1x2xf32>
    %202 = arith.addf %197, %201 : vector<1x2xf32>
    %c0_114 = arith.constant 0 : index
    %c0_115 = arith.constant 0 : index
    %203 = vector.load %arg19[%c0_114, %c0_115] : memref<1x2xf32, #tpu.memory_space<vmem>>, vector<1x2xf32>
    tpu.vector_store %arg19[%c0_114, %c0_115], %202 {strides = array<i32>} : memref<1x2xf32, #tpu.memory_space<vmem>>, vector<1x2xf32>,
    %cst_116 = arith.constant -1.000000e+30 : f32
    %204 = vector.broadcast %cst_116 : f32 to vector<64x2xf32>
    %205 = arith.select %182, %187, %204 : vector<64x2xi1>, vector<64x2xf32>
    %c0_117 = arith.constant 0 : index
    %c0_118 = arith.constant 0 : index
    %206 = vector.load %arg14[%c0_117, %c0_118] : memref<1x2xf32, #tpu.memory_space<vmem>>, vector<1x2xf32>
    %cst_119 = arith.constant dense<0xFF800000> : vector<2xf32>
    %207 = vector.multi_reduction <maximumf>, %205, %cst_119 [0] : vector<64x2xf32> to vector<2xf32>
    %208 = vector.shape_cast %207 : vector<2xf32> to vector<1x2xf32>
    %209 = arith.maximumf %206, %208 : vector<1x2xf32>
    %c0_120 = arith.constant 0 : index
    %c0_121 = arith.constant 0 : index
    %210 = vector.load %arg14[%c0_120, %c0_121] : memref<1x2xf32, #tpu.memory_space<vmem>>, vector<1x2xf32>
    %211 = arith.subf %210, %209 : vector<1x2xf32>
    %212 = math.exp %211 : vector<1x2xf32>
    %213 = vector.broadcast %209 : vector<1x2xf32> to vector<64x2xf32>
    %214 = arith.subf %205, %213 : vector<64x2xf32>
    %215 = math.exp %214 : vector<64x2xf32>
    %cst_122 = arith.constant 0.000000e+00 : f32
    %216 = vector.broadcast %cst_122 : f32 to vector<64x2xf32>
    %217 = arith.select %182, %215, %216 : vector<64x2xi1>, vector<64x2xf32>
    %c0_123 = arith.constant 0 : index
    %c0_124 = arith.constant 0 : index
    %218 = vector.load %arg15[%c0_123, %c0_124] : memref<1x2xf32, #tpu.memory_space<vmem>>, vector<1x2xf32>
    %219 = arith.mulf %218, %212 : vector<1x2xf32>
    %cst_125 = arith.constant dense<0.000000e+00> : vector<2xf32>
    %220 = vector.multi_reduction <add>, %217, %cst_125 [0] : vector<64x2xf32> to vector<2xf32>
    %221 = vector.shape_cast %220 : vector<2xf32> to vector<1x2xf32>
    %222 = arith.addf %219, %221 : vector<1x2xf32>
    %c0_126 = arith.constant 0 : index
    %c0_127 = arith.constant 0 : index
    %223 = vector.load %arg15[%c0_126, %c0_127] : memref<1x2xf32, #tpu.memory_space<vmem>>, vector<1x2xf32>
    tpu.vector_store %arg15[%c0_126, %c0_127], %222 {strides = array<i32>} : memref<1x2xf32, #tpu.memory_space<vmem>>, vector<1x2xf32>,
    %c0_128 = arith.constant 0 : index
    %c0_129 = arith.constant 0 : index
    %224 = vector.load %arg16[%c0_128, %c0_129] : memref<1x2xf32, #tpu.memory_space<vmem>>, vector<1x2xf32>
    %225 = arith.mulf %224, %212 : vector<1x2xf32>
    %226 = arith.mulf %217, %187 : vector<64x2xf32>
    %cst_130 = arith.constant dense<0.000000e+00> : vector<2xf32>
    %227 = vector.multi_reduction <add>, %226, %cst_130 [0] : vector<64x2xf32> to vector<2xf32>
    %228 = vector.shape_cast %227 : vector<2xf32> to vector<1x2xf32>
    %229 = arith.addf %225, %228 : vector<1x2xf32>
    %c0_131 = arith.constant 0 : index
    %c0_132 = arith.constant 0 : index
    %230 = vector.load %arg16[%c0_131, %c0_132] : memref<1x2xf32, #tpu.memory_space<vmem>>, vector<1x2xf32>
    tpu.vector_store %arg16[%c0_131, %c0_132], %229 {strides = array<i32>} : memref<1x2xf32, #tpu.memory_space<vmem>>, vector<1x2xf32>,
    %c0_133 = arith.constant 0 : index
    %c0_134 = arith.constant 0 : index
    %231 = vector.load %arg17[%c0_133, %c0_134] : memref<1x2xf32, #tpu.memory_space<vmem>>, vector<1x2xf32>
    %cst_135 = arith.constant 0.000000e+00 : f32
    %232 = vector.broadcast %cst_135 : f32 to vector<64x2xf32>
    %233 = arith.select %185, %187, %232 : vector<64x2xi1>, vector<64x2xf32>
    %cst_136 = arith.constant dense<0.000000e+00> : vector<2xf32>
    %234 = vector.multi_reduction <add>, %233, %cst_136 [0] : vector<64x2xf32> to vector<2xf32>
    %235 = vector.shape_cast %234 : vector<2xf32> to vector<1x2xf32>
    %236 = arith.addf %231, %235 : vector<1x2xf32>
    %c0_137 = arith.constant 0 : index
    %c0_138 = arith.constant 0 : index
    %237 = vector.load %arg17[%c0_137, %c0_138] : memref<1x2xf32, #tpu.memory_space<vmem>>, vector<1x2xf32>
    tpu.vector_store %arg17[%c0_137, %c0_138], %236 {strides = array<i32>} : memref<1x2xf32, #tpu.memory_space<vmem>>, vector<1x2xf32>,
    %c0_139 = arith.constant 0 : index
    %c0_140 = arith.constant 0 : index
    %238 = vector.load %arg14[%c0_139, %c0_140] : memref<1x2xf32, #tpu.memory_space<vmem>>, vector<1x2xf32>
    tpu.vector_store %arg14[%c0_139, %c0_140], %209 {strides = array<i32>} : memref<1x2xf32, #tpu.memory_space<vmem>>, vector<1x2xf32>,
    %c3_i32 = arith.constant 3 : i32
    %239 = vector.broadcast %c3_i32 : i32 to vector<64x1xi32>
    %240 = arith.addi %37, %239 : vector<64x1xi32>
    %241 = vector.extract_strided_slice %29 {offsets = [0, 3], sizes = [64, 1], strides = [1, 1]} : vector<64x8xf32> to vector<64x1xf32>
    %242 = vector.extract_strided_slice %29 {offsets = [0, 7], sizes = [64, 1], strides = [1, 1]} : vector<64x8xf32> to vector<64x1xf32>
    %243 = vector.broadcast %240 : vector<64x1xi32> to vector<64x2xi32>
    %244 = vector.broadcast %0 : vector<1x2xi32> to vector<64x2xi32>
    %245 = arith.cmpi sge, %243, %244 : vector<64x2xi32>
    %246 = vector.broadcast %240 : vector<64x1xi32> to vector<64x2xi32>
    %247 = vector.broadcast %1 : vector<1x2xi32> to vector<64x2xi32>
    %248 = arith.cmpi slt, %246, %247 : vector<64x2xi32>
    %249 = arith.andi %245, %248 : vector<64x2xi1>
    %250 = vector.broadcast %240 : vector<64x1xi32> to vector<64x2xi32>
    %251 = vector.broadcast %2 : vector<1x2xi32> to vector<64x2xi32>
    %252 = arith.cmpi eq, %250, %251 : vector<64x2xi32>
    %253 = vector.shape_cast %241 : vector<64x1xf32> to vector<64x1xf32>
    %254 = vector.broadcast %253 : vector<64x1xf32> to vector<64x2xf32>
    %255 = vector.shape_cast %242 : vector<64x1xf32> to vector<64x1xf32>
    %256 = vector.broadcast %255 : vector<64x1xf32> to vector<64x2xf32>
    %c0_141 = arith.constant 0 : index
    %c0_142 = arith.constant 0 : index
    %257 = vector.load %arg18[%c0_141, %c0_142] : memref<1x2xf32, #tpu.memory_space<vmem>>, vector<1x2xf32>
    %cst_143 = arith.constant -1.000000e+30 : f32
    %258 = vector.broadcast %cst_143 : f32 to vector<64x2xf32>
    %259 = arith.select %249, %256, %258 : vector<64x2xi1>, vector<64x2xf32>
    %cst_144 = arith.constant dense<0xFF800000> : vector<2xf32>
    %260 = vector.multi_reduction <maximumf>, %259, %cst_144 [0] : vector<64x2xf32> to vector<2xf32>
    %261 = vector.shape_cast %260 : vector<2xf32> to vector<1x2xf32>
    %262 = arith.maximumf %257, %261 : vector<1x2xf32>
    %c0_145 = arith.constant 0 : index
    %c0_146 = arith.constant 0 : index
    %263 = vector.load %arg18[%c0_145, %c0_146] : memref<1x2xf32, #tpu.memory_space<vmem>>, vector<1x2xf32>
    tpu.vector_store %arg18[%c0_145, %c0_146], %262 {strides = array<i32>} : memref<1x2xf32, #tpu.memory_space<vmem>>, vector<1x2xf32>,
    %c0_147 = arith.constant 0 : index
    %c0_148 = arith.constant 0 : index
    %264 = vector.load %arg19[%c0_147, %c0_148] : memref<1x2xf32, #tpu.memory_space<vmem>>, vector<1x2xf32>
    %cst_149 = arith.constant 0.000000e+00 : f32
    %265 = vector.broadcast %cst_149 : f32 to vector<64x2xf32>
    %266 = arith.select %249, %256, %265 : vector<64x2xi1>, vector<64x2xf32>
    %cst_150 = arith.constant dense<0.000000e+00> : vector<2xf32>
    %267 = vector.multi_reduction <add>, %266, %cst_150 [0] : vector<64x2xf32> to vector<2xf32>
    %268 = vector.shape_cast %267 : vector<2xf32> to vector<1x2xf32>
    %269 = arith.addf %264, %268 : vector<1x2xf32>
    %c0_151 = arith.constant 0 : index
    %c0_152 = arith.constant 0 : index
    %270 = vector.load %arg19[%c0_151, %c0_152] : memref<1x2xf32, #tpu.memory_space<vmem>>, vector<1x2xf32>
    tpu.vector_store %arg19[%c0_151, %c0_152], %269 {strides = array<i32>} : memref<1x2xf32, #tpu.memory_space<vmem>>, vector<1x2xf32>,
    %cst_153 = arith.constant -1.000000e+30 : f32
    %271 = vector.broadcast %cst_153 : f32 to vector<64x2xf32>
    %272 = arith.select %249, %254, %271 : vector<64x2xi1>, vector<64x2xf32>
    %c0_154 = arith.constant 0 : index
    %c0_155 = arith.constant 0 : index
    %273 = vector.load %arg14[%c0_154, %c0_155] : memref<1x2xf32, #tpu.memory_space<vmem>>, vector<1x2xf32>
    %cst_156 = arith.constant dense<0xFF800000> : vector<2xf32>
    %274 = vector.multi_reduction <maximumf>, %272, %cst_156 [0] : vector<64x2xf32> to vector<2xf32>
    %275 = vector.shape_cast %274 : vector<2xf32> to vector<1x2xf32>
    %276 = arith.maximumf %273, %275 : vector<1x2xf32>
    %c0_157 = arith.constant 0 : index
    %c0_158 = arith.constant 0 : index
    %277 = vector.load %arg14[%c0_157, %c0_158] : memref<1x2xf32, #tpu.memory_space<vmem>>, vector<1x2xf32>
    %278 = arith.subf %277, %276 : vector<1x2xf32>
    %279 = math.exp %278 : vector<1x2xf32>
    %280 = vector.broadcast %276 : vector<1x2xf32> to vector<64x2xf32>
    %281 = arith.subf %272, %280 : vector<64x2xf32>
    %282 = math.exp %281 : vector<64x2xf32>
    %cst_159 = arith.constant 0.000000e+00 : f32
    %283 = vector.broadcast %cst_159 : f32 to vector<64x2xf32>
    %284 = arith.select %249, %282, %283 : vector<64x2xi1>, vector<64x2xf32>
    %c0_160 = arith.constant 0 : index
    %c0_161 = arith.constant 0 : index
    %285 = vector.load %arg15[%c0_160, %c0_161] : memref<1x2xf32, #tpu.memory_space<vmem>>, vector<1x2xf32>
    %286 = arith.mulf %285, %279 : vector<1x2xf32>
    %cst_162 = arith.constant dense<0.000000e+00> : vector<2xf32>
    %287 = vector.multi_reduction <add>, %284, %cst_162 [0] : vector<64x2xf32> to vector<2xf32>
    %288 = vector.shape_cast %287 : vector<2xf32> to vector<1x2xf32>
    %289 = arith.addf %286, %288 : vector<1x2xf32>
    %c0_163 = arith.constant 0 : index
    %c0_164 = arith.constant 0 : index
    %290 = vector.load %arg15[%c0_163, %c0_164] : memref<1x2xf32, #tpu.memory_space<vmem>>, vector<1x2xf32>
    tpu.vector_store %arg15[%c0_163, %c0_164], %289 {strides = array<i32>} : memref<1x2xf32, #tpu.memory_space<vmem>>, vector<1x2xf32>,
    %c0_165 = arith.constant 0 : index
    %c0_166 = arith.constant 0 : index
    %291 = vector.load %arg16[%c0_165, %c0_166] : memref<1x2xf32, #tpu.memory_space<vmem>>, vector<1x2xf32>
    %292 = arith.mulf %291, %279 : vector<1x2xf32>
    %293 = arith.mulf %284, %254 : vector<64x2xf32>
    %cst_167 = arith.constant dense<0.000000e+00> : vector<2xf32>
    %294 = vector.multi_reduction <add>, %293, %cst_167 [0] : vector<64x2xf32> to vector<2xf32>
    %295 = vector.shape_cast %294 : vector<2xf32> to vector<1x2xf32>
    %296 = arith.addf %292, %295 : vector<1x2xf32>
    %c0_168 = arith.constant 0 : index
    %c0_169 = arith.constant 0 : index
    %297 = vector.load %arg16[%c0_168, %c0_169] : memref<1x2xf32, #tpu.memory_space<vmem>>, vector<1x2xf32>
    tpu.vector_store %arg16[%c0_168, %c0_169], %296 {strides = array<i32>} : memref<1x2xf32, #tpu.memory_space<vmem>>, vector<1x2xf32>,
    %c0_170 = arith.constant 0 : index
    %c0_171 = arith.constant 0 : index
    %298 = vector.load %arg17[%c0_170, %c0_171] : memref<1x2xf32, #tpu.memory_space<vmem>>, vector<1x2xf32>
    %cst_172 = arith.constant 0.000000e+00 : f32
    %299 = vector.broadcast %cst_172 : f32 to vector<64x2xf32>
    %300 = arith.select %252, %254, %299 : vector<64x2xi1>, vector<64x2xf32>
    %cst_173 = arith.constant dense<0.000000e+00> : vector<2xf32>
    %301 = vector.multi_reduction <add>, %300, %cst_173 [0] : vector<64x2xf32> to vector<2xf32>
    %302 = vector.shape_cast %301 : vector<2xf32> to vector<1x2xf32>
    %303 = arith.addf %298, %302 : vector<1x2xf32>
    %c0_174 = arith.constant 0 : index
    %c0_175 = arith.constant 0 : index
    %304 = vector.load %arg17[%c0_174, %c0_175] : memref<1x2xf32, #tpu.memory_space<vmem>>, vector<1x2xf32>
    tpu.vector_store %arg17[%c0_174, %c0_175], %303 {strides = array<i32>} : memref<1x2xf32, #tpu.memory_space<vmem>>, vector<1x2xf32>,
    %c0_176 = arith.constant 0 : index
    %c0_177 = arith.constant 0 : index
    %305 = vector.load %arg14[%c0_176, %c0_177] : memref<1x2xf32, #tpu.memory_space<vmem>>, vector<1x2xf32>
    tpu.vector_store %arg14[%c0_176, %c0_177], %276 {strides = array<i32>} : memref<1x2xf32, #tpu.memory_space<vmem>>, vector<1x2xf32>,
    %c0_i32_178 = arith.constant 0 : i32
    %306 = arith.cmpi eq, %arg0, %c0_i32_178 : i32
    %307 = arith.extui %306 : i1 to i32
    %c0_i32_179 = arith.constant 0 : i32
    %308 = arith.cmpi ne, %307, %c0_i32_179 : i32
    scf.if %308 {
      %309 = arith.subi %1, %0 : vector<1x2xi32>
      %310 = arith.sitofp %309 : vector<1x2xi32> to vector<1x2xf32>
      %c0_180 = arith.constant 0 : index
      %c0_181 = arith.constant 0 : index
      %311 = vector.load %arg19[%c0_180, %c0_181] : memref<1x2xf32, #tpu.memory_space<vmem>>, vector<1x2xf32>
      %312 = arith.divf %311, %310 : vector<1x2xf32>
      %c0_182 = arith.constant 0 : index
      %c0_183 = arith.constant 0 : index
      %313 = vector.load %arg18[%c0_182, %c0_183] : memref<1x2xf32, #tpu.memory_space<vmem>>, vector<1x2xf32>
      %cst_184 = arith.constant 6.000000e-01 : f32
      %314 = vector.broadcast %cst_184 : f32 to vector<1x2xf32>
      %315 = arith.mulf %313, %314 : vector<1x2xf32>
      %cst_185 = arith.constant 4.000000e-01 : f32
      %316 = vector.broadcast %cst_185 : f32 to vector<1x2xf32>
      %317 = arith.mulf %312, %316 : vector<1x2xf32>
      %318 = arith.addf %315, %317 : vector<1x2xf32>
      %c0_186 = arith.constant 0 : index
      %c0_187 = arith.constant 0 : index
      %319 = vector.load %arg11[%c0_186, %c0_187] : memref<1x2xf32, #tpu.memory_space<vmem>>, vector<1x2xf32>
      tpu.vector_store %arg11[%c0_186, %c0_187], %318 {strides = array<i32>} : memref<1x2xf32, #tpu.memory_space<vmem>>, vector<1x2xf32>,
      %c0_188 = arith.constant 0 : index
      %c0_189 = arith.constant 0 : index
      %320 = vector.load %arg14[%c0_188, %c0_189] : memref<1x2xf32, #tpu.memory_space<vmem>>, vector<1x2xf32>
      %c0_190 = arith.constant 0 : index
      %c0_191 = arith.constant 0 : index
      %321 = vector.load %arg15[%c0_190, %c0_191] : memref<1x2xf32, #tpu.memory_space<vmem>>, vector<1x2xf32>
      %322 = math.log %321 : vector<1x2xf32>
      %323 = arith.addf %320, %322 : vector<1x2xf32>
      %c0_192 = arith.constant 0 : index
      %c0_193 = arith.constant 0 : index
      %324 = vector.load %arg17[%c0_192, %c0_193] : memref<1x2xf32, #tpu.memory_space<vmem>>, vector<1x2xf32>
      %325 = arith.subf %324, %323 : vector<1x2xf32>
      %c0_194 = arith.constant 0 : index
      %c0_195 = arith.constant 0 : index
      %326 = vector.load %arg12[%c0_194, %c0_195] : memref<1x2xf32, #tpu.memory_space<vmem>>, vector<1x2xf32>
      tpu.vector_store %arg12[%c0_194, %c0_195], %325 {strides = array<i32>} : memref<1x2xf32, #tpu.memory_space<vmem>>, vector<1x2xf32>,
      %c0_196 = arith.constant 0 : index
      %c0_197 = arith.constant 0 : index
      %327 = vector.load %arg16[%c0_196, %c0_197] : memref<1x2xf32, #tpu.memory_space<vmem>>, vector<1x2xf32>
      %c0_198 = arith.constant 0 : index
      %c0_199 = arith.constant 0 : index
      %328 = vector.load %arg15[%c0_198, %c0_199] : memref<1x2xf32, #tpu.memory_space<vmem>>, vector<1x2xf32>
      %329 = arith.divf %327, %328 : vector<1x2xf32>
      %330 = arith.subf %323, %329 : vector<1x2xf32>
      %c0_200 = arith.constant 0 : index
      %c0_201 = arith.constant 0 : index
      %331 = vector.load %arg13[%c0_200, %c0_201] : memref<1x2xf32, #tpu.memory_space<vmem>>, vector<1x2xf32>
      tpu.vector_store %arg13[%c0_200, %c0_201], %330 {strides = array<i32>} : memref<1x2xf32, #tpu.memory_space<vmem>>, vector<1x2xf32>,
    } else {
    }
    return
  }
  func.func @transform_0(%arg0: i32) -> (i32, i32) {
    %c0_i32 = arith.constant 0 : i32
    %c0_i32_0 = arith.constant 0 : i32
    %c0_i32_1 = arith.constant 0 : i32
    return %c0_i32, %c0_i32_0 : i32, i32
  }
  func.func @transform_1(%arg0: i32) -> (i32, i32) {
    %c0_i32 = arith.constant 0 : i32
    %c0_i32_0 = arith.constant 0 : i32
    return %arg0, %c0_i32 : i32, i32
  }
  func.func @transform_2(%arg0: i32) -> (i32, i32) {
    %c0_i32 = arith.constant 0 : i32
    %c0_i32_0 = arith.constant 0 : i32
    %c0_i32_1 = arith.constant 0 : i32
    return %c0_i32, %c0_i32_0 : i32, i32
  }
  func.func @transform_3(%arg0: i32) -> (i32, i32) {
    %c0_i32 = arith.constant 0 : i32
    %c0_i32_0 = arith.constant 0 : i32
    %c0_i32_1 = arith.constant 0 : i32
    return %c0_i32, %c0_i32_0 : i32, i32
  }
  func.func @transform_4(%arg0: i32) -> (i32, i32) {
    %c0_i32 = arith.constant 0 : i32
    %c0_i32_0 = arith.constant 0 : i32
    %c0_i32_1 = arith.constant 0 : i32
    return %c0_i32, %c0_i32_0 : i32, i32
  }
  func.func @transform_5(%arg0: i32) -> (i32, i32) {
    %c0_i32 = arith.constant 0 : i32
    %c0_i32_0 = arith.constant 0 : i32
    %c0_i32_1 = arith.constant 0 : i32
    return %c0_i32, %c0_i32_0 : i32, i32
  }
  func.func @transform_6(%arg0: i32) -> (i32, i32) {
    %c0_i32 = arith.constant 0 : i32
    %c0_i32_0 = arith.constant 0 : i32
    %c0_i32_1 = arith.constant 0 : i32
    return %c0_i32, %c0_i32_0 : i32, i32
  }
  func.func @transform_7(%arg0: i32) -> (i32, i32) {
    %c0_i32 = arith.constant 0 : i32
    %c0_i32_0 = arith.constant 0 : i32
    %c0_i32_1 = arith.constant 0 : i32
    return %c0_i32, %c0_i32_0 : i32, i32
  }
  func.func @transform_8(%arg0: i32) -> (i32, i32) {
    %c0_i32 = arith.constant 0 : i32
    %c0_i32_0 = arith.constant 0 : i32
    %c0_i32_1 = arith.constant 0 : i32
    return %c0_i32, %c0_i32_0 : i32, i32
  }
  func.func @transform_9(%arg0: i32) -> (i32, i32) {
    %c0_i32 = arith.constant 0 : i32
    %c0_i32_0 = arith.constant 0 : i32
    return %arg0, %c0_i32 : i32, i32
  }
  func.func @transform_10(%arg0: i32) -> (i32, i32) {
    %c0_i32 = arith.constant 0 : i32
    %c0_i32_0 = arith.constant 0 : i32
    %c0_i32_1 = arith.constant 0 : i32
    return %c0_i32, %c0_i32_0 : i32, i32
  }
  func.func @transform_11(%arg0: i32) -> (i32, i32) {
    %c0_i32 = arith.constant 0 : i32
    %c0_i32_0 = arith.constant 0 : i32
    %c0_i32_1 = arith.constant 0 : i32
    return %c0_i32, %c0_i32_0 : i32, i32
  }
  func.func @transform_12(%arg0: i32) -> (i32, i32) {
    %c0_i32 = arith.constant 0 : i32
    %c0_i32_0 = arith.constant 0 : i32
    %c0_i32_1 = arith.constant 0 : i32
    return %c0_i32, %c0_i32_0 : i32, i32
  }
}

</mosaic_0001>

<bundles_post_ra>
// kernel: tpu_custom_call.1
= control target key start
LH: loop header
LB: loop body
LE: loop exit
PB: predicated region body
PF: predicated region fallthrough
CT: control target
= control target key end

     0   :  { %18 = vsyncpa [#allocation9], 0  ;;  %s4778_s0 = inlined_call_operand.vmem [shape: s32[3,2], index: 0, kind: input, shape index: {}]   ;;  %s4779_s1 = inlined_call_operand.vmem [shape: f32[64,48], index: 1, kind: input, shape index: {}]   ;;  %s4780_s2 = inlined_call_operand.vmem [shape: f32[48,128], index: 2, kind: input, shape index: {}]   ;;  %s4781_s3 = inlined_call_operand.vmem [shape: f32[1,128], index: 3, kind: input, shape index: {}]   ;;  %s4782_s4 = inlined_call_operand.vmem [shape: f32[128,128], index: 4, kind: input, shape index: {}]   ;;  %s4783_s5 = inlined_call_operand.vmem [shape: f32[48,128], index: 5, kind: input, shape index: {}]   ;;  %s4784_s6 = inlined_call_operand.vmem [shape: f32[1,128], index: 6, kind: input, shape index: {}]   ;;  %s4785_s7 = inlined_call_operand.vmem [shape: f32[128,8], index: 7, kind: input, shape index: {}]   ;;  %s4786_s8 = inlined_call_operand.vmem [shape: f32[1,8], index: 8, kind: input, shape index: {}]   ;;  %s4787_s9 = inlined_call_operand.hbm [shape: f32[64,128], index: 9, kind: output, shape index: {0}]   ;;  %s4788_s10 = inlined_call_operand.hbm [shape: f32[1,2], index: 10, kind: output, shape index: {1}]   ;;  %s4789_s11 = inlined_call_operand.hbm [shape: f32[1,2], index: 11, kind: output, shape index: {2}]   ;;  %s4790_s12 = inlined_call_operand.hbm [shape: f32[1,2], index: 12, kind: output, shape index: {3}]  }
   0x1   :  { %19 = vsyncpa [#allocation11], 0  ;;  %v66_v0 = vld [vmem:[%s4780_s2 + $0x28] sm:$0xff]  ;;  %v65_v1 = vld [vmem:[%s4780_s2 + $0x20] sm:$0xff]  ;;  %vm74_vm0 = vcmask 392192  }
   0x2   :  { %2148 = vmatprep.subr.mxu0 %v66_v0  ;;  %v64_v2 = vld [vmem:[%s4780_s2 + $0x18] sm:$0xff]  ;;  %v53_v3 = vld [vmem:[%s4779_s1] sm:$0xff]  ;;  %v63_v4 = vld [vmem:[%s4780_s2 + $0x10] sm:$0xff] }
   0x3   :  { %2149 = vmatpush3.msra.mxu0 %v66_v0  ;;  %2160 = vmatprep.mubr.msk.f32.mxu0 %vm74_vm0, %v53_v3  ;;  %v62_v5 = vld [vmem:[%s4780_s2 + $0x8] sm:$0xff]  ;;  %v61_v7 = vld [vmem:[%s4780_s2] sm:$0xff]  ;;  %v239_v9 = vld [vmem:[%s4783_s5 + $0x18] sm:$0xff] }
   0x4   :  { %2150 = vmatprep.subr.mxu0 %v65_v1  ;;  %2184 = vmatprep.mubr.msk.f32.mxu1 %vm74_vm0, %v53_v3  ;;  %v241_v6 = vld [vmem:[%s4783_s5 + $0x28] sm:$0xff]  ;;  %v240_v8 = vld [vmem:[%s4783_s5 + $0x20] sm:$0xff] }
   0x5   :  { %2151 = vmatpush3.msra.mxu0 %v65_v1  ;;  %2172 = vmatprep.subr.mxu1 %v241_v6 }
   0x6   :  { %2152 = vmatprep.subr.mxu0 %v64_v2  ;;  %2173 = vmatpush3.msra.mxu1 %v241_v6 }
   0x7   :  { %2153 = vmatpush3.msra.mxu0 %v64_v2 }
   0x8   :  { %2154 = vmatprep.subr.mxu0 %v63_v4 }
   0x9   :  { %2155 = vmatpush3.msra.mxu0 %v63_v4 }
   0xa   :  { %2156 = vmatprep.subr.mxu0 %v62_v5 }
   0xb   :  { %20 = vsyncpa [#allocation14], 0  ;;  %2157 = vmatpush3.msra.mxu0 %v62_v5  ;;  %v2624_v10 = vld [vmem:[%s4779_s1 + $0x8] sm:$0xff]  ;;  %v235_v11 = vld [vmem:[%s4782_s4 + $0x78] sm:$0xff]  ;;  %2174 = vmatprep.subr.mxu1 %v240_v8  ;;  %vm4791_vm1 = vcmask 8192   ;;  %s2518_s15 = smov [#allocation8]  }
   0xc   :  { %2158 = vmatprep.subr.mxu0 %v61_v7  ;;  %v2632_v12 = vld [vmem:[%s4779_s1 + $0x10] sm:$0xff]  ;;  %2175 = vmatpush3.msra.mxu1 %v240_v8  ;;  %v2644_v14 = vld [vmem:[%s4779_s1 + $0x18] sm:$0xff]  ;;  %v233_v15 = vld [vmem:[%s4782_s4 + $0x68] sm:$0xff]  ;;  %s2000_s16 = sshll.u32 %s2518_s15, 4  ;;  %s2001_s16 = int_to_ptr.vmem [resolvable:$true] %s2000_s16 }
   0xd   :  { %2159 = vmatpush3.msra.mxu0 %v61_v7  ;;  %v234_v13 = vld [vmem:[%s4782_s4 + $0x70] sm:$0xff]  ;;  %2176 = vmatprep.subr.mxu1 %v239_v9  ;;  %v2652_v16 = vld [vmem:[%s4779_s1 + $0x20] sm:$0xff]  ;;  %v58_v18 = vld [vmem:[%s4779_s1 + $0x28] sm:$0xff]  ;;  %p2427_p1 = scmp.lt.s32.totalorder %s2001_s16, %s2001_s16 }
   0xe   :  { %2161 = vmatmul.mubr.msk.f32.vlgmr.msra.gmra.mxu0 %vm74_vm0, %v2624_v10  ;;  %2196 = vmatprep.subr.mxu0 %v235_v11  ;;  %v232_v17 = vld [vmem:[%s4782_s4 + $0x60] sm:$0xff]  ;;  %v231_v19 = vld [vmem:[%s4782_s4 + $0x58] sm:$0xff]  ;;  %v59_v20 = vld [vmem:[%s4779_s1 + $0x30] sm:$0xff] }
   0xf   :  { %2163 = vmatprep.mubr.msk.f32.mxu0 %vm74_vm0, %v2632_v12  ;;  %2197 = vmatpush3.msra.mxu0 %v235_v11  ;;  %v230_v21 = vld [vmem:[%s4782_s4 + $0x50] sm:$0xff]  ;;  %v60_v22 = vld [vmem:[%s4779_s1 + $0x38] sm:$0xff]  ;;  %v229_v23 = vld [vmem:[%s4782_s4 + $0x48] sm:$0xff] }
  0x10   :  { %2198 = vmatprep.subr.mxu0 %v234_v13  ;;  %2177 = vmatpush3.msra.mxu1 %v239_v9  ;;  %v228_v24 = vld [vmem:[%s4782_s4 + $0x40] sm:$0xff]  ;;  %v227_v25 = vld [vmem:[%s4782_s4 + $0x38] sm:$0xff]  ;;  %v226_v26 = vld [vmem:[%s4782_s4 + $0x30] sm:$0xff] }
  0x11   :  { %2199 = vmatpush3.msra.mxu0 %v234_v13  ;;  %v225_v27 = vld [vmem:[%s4782_s4 + $0x28] sm:$0xff]  ;;  %v224_v28 = vld [vmem:[%s4782_s4 + $0x20] sm:$0xff]  ;;  %v238_v29 = vld [vmem:[%s4783_s5 + $0x10] sm:$0xff] }
  0x12   :  { %2164 = vmatmul.mubr.msk.f32.gmra.mxu0 %vm74_vm0, %v2644_v14  ;;  %2200 = vmatprep.subr.mxu0 %v233_v15  ;;  %v223_v30 = vld [vmem:[%s4782_s4 + $0x18] sm:$0xff]  ;;  %v237_v31 = vld [vmem:[%s4783_s5 + $0x8] sm:$0xff]  ;;  %v222_v32 = vld [vmem:[%s4782_s4 + $0x10] sm:$0xff] }
  0x13   :  { %2166 = vmatprep.mubr.msk.f32.mxu0 %vm74_vm0, %v2652_v16  ;;  %2201 = vmatpush3.msra.mxu0 %v233_v15  ;;  %v236_v33 = vld [vmem:[%s4783_s5] sm:$0xff]  ;;  %v221_v34 = vld [vmem:[%s4782_s4 + $0x8] sm:$0xff]  ;;  %v490_v36 = vld [vmem:[%s4785_s7 + $0x78] sm:$0xff] }
  0x14   :  { %2202 = vmatprep.subr.mxu0 %v232_v17  ;;  %2178 = vmatprep.subr.mxu1 %v238_v29  ;;  %v220_v35 = vld [vmem:[%s4782_s4] sm:$0xff]  ;;  %v489_v37 = vld [vmem:[%s4785_s7 + $0x70] sm:$0xff]  ;;  %v488_v38 = vld [vmem:[%s4785_s7 + $0x68] sm:$0xff]  ;;  %s2422_s4 = scalar_lea.vmem %s2001_s16, 1024 }
  0x15   :  { %2203 = vmatpush3.msra.mxu0 %v232_v17  ;;  %2179 = vmatpush3.msra.mxu1 %v238_v29  ;;  %v487_v39 = vld [vmem:[%s4785_s7 + $0x60] sm:$0xff]  ;;  %v486_v40 = vld [vmem:[%s4785_s7 + $0x58] sm:$0xff]  ;;  %v485_v41 = vld [vmem:[%s4785_s7 + $0x50] sm:$0xff]  ;;  %p2423_p0 = scmp.ne.s32.totalorder %s2001_s16, %s2422_s4  ;;  %p2428_p2 = scmp.lt.s32.totalorder %s2422_s4, %s2422_s4 }
  0x16   :  { %2167 = vmatmul.mubr.msk.f32.gmra.mxu0 %vm74_vm0, %v58_v18  ;;  %2204 = vmatprep.subr.mxu0 %v231_v19  ;;  %v484_v42 = vld [vmem:[%s4785_s7 + $0x48] sm:$0xff]  ;;  %v483_v43 = vld [vmem:[%s4785_s7 + $0x40] sm:$0xff]  ;;  %v482_v44 = vld [vmem:[%s4785_s7 + $0x38] sm:$0xff] }
  0x17   :  { %2169 = vmatprep.mubr.msk.f32.mxu0 %vm74_vm0, %v59_v20  ;;  %2205 = vmatpush3.msra.mxu0 %v231_v19  ;;  %v481_v45 = vld [vmem:[%s4785_s7 + $0x30] sm:$0xff]  ;;  %v480_v46 = vld [vmem:[%s4785_s7 + $0x28] sm:$0xff]  ;;  %v2052_v47 = vld [vmem:[%s4781_s3] ss:$0 sm:$0xff]  ;;  %p2429_p3 = por %p2428_p2, %p2427_p1 }
  0x18   :  { %2206 = vmatprep.subr.mxu0 %v230_v21  ;;  %2180 = vmatprep.subr.mxu1 %v237_v31  ;;  %v479_v8 = vld [vmem:[%s4785_s7 + $0x20] sm:$0xff]  ;;  %v478_v9 = vld [vmem:[%s4785_s7 + $0x18] sm:$0xff]  ;;  %v476_v11 = vld [vmem:[%s4785_s7 + $0x8] sm:$0xff] }
  0x19   :  { %2207 = vmatpush3.msra.mxu0 %v230_v21  ;;  %2181 = vmatpush3.msra.mxu1 %v237_v31  ;;  %v2069_v19 = vld [vmem:[%s4784_s6] ss:$0 sm:$0xff]  ;;  %p2430_p4 = pnand %p2429_p3, %p2423_p0 }
  0x1a   :  { %2170 = vmatmul.mubr.msk.f32.gmra.mxu0 %vm74_vm0, %v60_v22  ;;  %2208 = vmatprep.subr.mxu0 %v229_v23 }
  0x1b   :  { %2209 = vmatpush3.msra.mxu0 %v229_v23  ;;  %2182 = vmatprep.subr.mxu1 %v236_v33 }
  0x1c   :  { %2210 = vmatprep.subr.mxu0 %v228_v24  ;;  %2183 = vmatpush3.msra.mxu1 %v236_v33 }
  0x1d   :  { %2211 = vmatpush3.msra.mxu0 %v228_v24  ;;  %2185 = vmatmul.mubr.msk.f32.vlgmr.msra.gmra.mxu1 %vm74_vm0, %v2624_v10  ;;  %v477_v10 = vld [vmem:[%s4785_s7 + $0x10] sm:$0xff] }
  0x1e   :  { %2212 = vmatprep.subr.mxu0 %v227_v25  ;;  %2187 = vmatprep.mubr.msk.f32.mxu1 %vm74_vm0, %v2632_v12  ;;  %v475_v12 = vld [vmem:[%s4785_s7] sm:$0xff] }
  0x1f   :  { %2213 = vmatpush3.msra.mxu0 %v227_v25  ;;  %2240 = vmatprep.subr.mxu1 %v490_v36 }
  0x20   :  { %2214 = vmatprep.subr.mxu0 %v226_v26  ;;  %2241 = vmatpush3.msra.mxu1 %v490_v36 }
  0x21   :  { %2215 = vmatpush3.msra.mxu0 %v226_v26  ;;  %2188 = vmatmul.mubr.msk.f32.gmra.mxu1 %vm74_vm0, %v2644_v14 }
  0x22   :  { %2216 = vmatprep.subr.mxu0 %v225_v27  ;;  %2190 = vmatprep.mubr.msk.f32.mxu1 %vm74_vm0, %v2652_v16 }
  0x23   :  { %2217 = vmatpush3.msra.mxu0 %v225_v27  ;;  %2242 = vmatprep.subr.mxu1 %v489_v37 }
  0x24   :  { %2218 = vmatprep.subr.mxu0 %v224_v28  ;;  %2243 = vmatpush3.msra.mxu1 %v489_v37 }
  0x25   :  { %2219 = vmatpush3.msra.mxu0 %v224_v28  ;;  %2191 = vmatmul.mubr.msk.f32.gmra.mxu1 %vm74_vm0, %v58_v18 }
  0x26   :  { %2220 = vmatprep.subr.mxu0 %v223_v30  ;;  %2193 = vmatprep.mubr.msk.f32.mxu1 %vm74_vm0, %v59_v20 }
  0x27   :  { %2221 = vmatpush3.msra.mxu0 %v223_v30  ;;  %2244 = vmatprep.subr.mxu1 %v488_v38 }
  0x28   :  { %2222 = vmatprep.subr.mxu0 %v222_v32  ;;  %2245 = vmatpush3.msra.mxu1 %v488_v38 }
  0x29   :  { %2223 = vmatpush3.msra.mxu0 %v222_v32  ;;  %2194 = vmatmul.mubr.msk.f32.gmra.mxu1 %vm74_vm0, %v60_v22 }
  0x2a   :  { %2224 = vmatprep.subr.mxu0 %v221_v34  ;;  %2246 = vmatprep.subr.mxu1 %v487_v39 }
  0x2b   :  { %2225 = vmatpush3.msra.mxu0 %v221_v34  ;;  %2247 = vmatpush3.msra.mxu1 %v487_v39 }
  0x2c   :  { %2226 = vmatprep.subr.mxu0 %v220_v35  ;;  %2248 = vmatprep.subr.mxu1 %v486_v40 }
  0x2d   :  { %2227 = vmatpush3.msra.mxu0 %v220_v35  ;;  %2249 = vmatpush3.msra.mxu1 %v486_v40 }
  0x2e   :  { %2250 = vmatprep.subr.mxu1 %v485_v41 }
  0x2f   :  { %2251 = vmatpush3.msra.mxu1 %v485_v41 }
  0x30   :  { %2252 = vmatprep.subr.mxu1 %v484_v42 }
  0x31   :  { %2253 = vmatpush3.msra.mxu1 %v484_v42 }
  0x32   :  { %2254 = vmatprep.subr.mxu1 %v483_v43 }
  0x33   :  { %2255 = vmatpush3.msra.mxu1 %v483_v43 }
  0x34   :  { %2256 = vmatprep.subr.mxu1 %v482_v44 }
  0x35   :  { %2257 = vmatpush3.msra.mxu1 %v482_v44 }
  0x36   :  { %2258 = vmatprep.subr.mxu1 %v481_v45 }
  0x37   :  { %2259 = vmatpush3.msra.mxu1 %v481_v45 }
  0x38   :  { %2260 = vmatprep.subr.mxu1 %v480_v46 }
  0x39   :  { %2261 = vmatpush3.msra.mxu1 %v480_v46 }
  0x3a   :  { %2262 = vmatprep.subr.mxu1 %v479_v8 }
  0x3b   :  { %2263 = vmatpush3.msra.mxu1 %v479_v8 }
  0x3c   :  { %2264 = vmatprep.subr.mxu1 %v478_v9 }
  0x3d   :  { %2265 = vmatpush3.msra.mxu1 %v478_v9 }
  0x3e   :  { %2266 = vmatprep.subr.mxu1 %v477_v10 }
  0x3f   :  { %2267 = vmatpush3.msra.mxu1 %v477_v10 }
  0x40   :  { %2268 = vmatprep.subr.mxu1 %v476_v11 }
  0x41   :  { %2269 = vmatpush3.msra.mxu1 %v476_v11  ;;  %v2512_v11 = vmov -1e+30  }
  0x42   :  { %2270 = vmatprep.subr.mxu1 %v475_v12  ;;  %47 = vst.msk [vmem:[#allocation2] sm:$0x1] %vm4791_vm1, %v2512_v11  ;;  %48 = vst.msk [vmem:[#allocation6] sm:$0x1] %vm4791_vm1, %v2512_v11 }
  0x43   :  { %2271 = vmatpush3.msra.mxu1 %v475_v12  ;;  %v2513_v12 = vmov 0.0  }
  0x44   :  { %49 = vst.msk [vmem:[#allocation3] sm:$0x1] %vm4791_vm1, %v2513_v12  ;;  %50 = vst.msk [vmem:[#allocation4] sm:$0x1] %vm4791_vm1, %v2513_v12 }
  0x45   :  { %51 = vst.msk [vmem:[#allocation5] sm:$0x1] %vm4791_vm1, %v2513_v12  ;;  %52 = vst.msk [vmem:[#allocation7] sm:$0x1] %vm4791_vm1, %v2513_v12  ;;  %v4935_v12 = vmov 0 }
  0xce   :  { %v2162_v48 = vpop.f32.mrf.mxu0 }
  0xcf   :  { %v171_v49 = vadd.f32 %v2162_v48, %v2052_v47 }
  0xd0   :  { %v165_v50 = vpop.f32.mrf.mxu0 }
  0xd1   :  { %v205_v51 = vmax.f32 %v171_v49, 0.0  ;;  %v166_v52 = vadd.f32 %v2052_v47, %v165_v50 }
  0xd2   :  { %v2165_v53 = vpop.f32.mrf.mxu0 }
  0xd3   :  { %213 = vst [vmem:[#allocation8 + $0x8] sm:$0xff] %v205_v51  ;;  %v204_v54 = vmax.f32 %v166_v52, 0.0  ;;  %v181_v55 = vadd.f32 %v2165_v53, %v2052_v47 }
  0xd4   :  { %v175_v56 = vpop.f32.mrf.mxu0 }
  0xd5   :  { %212 = vst [vmem:[#allocation8] sm:$0xff] %v204_v54  ;;  %v207_v57 = vmax.f32 %v181_v55, 0.0  ;;  %2228 = vmatprep.mubr.f32.mxu0 %v204_v54  ;;  %v176_v58 = vadd.f32 %v2052_v47, %v175_v56  ;;  %v2508_v54 = vmov 4   ;;  %v2509_v55 = vmov 0   ;;  %v2070_v56 = vld [vmem:[%s4786_s8] ss:$0 sm:$0xff] }
  0xd6   :  { %2229 = vmatmul.mubr.f32.vlgmr.msra.gmra.mxu0 %v205_v51  ;;  %v2168_v59 = vpop.f32.mrf.mxu0  ;;  %2301 = vset.pattern.permute.xlu1 %v2508_v54 }
  0xd7   :  { %215 = vst [vmem:[#allocation8 + $0x18] sm:$0xff] %v207_v57  ;;  %v206_v60 = vmax.f32 %v176_v58, 0.0  ;;  %v191_v61 = vadd.f32 %v2168_v59, %v2052_v47  ;;  %2300 = vset.pattern.permute.xlu0 %v2509_v55  ;;  %v2510_v59 = vmov 2  }
  0xd8   :  { %v185_v62 = vpop.f32.mrf.mxu0 }
  0xd9   :  { %214 = vst [vmem:[#allocation8 + $0x10] sm:$0xff] %v206_v60  ;;  %2231 = vmatprep.mubr.f32.mxu0 %v206_v60  ;;  %v209_v63 = vmax.f32 %v191_v61, 0.0  ;;  %v186_v0 = vadd.f32 %v2052_v47, %v185_v62  ;;  %v2511_v60 = vmov 1  }
  0xda   :  { %2232 = vmatmul.mubr.f32.gmra.mxu0 %v207_v57  ;;  %v2171_v1 = vpop.f32.mrf.mxu0 }
  0xdb   :  { %217 = vst [vmem:[#allocation8 + $0x28] sm:$0xff] %v209_v63  ;;  %v208_v2 = vmax.f32 %v186_v0, 0.0  ;;  %v201_v3 = vadd.f32 %v2171_v1, %v2052_v47 }
  0xdc   :  { %v195_v4 = vpop.f32.mrf.mxu0 }
  0xdd   :  { %216 = vst [vmem:[#allocation8 + $0x20] sm:$0xff] %v208_v2  ;;  %2234 = vmatprep.mubr.f32.mxu0 %v208_v2  ;;  %v211_v5 = vmax.f32 %v201_v3, 0.0  ;;  %v196_v6 = vadd.f32 %v2052_v47, %v195_v4  ;;  %v2186_v13 = vpop.f32.mrf.mxu1 }
  0xde   :  { %2235 = vmatmul.mubr.f32.gmra.mxu0 %v209_v63 }
  0xdf   :  { %219 = vst [vmem:[#allocation8 + $0x38] sm:$0xff] %v211_v5  ;;  %v210_v7 = vmax.f32 %v196_v6, 0.0  ;;  %v308_v14 = vpop.f32.mrf.mxu1 }
  0xe1   :  { %218 = vst [vmem:[#allocation8 + $0x30] sm:$0xff] %v210_v7  ;;  %2237 = vmatprep.mubr.f32.mxu0 %v210_v7  ;;  %v2189_v15 = vpop.f32.mrf.mxu1 }
  0xe2   :  { %2238 = vmatmul.mubr.f32.gmra.mxu0 %v211_v5 }
  0xe3   :  { %v318_v17 = vpop.f32.mrf.mxu1 }
  0xe5   :  { %v2192_v21 = vpop.f32.mrf.mxu1 }
  0xe7   :  { %v328_v28 = vpop.f32.mrf.mxu1 }
  0xe9   :  { %v2195_v34 = vpop.f32.mrf.mxu1 }
  0xeb   :  { %v338_v43 = vpop.f32.mrf.mxu1 }
 0x196   :  { %v2230_v16 = vpop.f32.mrf.mxu0 }
 0x197   :  { %v419_v18 = vadd.f32 %v2230_v16, %v2186_v13  ;;  %v2514_v13 = vmov 3   ;;  %v2517_v16 = vmov 6  }
 0x198   :  { %v413_v20 = vpop.f32.mrf.mxu0 }
 0x199   :  { %v414_v22 = vadd.f32 %v413_v20, %v308_v14  ;;  %v460_v23 = vadd.f32 %v2069_v19, %v419_v18  ;;  %v2515_v14 = vmov 5  }
 0x19a   :  { %v2233_v24 = vpop.f32.mrf.mxu0 }
 0x19b   :  { %v459_v25 = vadd.f32 %v2069_v19, %v414_v22  ;;  %v429_v26 = vadd.f32 %v2233_v24, %v2189_v15  ;;  %v468_v32 = vmax.f32 %v460_v23, 0.0  ;;  %v2516_v15 = vmov 7  }
 0x19c   :  { %v423_v27 = vpop.f32.mrf.mxu0 }
 0x19d   :  { %v467_v29 = vmax.f32 %v459_v25, 0.0  ;;  %v462_v30 = vadd.f32 %v2069_v19, %v429_v26  ;;  %v424_v31 = vadd.f32 %v423_v27, %v318_v17  ;;  %v2912_v27 = vld [vmem:[%s4778_s0] ss:$0 sm:$0xff] }
 0x19e   :  { %v2236_v33 = vpop.f32.mrf.mxu0 }
 0x19f   :  { %v461_v35 = vadd.f32 %v2069_v19, %v424_v31  ;;  %2272 = vmatprep.mubr.f32.mxu1 %v467_v29  ;;  %v439_v36 = vadd.f32 %v2236_v33, %v2192_v21  ;;  %v470_v37 = vmax.f32 %v462_v30, 0.0 }
 0x1a0   :  { %2273 = vmatmul.mubr.f32.vlgmr.msra.gmra.mxu1 %v468_v32  ;;  %v433_v38 = vpop.f32.mrf.mxu0 }
 0x1a1   :  { %v469_v39 = vmax.f32 %v461_v35, 0.0  ;;  %v464_v40 = vadd.f32 %v2069_v19, %v439_v36  ;;  %v434_v41 = vadd.f32 %v433_v38, %v328_v28  ;;  %v2917_v28 = vld [vmem:[%s4778_s0 + $0x1] ss:$0 sm:$0xff] }
 0x1a2   :  { %v2239_v42 = vpop.f32.mrf.mxu0 }
 0x1a3   :  { %2275 = vmatprep.mubr.f32.mxu1 %v469_v39  ;;  %v463_v44 = vadd.f32 %v2069_v19, %v434_v41  ;;  %v449_v45 = vadd.f32 %v2239_v42, %v2195_v34  ;;  %v472_v46 = vmax.f32 %v464_v40, 0.0 }
 0x1a4   :  { %2276 = vmatmul.mubr.f32.gmra.mxu1 %v470_v37  ;;  %v443_v47 = vpop.f32.mrf.mxu0  ;;  %v2937_v37 = vld [vmem:[%s4778_s0 + $0x2] ss:$0 sm:$0xff] }
 0x1a5   :  { %v471_v48 = vmax.f32 %v463_v44, 0.0  ;;  %v466_v49 = vadd.f32 %v2069_v19, %v449_v45  ;;  %v444_v50 = vadd.f32 %v443_v47, %v338_v43 }
 0x1a7   :  { %2278 = vmatprep.mubr.f32.mxu1 %v471_v48  ;;  %v465_v51 = vadd.f32 %v2069_v19, %v444_v50  ;;  %v474_v52 = vmax.f32 %v466_v49, 0.0  ;;  %v604_v19 = vlaneseq }
 0x1a8   :  { %2279 = vmatmul.mubr.f32.gmra.mxu1 %v472_v46 }
 0x1a9   :  { %v473_v53 = vmax.f32 %v465_v51, 0.0  ;;  %v605_v22 = vshrl.u32 %v604_v19, 7 }
 0x1ab   :  { %2281 = vmatprep.mubr.f32.mxu1 %v473_v53  ;;  %v606_v23 = vadd.s32 8, %v605_v22  ;;  %v2907_v26 = vsub.s32 0, %v605_v22  ;;  %v2922_v30 = vmul.u32 4, %v605_v22  ;;  %v608_v34 = vadd.s32 24, %v605_v22 }
 0x1ac   :  { %2282 = vmatmul.mubr.f32.gmra.mxu1 %v474_v52  ;;  %v610_v36 = vadd.s32 40, %v605_v22  ;;  %v609_v42 = vadd.s32 32, %v605_v22  ;;  %v607_v43 = vadd.s32 16, %v605_v22  ;;  %v612_v49 = vadd.s32 56, %v605_v22 }
 0x1ad   :  { %v2919_v29 = vmul.u32 4, %v606_v23  ;;  %v2940_v38 = vadd.s32 1, %v2922_v30  ;;  %v2955_v41 = vmul.u32 4, %v608_v34  ;;  %v2964_v44 = vadd.s32 2, %v2922_v30 }
 0x1ae   :  { %v2966_v45 = vmul.u32 4, %v610_v36  ;;  %v611_v50 = vadd.s32 48, %v605_v22  ;;  %vm646_vm0 = vcmp.lt.s32.totalorder %v2922_v30, %v2917_v28  ;;  %v2994_v51 = vmul.u32 4, %v609_v42 }
 0x1af   :  { %v2929_v33 = vadd.s32 2, %v2919_v29  ;;  %v2932_v35 = vadd.s32 1, %v2919_v29  ;;  %vm635_vm2 = vcmp.ge.s32.totalorder %v2919_v29, %v2912_v27  ;;  %vm647_vm3 = vcmp.lt.s32.totalorder %v2919_v29, %v2917_v28 }
 0x1b0   :  { %vm667_vm6 = vcmp.eq.s32.totalorder %v2919_v29, %v2937_v37  ;;  %vm983_vm11 = vcmp.ge.s32.totalorder %v2940_v38, %v2912_v27  ;;  %vm991_vm12 = vcmp.lt.s32.totalorder %v2940_v38, %v2917_v28  ;;  %v2977_v46 = vadd.s32 2, %v2955_v41  ;;  %vm3023_vm10 = vmand %vm635_vm2, %vm647_vm3 }
 0x1b1   :  { %vm1315_vm4 = vcmp.ge.s32.totalorder %v2929_v33, %v2912_v27  ;;  %vm1323_vm5 = vcmp.lt.s32.totalorder %v2929_v33, %v2917_v28  ;;  %vm984_vm7 = vcmp.ge.s32.totalorder %v2932_v35, %v2912_v27  ;;  %vm992_vm8 = vcmp.lt.s32.totalorder %v2932_v35, %v2917_v28 }
 0x1b2   :  { %v2985_v47 = vadd.s32 1, %v2955_v41  ;;  %v2996_v52 = vmul.u32 4, %v607_v43  ;;  %vm649_vm13 = vcmp.lt.s32.totalorder %v2955_v41, %v2917_v28  ;;  %vm1325_vm14 = vcmp.lt.s32.totalorder %v2977_v46, %v2917_v28  ;;  %vm3061_vm2 = vmand %vm1315_vm4, %vm1323_vm5 }
 0x1b3   :  { %vm3095_vm4 = vmand %vm984_vm7, %vm992_vm8  ;;  %vm4957_vm3 = vcmask 15360   ;;  %vm4968_vm8 = vcmp.eq.s32.totalorder %v2964_v44, %v2937_v37 }
 0x1b4   :  { %vm994_vm15 = vcmp.lt.s32.totalorder %v2985_v47, %v2917_v28  ;;  %vm668_vm1 = vcmp.eq.s32.totalorder %v2996_v52, %v2937_v37  ;;  %vm3118_vm7 = vmand %vm983_vm11, %vm991_vm12  ;;  %vm4939_vm11 = vcmp.ge.s32.totalorder %v2922_v30, %v2912_v27  ;;  %v3158_v19 = vadd.s32 3, %v2996_v52 }
 0x1b5   :  { %v4936_v12 = vsel %vm3118_vm7, 4294967295, %v4935_v12  ;;  %vm3151_vm12 = vmand %vm4939_vm11, %vm646_vm0  ;;  %vm4946_vm0 = vcmp.eq.s32.totalorder %v2929_v33, %v2937_v37  ;;  %vm4947_vm11 = vcmp.eq.s32.totalorder %v2940_v38, %v2937_v37 }
 0x1b6   :  { %4937 = vst [vmem:[#allocation34_spill] sm:$0xff] %v4936_v12 }
 0x260   :  { %v2274_v57 = vpop.f32.mrf.mxu1 }
 0x261   :  { %v2788_v58 = vadd.f32 %v2274_v57, %v2070_v56  ;;  %v3036_v57 = vmul.u32 4, %v611_v50  ;;  %v4953_v50 = vmov 0 }
 0x262   :  { %v564_v61 = vpop.f32.mrf.mxu1 }
 0x263   :  { %719 = vperm.xlu1 %2301, %v2788_v58   ;;  %681 = vperm.xlu0 %2300, %v2788_v58   ;;  %v2796_v63 = vadd.f32 %v2070_v56, %v564_v61  ;;  %v3053_v61 = vadd.s32 1, %v2966_v45  ;;  %v3161_v22 = vadd.s32 2, %v3036_v57 }
 0x264   :  { %v2277_v62 = vpop.f32.mrf.mxu1 }
 0x265   :  { %v2802_v1 = vadd.f32 %v2277_v62, %v2070_v56  ;;  %v4928_v62 = vmov 0  ;;  %4943 = vst [vmem:[#allocation37_spill] sm:$0xff] %v3161_v22 }
 0x266   :  { %v574_v0 = vpop.f32.mrf.mxu1  ;;  %v4929_v62 = vsel %vm3061_vm2, 4294967295, %v4928_v62 }
 0x267   :  { %2303 = vset.pattern.permute.xlu1 %v2510_v59  ;;  %2302 = vset.pattern.permute.xlu0 %v2511_v60  ;;  %v2813_v5 = vadd.f32 %v2070_v56, %v574_v0  ;;  %4930 = vst [vmem:[#allocation31_spill] sm:$0xff] %v4929_v62  ;;  %v3072_v0 = vadd.s32 1, %v2994_v51 }
 0x268   :  { %1351 = vperm.xlu1 %2303, %v2788_v58   ;;  %1020 = vperm.xlu0 %2302, %v2788_v58   ;;  %v2280_v2 = vpop.f32.mrf.mxu1 }
 0x269   :  { %v2818_v6 = vadd.f32 %v2280_v2, %v2070_v56  ;;  %v3078_v2 = vadd.s32 2, %v2994_v51 }
 0x26a   :  { %v584_v3 = vpop.f32.mrf.mxu1 }
 0x26b   :  { %v2811_v4 = vadd.f32 %v2070_v56, %v584_v3 }
 0x26c   :  { %2305 = vset.pattern.permute.xlu1 %v2511_v60  ;;  %2304 = vset.pattern.permute.xlu0 %v2509_v55  ;;  %v2283_v7 = vpop.f32.mrf.mxu1 }
 0x26d   :  { %1016 = vperm.xlu1 %2305, %v2796_v63   ;;  %676 = vperm.xlu0 %2304, %v2796_v63   ;;  %v2833_v8 = vadd.f32 %v2283_v7, %v2070_v56  ;;  %v4931_v7 = vmov 0 }
 0x26e   :  { %v594_v9 = vpop.f32.mrf.mxu1  ;;  %v4932_v7 = vsel %vm3095_vm4, 4294967295, %v4931_v7 }
 0x26f   :  { %v2838_v10 = vadd.f32 %v2070_v56, %v594_v9  ;;  %v3034_v56 = vmul.u32 4, %v612_v49  ;;  %4933 = vst [vmem:[#allocation32_spill] sm:$0xff] %v4932_v7  ;;  %v3105_v9 = vadd.s32 3, %v2919_v29  ;;  %v4974_v7 = vmov 0 }
 0x271   :  { %2307 = vset.pattern.permute.xlu1 %v2509_v55  ;;  %2306 = vset.pattern.permute.xlu0 %v2510_v59  ;;  %v3081_v3 = vadd.s32 2, %v3034_v56 }
 0x272   :  { %691 = vperm.xlu1 %2307, %v2802_v1   ;;  %1347 = vperm.xlu0 %2306, %v2796_v63  }
 0x276   :  { %2308 = vset.pattern.permute.xlu1 %v2511_v60  ;;  %1359 = vperm.xlu0 %2306, %v2802_v1  }
 0x277   :  { %1028 = vperm.xlu1 %2308, %v2802_v1  }
 0x27a   :  { %2315 = vset.pattern.permute.xlu0 %v2509_v55 }
 0x27b   :  { %2309 = vset.pattern.permute.xlu1 %v2509_v55  ;;  %696 = vperm.xlu0 %2315, %v2811_v4  }
 0x27c   :  { %686 = vperm.xlu1 %2309, %v2813_v5  }
 0x27f   :  { %2319 = vset.pattern.permute.xlu0 %v2510_v59 }
 0x280   :  { %2310 = vset.pattern.permute.xlu1 %v2508_v54  ;;  %1367 = vperm.xlu0 %2319, %v2818_v6  }
 0x281   :  { %723 = vperm.xlu1 %2310, %v2813_v5  }
 0x284   :  { %2320 = vset.pattern.permute.xlu0 %v2508_v54 }
 0x285   :  { %2311 = vset.pattern.permute.xlu1 %v2511_v60  ;;  %715 = vperm.xlu0 %2320, %v2796_v63  }
 0x286   :  { %1024 = vperm.xlu1 %2311, %v2813_v5  }
 0x289   :  { %727 = vperm.xlu0 %2320, %v2802_v1  }
 0x28a   :  { %2312 = vset.pattern.permute.xlu1 %v2510_v59 }
 0x28b   :  { %1355 = vperm.xlu1 %2312, %v2813_v5  }
 0x28d   :  { %735 = vperm.xlu0 %2320, %v2818_v6  }
 0x28f   :  { %2313 = vset.pattern.permute.xlu1 %v2509_v55 }
 0x290   :  { %701 = vperm.xlu1 %2313, %v2818_v6  }
 0x291   :  { %743 = vperm.xlu0 %2320, %v2833_v8  }
 0x294   :  { %2314 = vset.pattern.permute.xlu1 %v2511_v60 }
 0x295   :  { %1036 = vperm.xlu1 %2314, %v2818_v6   ;;  %2322 = vset.pattern.permute.xlu0 %v2509_v55 }
 0x296   :  { %706 = vperm.xlu0 %2322, %v2838_v10  }
 0x299   :  { %2316 = vset.pattern.permute.xlu1 %v2508_v54 }
 0x29a   :  { %731 = vperm.xlu1 %2316, %v2811_v4   ;;  %2323 = vset.pattern.permute.xlu0 %v2511_v60 }
 0x29b   :  { %1032 = vperm.xlu0 %2323, %v2811_v4  }
 0x29e   :  { %2317 = vset.pattern.permute.xlu1 %v2509_v55  ;;  %v4924_v55 = vmov 0 }
 0x29f   :  { %711 = vperm.xlu1 %2317, %v2833_v8   ;;  %1040 = vperm.xlu0 %2323, %v2838_v10   ;;  %v4925_v55 = vsel %vm3023_vm10, 4294967295, %v4924_v55 }
 0x2a0   :  { %4926 = vst [vmem:[#allocation29_spill] sm:$0xff] %v4925_v55  ;;  %v3310_v55 = vadd.s32 3, %v2955_v41 }
 0x2a2   :  { %4984 = vst [vmem:[#allocation47_spill] sm:$0xff] %v3310_v55 }
 0x2a3   :  { %2318 = vset.pattern.permute.xlu1 %v2510_v59  ;;  %2325 = vset.pattern.permute.xlu0 %v2510_v59 }
 0x2a4   :  { %1363 = vperm.xlu1 %2318, %v2811_v4   ;;  %1375 = vperm.xlu0 %2325, %v2833_v8  }
 0x2a8   :  { %2321 = vset.pattern.permute.xlu1 %v2511_v60  ;;  %2327 = vset.pattern.permute.xlu0 %v2514_v13  ;;  %v3050_v60 = vadd.s32 2, %v2996_v52 }
 0x2a9   :  { %1044 = vperm.xlu1 %2321, %v2833_v8   ;;  %1682 = vperm.xlu0 %2327, %v2788_v58  }
 0x2ad   :  { %2324 = vset.pattern.permute.xlu1 %v2508_v54  ;;  %1694 = vperm.xlu0 %2327, %v2811_v4   ;;  %v3007_v54 = vadd.s32 2, %v2966_v45 }
 0x2ae   :  { %739 = vperm.xlu1 %2324, %v2838_v10  }
 0x2b1   :  { %1702 = vperm.xlu0 %2327, %v2838_v10  }
 0x2b2   :  { %2326 = vset.pattern.permute.xlu1 %v2514_v13 }
 0x2b3   :  { %1678 = vperm.xlu1 %2326, %v2796_v63  }
 0x2b5   :  { %2330 = vset.pattern.permute.xlu0 %v2515_v14 }
 0x2b6   :  { %1048 = vperm.xlu0 %2330, %v2796_v63  }
 0x2b7   :  { %1686 = vperm.xlu1 %2326, %v2813_v5  }
 0x2ba   :  { %1060 = vperm.xlu0 %2330, %v2802_v1  }
 0x2bb   :  { %2328 = vset.pattern.permute.xlu1 %v2510_v59  ;;  %v3047_v59 = vadd.s32 1, %v2996_v52 }
 0x2bc   :  { %1371 = vperm.xlu1 %2328, %v2838_v10  }
 0x2be   :  { %1068 = vperm.xlu0 %2330, %v2818_v6  }
 0x2c0   :  { %2329 = vset.pattern.permute.xlu1 %v2514_v13  ;;  %v3128_v13 = vadd.s32 3, %v2994_v51 }
 0x2c1   :  { %1690 = vperm.xlu1 %2329, %v2802_v1  }
 0x2c2   :  { %1076 = vperm.xlu0 %2330, %v2833_v8  }
 0x2c5   :  { %1698 = vperm.xlu1 %2329, %v2818_v6  }
 0x2c6   :  { %2335 = vset.pattern.permute.xlu0 %v2516_v15 }
 0x2c7   :  { %1710 = vperm.xlu0 %2335, %v2796_v63  }
 0x2c9   :  { %1706 = vperm.xlu1 %2329, %v2833_v8  }
 0x2cb   :  { %1722 = vperm.xlu0 %2335, %v2802_v1  }
 0x2cd   :  { %2331 = vset.pattern.permute.xlu1 %v2515_v14 }
 0x2ce   :  { %1052 = vperm.xlu1 %2331, %v2788_v58  }
 0x2cf   :  { %2337 = vset.pattern.permute.xlu0 %v2517_v16 }
 0x2d0   :  { %1383 = vperm.xlu0 %2337, %v2788_v58  }
 0x2d2   :  { %1056 = vperm.xlu1 %2331, %v2813_v5  }
 0x2d4   :  { %1395 = vperm.xlu0 %2337, %v2811_v4  }
 0x2d6   :  { %1064 = vperm.xlu1 %2331, %v2811_v4  }
 0x2d8   :  { %1403 = vperm.xlu0 %2337, %v2838_v10  }
 0x2da   :  { %2332 = vset.pattern.permute.xlu1 %v2517_v16 }
 0x2db   :  { %1379 = vperm.xlu1 %2332, %v2796_v63  }
 0x2dc   :  { %2338 = vset.pattern.permute.xlu0 %v2516_v15 }
 0x2dd   :  { %1730 = vperm.xlu0 %2338, %v2818_v6  }
 0x2de   :  { %v2891_v17 = vpop.permute.xlu1 %719  ;;  %v2893_v18 = vpop.permute.xlu0 %681 }
 0x2df   :  { %4913 = vst [vmem:[#allocation18_spill] sm:$0xff] %v2893_v18  ;;  %1387 = vperm.xlu1 %2332, %v2813_v5   ;;  %v3110_v11 = vsel %vm3023_vm10, %v2893_v18, -1e+30 }
 0x2e0   :  { %4934 = vst [vmem:[#allocation33_spill] sm:$0xff] %v3110_v11 }
 0x2e1   :  { %1738 = vperm.xlu0 %2338, %v2833_v8  }
 0x2e3   :  { %v2897_v20 = vpop.permute.xlu1 %1351  ;;  %v2899_v21 = vpop.permute.xlu0 %1020  ;;  %1391 = vperm.xlu1 %2332, %v2802_v1   ;;  %v3075_v1 = vadd.s32 1, %v3036_v57 }
 0x2e4   :  { %4914 = vst [vmem:[#allocation19_spill] sm:$0xff] %v2897_v20  ;;  %4915 = vst [vmem:[#allocation20_spill] sm:$0xff] %v2899_v21  ;;  %v1606_v34 = vsel %vm4946_vm0, %v2897_v20, 0.0  ;;  %v3188_v49 = vsel %vm3095_vm4, %v2899_v21, -1e+30  ;;  %vm4951_vm0 = vcmp.eq.s32.totalorder %v2922_v30, %v2937_v37 }
 0x2e5   :  { %4949 = vst [vmem:[#allocation38_spill] sm:$0xff] %v3188_v49 }
 0x2e7   :  { %1399 = vperm.xlu1 %2332, %v2818_v6   ;;  %v782_v6 = vsel %vm3023_vm10, %v2891_v17, 0.0 }
 0x2e8   :  { %v2903_v24 = vpop.permute.xlu1 %1016  ;;  %v2905_v25 = vpop.permute.xlu0 %676 }
 0x2e9   :  { %4916 = vst [vmem:[#allocation21_spill] sm:$0xff] %v2903_v24  ;;  %4917 = vst [vmem:[#allocation22_spill] sm:$0xff] %v2905_v25  ;;  %v1274_v36 = vsel %vm4947_vm11, %v2903_v24, 0.0  ;;  %v943_v38 = vsel %vm4951_vm0, %v2905_v25, 0.0  ;;  %vm4952_vm11 = vcmp.ge.s32.totalorder %v2955_v41, %v2912_v27 }
 0x2ea   :  { %vm4958_vm0 = vmmov %vm4957_vm3 }
 0x2eb   :  { %2333 = vset.pattern.permute.xlu1 %v2515_v14  ;;  %v3131_v14 = vadd.s32 3, %v3036_v57 }
 0x2ec   :  { %1072 = vperm.xlu1 %2333, %v2838_v10  }
 0x2ed   :  { %v2924_v31 = vpop.permute.xlu1 %691  ;;  %v2926_v32 = vpop.permute.xlu0 %1347 }
 0x2ee   :  { %4918 = vst [vmem:[#allocation23_spill] sm:$0xff] %v2924_v31  ;;  %4919 = vst [vmem:[#allocation24_spill] sm:$0xff] %v2926_v32 }
 0x2f0   :  { %2334 = vset.pattern.permute.xlu1 %v2517_v16  ;;  %v944_v16 = vsel %vm667_vm6, %v2893_v18, 0.0  ;;  %vm4944_vm6 = vcmask 15360  }
 0x2f1   :  { %1407 = vperm.xlu1 %2334, %v2833_v8   ;;  %v2943_v39 = vpop.permute.xlu0 %1359  ;;  %v3102_v8 = vadd.s32 1, %v3034_v56  ;;  %vm4945_vm5 = vmmov %vm4944_vm6 }
 0x2f2   :  { %4920 = vst [vmem:[#allocation25_spill] sm:$0xff] %v2943_v39  ;;  %v2951_v40 = vpop.permute.xlu1 %1028  ;;  %v3167_v29 = vsel %vm4945_vm5, %v782_v6, 0.0  ;;  %v3222_v6 = vsel %vm3118_vm7, %v2903_v24, -1e+30 }
 0x2f3   :  { %4921 = vst [vmem:[#allocation26_spill] sm:$0xff] %v2951_v40  ;;  %4959 = vst [vmem:[#allocation41_spill] sm:$0xff] %v3222_v6 }
 0x2f5   :  { %2336 = vset.pattern.permute.xlu1 %v2516_v15  ;;  %v3134_v15 = vadd.s32 3, %v2922_v30  ;;  %v952_v30 = vsel %vm4957_vm3, %v944_v16, 0.0  ;;  %vm4963_vm3 = vcmp.lt.s32.totalorder %v2964_v44, %v2917_v28 }
 0x2f6   :  { %1714 = vperm.xlu1 %2336, %v2788_v58   ;;  %v2988_v48 = vpop.permute.xlu0 %696 }
 0x2f7   :  { %4922 = vst [vmem:[#allocation27_spill] sm:$0xff] %v2988_v48  ;;  %v2998_v53 = vpop.permute.xlu1 %686 }
 0x2f8   :  { %4923 = vst [vmem:[#allocation28_spill] sm:$0xff] %v2998_v53 }
 0x2fa   :  { %1718 = vperm.xlu1 %2336, %v2813_v5   ;;  %v748_v5 = vsel %vm3023_vm10, %v2891_v17, -1e+30  ;;  %v3143_v17 = vsel %vm3061_vm2, %v2897_v20, -1e+30  ;;  %v3227_v20 = vsel %vm3151_vm12, %v2905_v25, -1e+30 }
 0x2fb   :  { %v3044_v58 = vpop.permute.xlu0 %1367  ;;  %4938 = vst [vmem:[#allocation35_spill] sm:$0xff] %v3143_v17  ;;  %v3164_v23 = vsel %vm4944_vm6, %v748_v5, -inf  ;;  %vm4948_vm6 = vmmov %vm4945_vm5  ;;  %vm4950_vm5 = vcmp.eq.s32.totalorder %v2932_v35, %v2937_v37  ;;  %v3217_v5 = vsel %vm4958_vm0, %v3143_v17, -inf  ;;  %v4965_v17 = vmov 0 }
 0x2fc   :  { %4927 = vst [vmem:[#allocation30_spill] sm:$0xff] %v3044_v58  ;;  %v3069_v63 = vpop.permute.xlu1 %723  ;;  %v3183_v43 = vsel %vm4948_vm6, %v3110_v11, -inf  ;;  %v1275_v33 = vsel %vm4950_vm5, %v2899_v21, 0.0  ;;  %vm3204_vm6 = vmand %vm4952_vm11, %vm649_vm13  ;;  %v1605_v21 = vsel %vm4968_vm8, %v2926_v32, 0.0  ;;  %v4981_v25 = vmov 0 }
 0x2fd   :  { %v4954_v50 = vsel %vm3204_vm6, 4294967295, %v4953_v50  ;;  %4960 = vst [vmem:[#allocation42_spill] sm:$0xff] %v3227_v20  ;;  %vm4961_vm13 = vmmov %vm4958_vm0  ;;  %v3265_v24 = vsel %vm3204_vm6, %v2924_v31, -1e+30 }
 0x2fe   :  { %1726 = vperm.xlu1 %2336, %v2811_v4   ;;  %v4940_v4 = vmov 0  ;;  %4955 = vst [vmem:[#allocation39_spill] sm:$0xff] %v4954_v50  ;;  %v1614_v62 = vsel %vm4961_vm13, %v1606_v34, 0.0  ;;  %vm4962_vm11 = vmmov %vm4958_vm0  ;;  %vm4964_vm0 = vcmp.ge.s32.totalorder %v2964_v44, %v2912_v27 }
 0x2ff   :  { %v4941_v4 = vsel %vm3151_vm12, 4294967295, %v4940_v4  ;;  %v1282_v16 = vsel %vm4962_vm11, %v1274_v36, 0.0  ;;  %vm3238_vm5 = vmand %vm4964_vm0, %vm4963_vm3  ;;  %4972 = vst [vmem:[#allocation44_spill] sm:$0xff] %v3265_v24 }
 0x300   :  { %4942 = vst [vmem:[#allocation36_spill] sm:$0xff] %v4941_v4  ;;  %v3179_v42 = vpop.permute.xlu0 %715  ;;  %v4966_v17 = vsel %vm3238_vm5, 4294967295, %v4965_v17  ;;  %vm4969_vm0 = vmmov %vm4962_vm11 }
 0x301   :  { %v3210_v35 = vpop.permute.xlu1 %1024  ;;  %4967 = vst [vmem:[#allocation43_spill] sm:$0xff] %v4966_v17  ;;  %v3258_v34 = vsel %vm4969_vm0, %v3188_v49, -inf  ;;  %vm4970_vm9 = vmmov %vm4969_vm0  ;;  %v3317_v49 = vsel %vm3238_vm5, %v2926_v32, -1e+30  ;;  %v781_v55 = vsel %vm3151_vm12, %v3179_v42, 0.0 }
 0x302   :  { %4956 = vst [vmem:[#allocation40_spill] sm:$0xff] %v3210_v35  ;;  %1734 = vperm.xlu1 %2336, %v2838_v10   ;;  %v945_v10 = vsel %vm668_vm1, %v2998_v53, 0.0  ;;  %v1283_v44 = vsel %vm4970_vm9, %v1275_v33, 0.0  ;;  %vm4971_vm8 = vmmov %vm4969_vm0  ;;  %vm4973_vm1 = vcmp.ge.s32.totalorder %v2977_v46, %v2912_v27 }
 0x303   :  { %v951_v36 = vsel %vm4971_vm8, %v943_v38, 0.0  ;;  %vm3273_vm3 = vmand %vm4973_vm1, %vm1325_vm14  ;;  %vm4979_vm14 = vcmp.eq.s32.totalorder %v2955_v41, %v2937_v37  ;;  %vm4980_vm1 = vcmp.ge.s32.totalorder %v2985_v47, %v2912_v27  ;;  %4985 = vst [vmem:[#allocation48_spill] sm:$0xff] %v3317_v49 }
 0x304   :  { %v4975_v7 = vsel %vm3273_vm3, 4294967295, %v4974_v7  ;;  %v3277_v22 = vpop.permute.xlu0 %727  ;;  %vm4977_vm8 = vmmov %vm4969_vm0  ;;  %v946_v18 = vsel %vm4979_vm14, %v2924_v31, 0.0  ;;  %v3312_v31 = vadd.f32 %v1283_v44, %v1282_v16  ;;  %vm4987_vm14 = vcmp.lt.s32.totalorder %v2994_v51, %v2917_v28 }
 0x305   :  { %4976 = vst [vmem:[#allocation45_spill] sm:$0xff] %v4975_v7  ;;  %v3285_v33 = vsel %vm4977_vm8, %v3222_v6, -inf  ;;  %vm4978_vm13 = vmmov %vm4969_vm0  ;;  %v3344_v32 = vsel %vm3273_vm3, %v2943_v39, -1e+30 }
 0x306   :  { %v3289_v38 = vsel %vm4978_vm13, %v3227_v20, -inf  ;;  %vm3301_vm9 = vmand %vm4980_vm1, %vm994_vm15  ;;  %vm4988_vm1 = vcmp.ge.s32.totalorder %v2994_v51, %v2912_v27  ;;  %v3331_v16 = vpop.permute.xlu1 %1355  ;;  %4994 = vst [vmem:[#allocation50_spill] sm:$0xff] %v3344_v32 }
 0x307   :  { %v4982_v25 = vsel %vm3301_vm9, 4294967295, %v4981_v25  ;;  %vm4986_vm15 = vmmov %vm4969_vm0  ;;  %4992 = vst [vmem:[#allocation49_spill] sm:$0xff] %v3331_v16  ;;  %v3367_v17 = vsel %vm3301_vm9, %v2951_v40, -1e+30 }
 0x308   :  { %4983 = vst [vmem:[#allocation46_spill] sm:$0xff] %v4982_v25  ;;  %v1613_v6 = vsel %vm4986_vm15, %v1605_v21, 0.0  ;;  %vm3326_vm8 = vmand %vm4988_vm1, %vm4987_vm14  ;;  %v953_v21 = vadd.f32 %v952_v30, %v951_v36  ;;  %vm4996_vm14 = vcmp.ge.s32.totalorder %v3007_v54, %v2912_v27  ;;  %v3357_v30 = vadd.s32 3, %v2966_v45 }
 0x309   :  { %vm4991_vm13 = vmmov %vm4969_vm0  ;;  %5003 = vst [vmem:[#allocation53_spill] sm:$0xff] %v3367_v17 }
 0x30a   :  { %v954_v41 = vsel %vm4991_vm13, %v945_v10, 0.0  ;;  %vm4993_vm11 = vmmov %vm4969_vm0  ;;  %vm4995_vm13 = vcmp.lt.s32.totalorder %v3007_v54, %v2917_v28  ;;  %v4997_v10 = vmov 0  ;;  %5000 = vst [vmem:[#allocation52_spill] sm:$0xff] %v3357_v30  ;;  %v5008_v30 = vmov 0 }
 0x30b   :  { %v3339_v44 = vsel %vm4993_vm11, %v3265_v24, -inf  ;;  %vm3352_vm1 = vmand %vm4996_vm14, %vm4995_vm13  ;;  %v3372_v24 = vpop.permute.xlu0 %735  ;;  %v955_v25 = vadd.f32 %v954_v41, %v953_v21  ;;  %vm5011_vm13 = vcmp.eq.s32.totalorder %v2985_v47, %v2937_v37 }
 0x30c   :  { %v4998_v10 = vsel %vm3352_vm1, 4294967295, %v4997_v10  ;;  %vm5001_vm11 = vmmov %vm4969_vm0  ;;  %vm5002_vm0 = vcmp.eq.s32.totalorder %v2977_v46, %v2937_v37  ;;  %v3380_v46 = vadd.f32 %v1614_v62, %v1613_v6  ;;  %v1277_v6 = vsel %vm5011_vm13, %v2951_v40, 0.0 }
 0x30d   :  { %4999 = vst [vmem:[#allocation51_spill] sm:$0xff] %v4998_v10  ;;  %v956_v36 = vsel %vm5001_vm11, %v946_v18, 0.0  ;;  %v1608_v7 = vsel %vm5002_vm0, %v2943_v39, 0.0  ;;  %vm5004_vm14 = vmmov %vm5001_vm11  ;;  %v3385_v39 = vsel %vm3326_vm8, %v2988_v48, -1e+30  ;;  %vm5006_vm0 = vcmp.lt.s32.totalorder %v2996_v52, %v2917_v28 }
 0x30e   :  { %v3378_v18 = vsel %vm5004_vm14, %v3317_v49, -inf  ;;  %5005 = vst [vmem:[#allocation54_spill] sm:$0xff] %v3385_v39  ;;  %vm5007_vm11 = vcmp.ge.s32.totalorder %v2996_v52, %v2912_v27  ;;  %v3399_v62 = vsel %vm5004_vm14, %v3344_v32, -inf  ;;  %v3408_v49 = vsel %vm3352_vm1, %v3044_v58, -1e+30  ;;  %vm5014_vm3 = vmmov %vm5004_vm14  ;;  %v3431_v32 = vpop.permute.xlu1 %701 }
 0x30f   :  { %vm3393_vm15 = vmand %vm5007_vm11, %vm5006_vm0  ;;  %5012 = vst [vmem:[#allocation56_spill] sm:$0xff] %v3408_v49  ;;  %v3417_v52 = vadd.s32 3, %v3034_v56  ;;  %v3420_v47 = vsel %vm5014_vm3, %v1608_v7, 0.0  ;;  %vm5016_vm0 = vcmp.eq.s32.totalorder %v2994_v51, %v2937_v37 }
 0x310   :  { %v5009_v30 = vsel %vm3393_vm15, 4294967295, %v5008_v30  ;;  %vm5015_vm13 = vmmov %vm5014_vm3  ;;  %v947_v21 = vsel %vm5016_vm0, %v2988_v48, 0.0  ;;  %5018 = vst [vmem:[#allocation58_spill] sm:$0xff] %v3431_v32  ;;  %v3440_v7 = vsel %vm3393_vm15, %v2998_v53, -1e+30  ;;  %vm5036_vm0 = vcmp.ge.s32.totalorder %v2966_v45, %v2912_v27 }
 0x311   :  { %5010 = vst [vmem:[#allocation55_spill] sm:$0xff] %v5009_v30  ;;  %5013 = vst [vmem:[#allocation57_spill] sm:$0xff] %v3417_v52  ;;  %v3424_v41 = vsel %vm5015_vm13, %v3367_v17, -inf  ;;  %v749_v53 = vsel %vm3393_vm15, %v3069_v63, -1e+30 }
 0x312   :  { %vm5017_vm1 = vmmov %vm5014_vm3  ;;  %5020 = vst [vmem:[#allocation59_spill] sm:$0xff] %v3440_v7  ;;  %vm5021_vm3 = vcmp.eq.s32.totalorder %v3007_v54, %v2937_v37  ;;  %v957_v54 = vadd.f32 %v956_v36, %v955_v25  ;;  %v5028_v25 = vmov 0 }
 0x313   :  { %v789_v10 = vsel %vm5017_vm1, %v781_v55, 0.0  ;;  %vm5019_vm14 = vmmov %vm5017_vm1  ;;  %v1610_v52 = vsel %vm5021_vm3, %v3044_v58, 0.0  ;;  %vm5022_vm1 = vcmp.eq.s32.totalorder %v3047_v59, %v2937_v37  ;;  %v3450_v55 = vpop.permute.xlu0 %743 }
 0x314   :  { %v3435_v40 = vsel %vm5019_vm14, %v3385_v39, -inf  ;;  %v1276_v51 = vsel %vm5022_vm1, %v3210_v35, 0.0  ;;  %vm5023_vm11 = vmmov %vm5015_vm13  ;;  %v783_v39 = vsel %vm3393_vm15, %v3069_v63, 0.0  ;;  %v791_v11 = vadd.f32 %v3167_v29, %v789_v10 }
 0x315   :  { %v1287_v48 = vsel %vm5023_vm11, %v1277_v6, 0.0  ;;  %vm5024_vm3 = vmmov %vm5023_vm11  ;;  %vm5026_vm11 = vcmp.lt.s32.totalorder %v3047_v59, %v2917_v28  ;;  %vm5027_vm13 = vcmp.ge.s32.totalorder %v3047_v59, %v2912_v27  ;;  %v5037_v6 = vmov 0 }
 0x316   :  { %v3461_v58 = vsel %vm5024_vm3, %v3408_v49, -inf  ;;  %vm5025_vm1 = vmmov %vm5024_vm3  ;;  %v784_v63 = vsel %vm3204_vm6, %v3277_v22, 0.0  ;;  %v5043_v49 = vmov 0 }
 0x317   :  { %v958_v17 = vsel %vm5025_vm1, %v947_v21, 0.0  ;;  %vm3477_vm3 = vmand %vm5027_vm13, %vm5026_vm11  ;;  %vm5031_vm1 = vcmp.eq.s32.totalorder %v3050_v60, %v2937_v37 }
 0x318   :  { %v5029_v25 = vsel %vm3477_vm3, 4294967295, %v5028_v25  ;;  %v1607_v36 = vsel %vm5031_vm1, %v3331_v16, 0.0  ;;  %vm5032_vm5 = vmmov %vm5019_vm14  ;;  %vm5035_vm1 = vcmp.lt.s32.totalorder %v2966_v45, %v2917_v28  ;;  %v959_v4 = vadd.f32 %v958_v17, %v957_v54 }
 0x319   :  { %5030 = vst [vmem:[#allocation60_spill] sm:$0xff] %v5029_v25  ;;  %v3493_v59 = vsel %vm5032_vm5, %v3440_v7, -inf  ;;  %vm5033_vm13 = vmmov %vm5032_vm5  ;;  %v5209_v7 = vld [vmem:[#allocation27_spill] sm:$0xff] }
 0x31a   :  { %v3496_v29 = vsel %vm5033_vm13, %v1610_v52, 0.0  ;;  %vm5034_vm11 = vmmov %vm5032_vm5  ;;  %v3544_v52 = vsel %vm3477_vm3, %v3210_v35, -1e+30  ;;  %v750_v35 = vsel %vm3204_vm6, %v3277_v22, -1e+30  ;;  %vm5072_vm3 = vcmp.ge.s32.totalorder %v3053_v61, %v2912_v27 }
 0x31b   :  { %v1285_v10 = vsel %vm5034_vm11, %v1276_v51, 0.0  ;;  %vm3505_vm2 = vmand %vm5036_vm0, %vm5035_vm1  ;;  %v747_v51 = vsel %vm3151_vm12, %v3179_v42, -1e+30  ;;  %vm5041_vm0 = vcmp.lt.s32.totalorder %v3050_v60, %v2917_v28  ;;  %vm5042_vm1 = vcmp.ge.s32.totalorder %v3050_v60, %v2912_v27  ;;  %v3547_v60 = vpop.permute.xlu0 %706 }
 0x31c   :  { %v5038_v6 = vsel %vm3505_vm2, 4294967295, %v5037_v6  ;;  %vm5040_vm11 = vmmov %vm5032_vm5  ;;  %5049 = vst [vmem:[#allocation64_spill] sm:$0xff] %v3547_v60  ;;  %v752_v17 = vsel %vm3505_vm2, %v3372_v24, -1e+30  ;;  %v786_v22 = vsel %vm3505_vm2, %v3372_v24, 0.0  ;;  %v5063_v24 = vmov 0 }
 0x31d   :  { %5039 = vst [vmem:[#allocation61_spill] sm:$0xff] %v5038_v6  ;;  %v3518_v21 = vsel %vm5040_vm11, %v749_v53, -inf  ;;  %vm3532_vm5 = vmand %vm5042_vm1, %vm5041_vm0  ;;  %v3536_v53 = vpop.permute.xlu1 %1036  ;;  %vm5050_vm0 = vcmp.lt.s32.totalorder %v3036_v57, %v2917_v28  ;;  %vm5051_vm1 = vcmp.ge.s32.totalorder %v3036_v57, %v2912_v27 }
 0x31e   :  { %v5044_v49 = vsel %vm3532_vm5, 4294967295, %v5043_v49  ;;  %5046 = vst [vmem:[#allocation63_spill] sm:$0xff] %v3536_v53  ;;  %vm5047_vm13 = vmmov %vm5040_vm11  ;;  %v3573_v20 = vsel %vm3532_vm5, %v3331_v16, -1e+30 }
 0x31f   :  { %5045 = vst [vmem:[#allocation62_spill] sm:$0xff] %v5044_v49  ;;  %v792_v42 = vsel %vm5047_vm13, %v783_v39, 0.0  ;;  %vm5048_vm14 = vmmov %vm5040_vm11  ;;  %v1286_v39 = vadd.f32 %v1285_v10, %v3312_v31  ;;  %v3630_v49 = vpop.permute.xlu0 %1032 }
 0x320   :  { %v1616_v30 = vsel %vm5048_vm14, %v1607_v36, 0.0  ;;  %vm3555_vm9 = vmand %vm5051_vm1, %vm5050_vm0  ;;  %v793_v36 = vadd.f32 %v792_v42, %v791_v11  ;;  %5056 = vst [vmem:[#allocation65_spill] sm:$0xff] %v3573_v20  ;;  %vm5057_vm0 = vcmp.eq.s32.totalorder %v2966_v45, %v2937_v37  ;;  %v3592_v45 = vsel %vm3505_vm2, %v3431_v32, -1e+30 }
 0x321   :  { %vm5054_vm14 = vmmov %vm5040_vm11  ;;  %v948_v31 = vsel %vm5057_vm0, %v3431_v32, 0.0  ;;  %v1617_v11 = vadd.f32 %v1616_v30, %v3380_v46  ;;  %vm5062_vm1 = vcmp.ge.s32.totalorder %v3034_v56, %v2912_v27  ;;  %v1288_v32 = vadd.f32 %v1287_v48, %v1286_v39 }
 0x322   :  { %v3567_v54 = vsel %vm5054_vm14, %v747_v51, -inf  ;;  %vm5055_vm13 = vmmov %vm5040_vm11  ;;  %vm5061_vm14 = vcmp.lt.s32.totalorder %v3034_v56, %v2917_v28 }
 0x323   :  { %v794_v25 = vsel %vm5055_vm13, %v784_v63, 0.0  ;;  %v3597_v63 = vsel %vm3555_vm9, %v3547_v60, -1e+30  ;;  %vm5058_vm13 = vmmov %vm5040_vm11 }
 0x324   :  { %v3601_v10 = vsel %vm5058_vm13, %v3544_v52, -inf  ;;  %vm5059_vm0 = vmmov %vm5040_vm11  ;;  %vm5066_vm13 = vcmp.eq.s32.totalorder %v3036_v57, %v2937_v37  ;;  %v3623_v42 = vadd.f32 %v794_v25, %v793_v36  ;;  %v5073_v57 = vmov 0 }
 0x325   :  { %v3604_v30 = vsel %vm5059_vm0, %v750_v35, -inf  ;;  %vm5060_vm11 = vmmov %vm5059_vm0  ;;  %v949_v51 = vsel %vm5066_vm13, %v3547_v60, 0.0  ;;  %v732_v35 = vpop.permute.xlu1 %731  ;;  %v960_v16 = vsel %vm5059_vm0, %v948_v31, 0.0  ;;  %vm5071_vm13 = vcmp.lt.s32.totalorder %v3053_v61, %v2917_v28  ;;  %v3701_v60 = vpop.permute.xlu0 %1040 }
 0x326   :  { %v3607_v46 = vsel %vm5060_vm11, %v752_v17, -inf  ;;  %vm3615_vm5 = vmand %vm5062_vm1, %vm5061_vm14  ;;  %5084 = vst [vmem:[#allocation69_spill] sm:$0xff] %v3701_v60 }
 0x327   :  { %v5064_v24 = vsel %vm3615_vm5, 4294967295, %v5063_v24  ;;  %vm5067_vm11 = vmmov %vm5059_vm0  ;;  %v754_v36 = vsel %vm3615_vm5, %v3450_v55, -1e+30  ;;  %v788_v39 = vsel %vm3615_vm5, %v3450_v55, 0.0 }
 0x328   :  { %5065 = vst [vmem:[#allocation66_spill] sm:$0xff] %v5064_v24  ;;  %v3627_v17 = vsel %vm5067_vm11, %v3573_v20, -inf  ;;  %vm5069_vm1 = vmmov %vm5059_vm0  ;;  %v961_v20 = vadd.f32 %v960_v16, %v959_v4 }
 0x329   :  { %5068 = vst [vmem:[#allocation67_spill] sm:$0xff] %v3627_v17  ;;  %v3633_v6 = vsel %vm5069_vm1, %v786_v22, 0.0  ;;  %vm5070_vm14 = vmmov %vm5059_vm0  ;;  %v3666_v22 = vadd.f32 %v3420_v47, %v1617_v11  ;;  %v5081_v47 = vmov 0  ;;  %v3699_v17 = vpop.permute.xlu1 %711 }
 0x32a   :  { %v827_v50 = vsel %vm5070_vm14, %v3592_v45, -inf  ;;  %vm3643_vm4 = vmand %vm5072_vm3, %vm5071_vm13  ;;  %vm5080_vm13 = vcmp.ge.s32.totalorder %v3072_v0, %v2912_v27 }
 0x32b   :  { %v5074_v57 = vsel %vm3643_vm4, 4294967295, %v5073_v57  ;;  %vm5076_vm11 = vmmov %vm5059_vm0  ;;  %vm5077_vm0 = vcmp.eq.s32.totalorder %v3072_v0, %v2937_v37  ;;  %v828_v4 = vmax.f32 %v3183_v43, %v827_v50  ;;  %v3692_v16 = vsel %vm3643_vm4, %v3536_v53, -1e+30 }
 0x32c   :  { %5075 = vst [vmem:[#allocation68_spill] sm:$0xff] %v5074_v57  ;;  %v829_v25 = vsel %vm5076_vm11, %v3597_v63, -inf  ;;  %v1278_v48 = vsel %vm5077_vm0, %v3630_v49, 0.0  ;;  %vm5078_vm3 = vmmov %vm5069_vm1  ;;  %vm5083_vm0 = vcmp.eq.s32.totalorder %v3053_v61, %v2937_v37  ;;  %v5087_v43 = vmov 0 }
 0x32d   :  { %v962_v31 = vsel %vm5078_vm3, %v949_v51, 0.0  ;;  %v751_v51 = vsel %vm3326_vm8, %v732_v35, -1e+30  ;;  %vm5079_vm3 = vcmp.lt.s32.totalorder %v3072_v0, %v2917_v28  ;;  %v1289_v11 = vsel %vm5076_vm11, %v1278_v48, 0.0 }
 0x32e   :  { %vm3683_vm1 = vmand %vm5080_vm13, %vm5079_vm3  ;;  %v1279_v55 = vsel %vm5083_vm0, %v3536_v53, 0.0  ;;  %v830_v0 = vmax.f32 %v3493_v59, %v829_v25  ;;  %vm5085_vm13 = vcmp.lt.s32.totalorder %v3075_v1, %v2917_v28  ;;  %vm5086_vm11 = vcmp.ge.s32.totalorder %v3075_v1, %v2912_v27 }
 0x32f   :  { %v5082_v47 = vsel %vm3683_vm1, 4294967295, %v5081_v47  ;;  %vm3709_vm3 = vmand %vm5086_vm11, %vm5085_vm13  ;;  %v963_v61 = vadd.f32 %v962_v31, %v961_v20  ;;  %v785_v50 = vsel %vm3326_vm8, %v732_v35, 0.0  ;;  %v3720_v59 = vsel %vm3615_vm5, %v3699_v17, -1e+30 }
 0x330   :  { %v5088_v43 = vsel %vm3709_vm3, 4294967295, %v5087_v43  ;;  %vm5090_vm0 = vcmp.eq.s32.totalorder %v3034_v56, %v2937_v37  ;;  %vm5091_vm13 = vmmov %vm5070_vm14  ;;  %v1290_v53 = vadd.f32 %v1289_v11, %v1288_v32  ;;  %v3733_v35 = vsel %vm3683_vm1, %v3630_v49, -1e+30 }
 0x331   :  { %5089 = vst [vmem:[#allocation70_spill] sm:$0xff] %v5088_v43  ;;  %v950_v25 = vsel %vm5090_vm0, %v3699_v17, 0.0  ;;  %v760_v48 = vsel %vm5091_vm13, %v751_v51, -inf  ;;  %vm5092_vm11 = vmmov %vm5091_vm13  ;;  %v3739_v56 = vsel %vm3709_vm3, %v3701_v60, -1e+30  ;;  %v5094_v32 = vmax.f32 %v3289_v38, %v3435_v40 }
 0x332   :  { %v831_v57 = vsel %vm5092_vm11, %v3720_v59, -inf  ;;  %vm5093_vm14 = vmmov %vm5092_vm11  ;;  %vm5098_vm3 = vcmp.lt.s32.totalorder %v3078_v2, %v2917_v28  ;;  %vm5099_vm0 = vcmp.ge.s32.totalorder %v3078_v2, %v2912_v27  ;;  %v5100_v40 = vmov 0 }
 0x333   :  { %v964_v20 = vsel %vm5093_vm14, %v950_v25, 0.0  ;;  %v832_v31 = vmax.f32 %v3339_v44, %v831_v57  ;;  %v833_v51 = vmax.f32 %v5094_v32, %v828_v4  ;;  %vm5095_vm14 = vmmov %vm5092_vm11  ;;  %v3771_v4 = vpop.permute.xlu1 %1363 }
 0x334   :  { %v965_v24 = vadd.f32 %v964_v20, %v963_v61  ;;  %v3747_v11 = vsel %vm5095_vm14, %v754_v36, -inf  ;;  %vm5096_vm13 = vmmov %vm5092_vm11  ;;  %vm5097_vm11 = vcmp.eq.s32.totalorder %v3075_v1, %v2937_v37  ;;  %5105 = vst [vmem:[#allocation72_spill] sm:$0xff] %v3771_v4  ;;  %v3773_v61 = vpop.permute.xlu0 %1375  ;;  %v761_v20 = vmax.f32 %v3567_v54, %v760_v48 }
 0x335   :  { %v1158_v25 = vsel %vm5096_vm13, %v3692_v16, -inf  ;;  %v1280_v44 = vsel %vm5097_vm11, %v3701_v60, 0.0  ;;  %vm3761_vm4 = vmand %vm5099_vm0, %vm5098_vm3  ;;  %v834_v57 = vmax.f32 %v830_v0, %v832_v31  ;;  %5106 = vst [vmem:[#allocation73_spill] sm:$0xff] %v3773_v61  ;;  %vm5118_vm14 = vcmp.ge.s32.totalorder %v3081_v3, %v2912_v27 }
 0x336   :  { %v5101_v40 = vsel %vm3761_vm4, 4294967295, %v5100_v40  ;;  %vm5103_vm1 = vmmov %vm5096_vm13  ;;  %v966_v36 = vrot.slane %v965_v24, 4  ;;  %v3788_v54 = vsel %vm3761_vm4, %v3771_v4, -1e+30  ;;  %v1159_v31 = vmax.f32 %v3258_v34, %v1158_v25 }
 0x337   :  { %5102 = vst [vmem:[#allocation71_spill] sm:$0xff] %v5101_v40  ;;  %v1291_v38 = vsel %vm5103_vm1, %v1279_v55, 0.0  ;;  %vm5104_vm5 = vmmov %vm5103_vm1  ;;  %v835_v55 = vmax.f32 %v833_v51, %v834_v57 }
 0x338   :  { %v796_v1 = vsel %vm5104_vm5, %v785_v50, 0.0  ;;  %vm5107_vm3 = vmmov %vm5103_vm1  ;;  %v1292_v43 = vadd.f32 %v1291_v38, %v1290_v53  ;;  %v967_v0 = vadd.f32 %v966_v36, %v965_v24  ;;  %5110 = vst [vmem:[#allocation74_spill] sm:$0xff] %v3788_v54  ;;  %v5114_v24 = vmov 0  ;;  %v3838_v36 = vpop.permute.xlu1 %1044 }
 0x339   :  { %v1156_v32 = vsel %vm5107_vm3, %v3733_v35, -inf  ;;  %vm5108_vm0 = vmmov %vm5103_vm1  ;;  %v797_v38 = vadd.f32 %v796_v1, %v3623_v42  ;;  %vm5117_vm5 = vcmp.lt.s32.totalorder %v3081_v3, %v2917_v28  ;;  %v5119_v42 = vmov 0  ;;  %5124 = vst [vmem:[#allocation76_spill] sm:$0xff] %v3838_v36 }
 0x33a   :  { %v1160_v60 = vsel %vm5108_vm0, %v3739_v56, -inf  ;;  %vm5109_vm11 = vmmov %vm5108_vm0  ;;  %v1157_v51 = vmax.f32 %v3285_v33, %v1156_v32  ;;  %v968_v57 = vrot.slane %v967_v0, 2  ;;  %v3840_v32 = vpop.permute.xlu0 %1682 }
 0x33b   :  { %v1293_v50 = vsel %vm5109_vm11, %v1280_v44, 0.0  ;;  %vm5111_vm3 = vmmov %vm5108_vm0  ;;  %vm5112_vm0 = vcmp.lt.s32.totalorder %v3102_v8, %v2917_v28  ;;  %vm5113_vm11 = vcmp.ge.s32.totalorder %v3102_v8, %v2912_v27  ;;  %v836_v44 = vrot.slane %v835_v55, 4  ;;  %5125 = vst [vmem:[#allocation77_spill] sm:$0xff] %v3840_v32 }
 0x33c   :  { %v3793_v53 = vsel %vm5111_vm3, %v788_v39, 0.0  ;;  %vm3803_vm1 = vmand %vm5113_vm11, %vm5112_vm0  ;;  %vm5116_vm3 = vcmp.eq.s32.totalorder %v3078_v2, %v2937_v37  ;;  %v5122_v2 = vmax.f32 %v3164_v23, %v3607_v46  ;;  %v1161_v39 = vmax.f32 %v3601_v10, %v1160_v60 }
 0x33d   :  { %v5115_v24 = vsel %vm3803_vm1, 4294967295, %v5114_v24  ;;  %v1609_v34 = vsel %vm5116_vm3, %v3771_v4, 0.0  ;;  %vm3818_vm13 = vmand %vm5118_vm14, %vm5117_vm5  ;;  %v1294_v25 = vadd.f32 %v1293_v50, %v1292_v43  ;;  %vm5123_vm14 = vcmask 15360  }
 0x33e   :  { %v5120_v42 = vsel %vm3818_vm13, 4294967295, %v5119_v42  ;;  %v3831_v33 = vmax.f32 %v761_v20, %v5122_v2  ;;  %v3836_v1 = vsel %vm5123_vm14, %v3788_v54, -inf  ;;  %v837_v23 = vmax.f32 %v835_v55, %v836_v44 }
 0x33f   :  { %5121 = vst [vmem:[#allocation75_spill] sm:$0xff] %v5120_v42  ;;  %v969_v46 = vadd.f32 %v968_v57, %v967_v0  ;;  %v3849_v60 = vsel %vm3803_vm1, %v3838_v36, -1e+30  ;;  %vm5126_vm14 = vcmp.eq.s32.totalorder %v3102_v8, %v2937_v37  ;;  %vm5127_vm11 = vcmask 15360  }
 0x340   :  { %v1281_v10 = vsel %vm5126_vm14, %v3838_v36, 0.0  ;;  %v1620_v43 = vsel %vm5127_vm11, %v1609_v34, 0.0  ;;  %v3859_v20 = vsel %vm3818_vm13, %v3773_v61, -1e+30  ;;  %vm5128_vm5 = vmmov %vm5127_vm11  ;;  %v838_v50 = vrot.slane %v837_v23, 2 }
 0x341   :  { %v1162_v55 = vsel %vm5128_vm5, %v3849_v60, -inf  ;;  %vm5129_vm3 = vmmov %vm5128_vm5  ;;  %v970_v44 = vrot.slane %v969_v46, 1  ;;  %v1164_v2 = vmax.f32 %v1157_v51, %v1159_v31  ;;  %v942_v34 = vld [vmem:[#allocation5] sm:$0x1]  ;;  %v1488_v48 = vmax.f32 %v3378_v18, %v3836_v1  ;;  %v3884_v18 = vpop.permute.xlu0 %1694 }
 0x342   :  { %v1295_v0 = vsel %vm5129_vm3, %v1281_v10, 0.0  ;;  %v1163_v8 = vmax.f32 %v3424_v41, %v1162_v55  ;;  %vm5130_vm11 = vcmp.eq.s32.totalorder %v3081_v3, %v2937_v37  ;;  %v799_v10 = vadd.f32 %v3633_v6, %v797_v38  ;;  %5136 = vst [vmem:[#allocation79_spill] sm:$0xff] %v3884_v18  ;;  %v740_v3 = vpop.permute.xlu1 %739 }
 0x343   :  { %v1296_v57 = vadd.f32 %v1295_v0, %v1294_v25  ;;  %v1612_v4 = vsel %vm5130_vm11, %v3773_v61, 0.0  ;;  %v839_v42 = vmax.f32 %v837_v23, %v838_v50  ;;  %v971_v40 = vadd.f32 %v970_v44, %v969_v46 }
 0x344   :  { %v1165_v54 = vmax.f32 %v1161_v39, %v1163_v8  ;;  %vm5131_vm5 = vcmp.lt.s32.totalorder %v3105_v9, %v2917_v28  ;;  %vm5132_vm3 = vcmp.ge.s32.totalorder %v3105_v9, %v2912_v27  ;;  %v5133_v41 = vmov 0  ;;  %v3895_v39 = vld [vmem:[#allocation2] sm:$0x1] }
 0x345   :  { %v1297_v36 = vrot.slane %v1296_v57, 4  ;;  %vm3880_vm14 = vmand %vm5132_vm3, %vm5131_vm5  ;;  %v1621_v31 = vadd.f32 %v1620_v43, %v3666_v22  ;;  %vm5137_vm11 = vcmask 15360   ;;  %v753_v38 = vsel %vm3555_vm9, %v740_v3, -1e+30 }
 0x346   :  { %v5134_v41 = vsel %vm3880_vm14, 4294967295, %v5133_v41  ;;  %v3889_v6 = vsel %vm5137_vm11, %v3859_v20, -inf  ;;  %v787_v51 = vsel %vm3555_vm9, %v740_v3, 0.0  ;;  %v840_v25 = vrot.slane %v839_v42, 1 }
 0x347   :  { %5135 = vst [vmem:[#allocation78_spill] sm:$0xff] %v5134_v41  ;;  %v972_v1 = vadd.f32 %v971_v40, %v942_v34  ;;  %v1166_v23 = vmax.f32 %v1164_v2, %v1165_v54  ;;  %v1298_v46 = vadd.f32 %v1297_v36, %v1296_v57  ;;  %vm5138_vm5 = vcmp.lt.s32.totalorder %v3128_v13, %v2917_v28 }
 0x348   :  { %vm5139_vm3 = vcmp.ge.s32.totalorder %v3128_v13, %v2912_v27  ;;  %v5140_v22 = vmov 0  ;;  %vm5143_vm0 = vcmask 15360   ;;  %v3915_v40 = vsel %vm3880_vm14, %v3840_v32, -1e+30 }
 0x349   :  { %vm3903_vm11 = vmand %vm5139_vm3, %vm5138_vm5  ;;  %v3910_v43 = vsel %vm5143_vm0, %v1612_v4, 0.0  ;;  %5144 = vst [vmem:[#allocation81_spill] sm:$0xff] %v3915_v40  ;;  %v841_v55 = vmax.f32 %v839_v42, %v840_v25  ;;  %vm5147_vm5 = vcmask 8192   ;;  %v1167_v0 = vrot.slane %v1166_v23, 4  ;;  %v5172_v4 = vld [vmem:[#allocation54_spill] sm:$0xff] }
 0x34a   :  { %v5141_v22 = vsel %vm3903_vm11, 4294967295, %v5140_v22  ;;  %vm5145_vm13 = vmmov %vm5143_vm0  ;;  %973 = vst.msk [vmem:[#allocation5] sm:$0x1] %vm5147_vm5, %v972_v1  ;;  %v1299_v50 = vrot.slane %v1298_v46, 2  ;;  %v3930_v57 = vsel %vm3903_vm11, %v3884_v18, -1e+30  ;;  %v5155_v3 = vmax.f32 %v3604_v30, %v3747_v11 }
 0x34b   :  { %5142 = vst [vmem:[#allocation80_spill] sm:$0xff] %v5141_v22  ;;  %v764_v54 = vsel %vm5145_vm13, %v753_v38, -inf  ;;  %vm5146_vm1 = vmmov %vm5143_vm0  ;;  %vm5148_vm0 = vcmp.eq.s32.totalorder %v3105_v9, %v2937_v37  ;;  %vm5150_vm13 = vcmp.lt.s32.totalorder %v3131_v14, %v2917_v28  ;;  %v842_v2 = vmax.f32 %v3895_v39, %v841_v55 }
 0x34c   :  { %v800_v36 = vsel %vm5146_vm1, %v787_v51, 0.0  ;;  %v765_v44 = vmax.f32 %v3518_v21, %v764_v54  ;;  %v1937_v8 = vsel %vm5148_vm0, %v3840_v32, 0.0  ;;  %5149 = vst [vmem:[#allocation82_spill] sm:$0xff] %v3930_v57  ;;  %vm5151_vm1 = vcmp.ge.s32.totalorder %v3131_v14, %v2912_v27  ;;  %v3946_v51 = vpop.permute.xlu0 %1702 }
 0x34d   :  { %v801_v42 = vadd.f32 %v800_v36, %v799_v10  ;;  %vm3938_vm3 = vmand %vm5151_vm1, %vm5150_vm13  ;;  %v5152_v21 = vmov 0  ;;  %v1168_v9 = vmax.f32 %v1166_v23, %v1167_v0  ;;  %v1300_v34 = vadd.f32 %v1299_v50, %v1298_v46  ;;  %5156 = vst [vmem:[#allocation84_spill] sm:$0xff] %v3946_v51  ;;  %v3948_v10 = vpop.permute.xlu1 %1678  ;;  %v5169_v0 = vld [vmem:[#allocation33_spill] sm:$0xff] }
 0x34e   :  { %v5153_v21 = vsel %vm3938_vm3, 4294967295, %v5152_v21  ;;  %v769_v38 = vmax.f32 %v765_v44, %v5155_v3  ;;  %5157 = vst [vmem:[#allocation85_spill] sm:$0xff] %v3948_v10  ;;  %vm5158_vm5 = vcmp.lt.s32.totalorder %v3134_v15, %v2917_v28  ;;  %vm5159_vm0 = vcmp.ge.s32.totalorder %v3134_v15, %v2912_v27  ;;  %v5170_v44 = vld [vmem:[#allocation59_spill] sm:$0xff]  ;;  %v5171_v3 = vld [vmem:[#allocation44_spill] sm:$0xff] }
 0x34f   :  { %5154 = vst [vmem:[#allocation83_spill] sm:$0xff] %v5153_v21  ;;  %vm3956_vm13 = vmand %vm5159_vm0, %vm5158_vm5  ;;  %v5162_v1 = vmax.f32 %v3217_v5, %v3461_v58  ;;  %vm5163_vm1 = vcmask 15360   ;;  %v803_v11 = vadd.f32 %v3793_v53, %v801_v42  ;;  %v3971_v46 = vadd.f32 %v3496_v29, %v1621_v31  ;;  %v5168_v31 = vld [vmem:[#allocation42_spill] sm:$0xff] }
 0x350   :  { %v3967_v30 = vsel %vm5163_vm1, %v3915_v40, -inf  ;;  %v850_v54 = vrot.slane %v842_v2, %v2907_v26  ;;  %vm5164_vm5 = vcmask 8192   ;;  %vm5165_vm0 = vmmov %vm5163_vm1  ;;  %vm5167_vm1 = vcmp.eq.s32.totalorder %v3128_v13, %v2937_v37 }
 0x351   :  { %v3963_v23 = vmax.f32 %v1488_v48, %v5162_v1  ;;  %974 = vst.msk [vmem:[#allocation2] sm:$0x1] %vm5164_vm5, %v842_v2  ;;  %v3976_v36 = vsel %vm5165_vm0, %v1937_v8, 0.0  ;;  %vm5166_vm4 = vmmov %vm5165_vm0  ;;  %v1940_v5 = vsel %vm5167_vm1, %v3884_v18, 0.0  ;;  %vm1675_vm11 = vcmp.eq.s32.totalorder %v3131_v14, %v2937_v37 }
 0x352   :  { %v3980_v58 = vsel %vm5166_vm4, %v3930_v57, -inf  ;;  %vm1647_vm14 = vcmp.ge.s32.totalorder %v3158_v19, %v2912_v27  ;;  %vm1655_vm5 = vcmp.lt.s32.totalorder %v3158_v19, %v2917_v28  ;;  %v1169_v29 = vrot.slane %v1168_v9, 2 }
 0x353   :  { %v1301_v48 = vrot.slane %v1300_v34, 1  ;;  %v3995_v53 = vsel %vm3938_vm3, %v3946_v51, -1e+30  ;;  %v4000_v13 = vsel %vm3956_vm13, %v3948_v10, -1e+30  ;;  %v852_v55 = vsub.f32 %v5168_v31, %v850_v54 }
 0x354   :  { %v853_v50 = vsub.f32 %v5169_v0, %v850_v54  ;;  %v854_v8 = vsub.f32 %v5170_v44, %v850_v54  ;;  %v770_v42 = vmax.f32 %v3831_v33, %v769_v38  ;;  %v855_v1 = vsub.f32 %v5171_v3, %v850_v54  ;;  %v1273_v44 = vld [vmem:[#allocation5] sm:$0x1] }
 0x355   :  { %v856_v18 = vsub.f32 %v5172_v4, %v850_v54  ;;  %v857_v21 = vsub.f32 %v3592_v45, %v850_v54  ;;  %v804_v32 = vrot.slane %v803_v11, 4  ;;  %v858_v22 = vsub.f32 %v3597_v63, %v850_v54 }
 0x356   :  { %v859_v41 = vsub.f32 %v3720_v59, %v850_v54  ;;  %v860_v57 = vmul.f32 1.442695, %v852_v55  ;;  %v862_v61 = vmul.f32 1.442695, %v853_v50  ;;  %v864_v31 = vmul.f32 1.442695, %v854_v8 }
 0x357   :  { %v866_v40 = vmul.f32 1.442695, %v855_v1  ;;  %v1170_v0 = vmax.f32 %v1168_v9, %v1169_v29  ;;  %vm5173_vm4 = vcmp.eq.s32.totalorder %v3134_v15, %v2937_v37  ;;  %v843_v38 = vsub.f32 %v3895_v39, %v842_v2  ;;  %v1049_v1 = vpop.permute.xlu0 %1048 }
 0x358   :  { %v1936_v33 = vsel %vm5173_vm4, %v3948_v10, 0.0  ;;  %2339 = vpow2.f32 %v860_v57  ;;  %v868_v4 = vmul.f32 1.442695, %v856_v18  ;;  %v870_v45 = vmul.f32 1.442695, %v857_v21  ;;  %vm5175_vm4 = vmmov %vm5165_vm0 }
 0x359   :  { %2341 = vpow2.f32 %v862_v61  ;;  %v1171_v63 = vrot.slane %v1170_v0, 1  ;;  %v1302_v3 = vadd.f32 %v1301_v48, %v1300_v34  ;;  %v771_v59 = vrot.slane %v770_v42, 4  ;;  %v1151_v50 = vld [vmem:[#allocation2] sm:$0x1] }
 0x35a   :  { %2343 = vpow2.f32 %v864_v31  ;;  %v872_v54 = vmul.f32 1.442695, %v858_v22  ;;  %v874_v55 = vmul.f32 1.442695, %v859_v41  ;;  %v805_v9 = vadd.f32 %v804_v32, %v803_v11  ;;  %v4028_v22 = vpop.permute.xlu1 %1686 }
 0x35b   :  { %2345 = vpow2.f32 %v866_v40  ;;  %v1172_v29 = vmax.f32 %v1170_v0, %v1171_v63  ;;  %v1303_v8 = vadd.f32 %v1302_v3, %v1273_v44  ;;  %v772_v15 = vmax.f32 %v770_v42, %v771_v59  ;;  %5176 = vst [vmem:[#allocation42_spill] sm:$0xff] %v4028_v22  ;;  %v5185_v0 = vld [vmem:[#allocation41_spill] sm:$0xff] }
 0x35c   :  { %v844_v10 = vmul.f32 1.442695, %v843_v38  ;;  %2347 = vpow2.f32 %v868_v4  ;;  %v4017_v18 = vsel %vm5165_vm0, %v1940_v5, 0.0  ;;  %v806_v39 = vrot.slane %v805_v9, 2  ;;  %vm4036_vm0 = vmand %vm1647_vm14, %vm1655_vm5  ;;  %v5186_v38 = vld [vmem:[#allocation38_spill] sm:$0xff]  ;;  %v5187_v44 = vld [vmem:[#allocation53_spill] sm:$0xff] }
 0x35d   :  { %2349 = vpow2.f32 %v870_v45  ;;  %v1173_v61 = vmax.f32 %v1151_v50, %v1172_v29  ;;  %vm5174_vm1 = vcmask 8192   ;;  %v4022_v41 = vsel %vm5175_vm4, %v3995_v53, -inf }
 0x35e   :  { %1304 = vst.msk [vmem:[#allocation5] sm:$0x1] %vm5174_vm1, %v1303_v8  ;;  %v1942_v32 = vsel %vm1675_vm11, %v3946_v51, 0.0  ;;  %v5177_v40 = vmov 0  ;;  %2351 = vpow2.f32 %v872_v54  ;;  %vm5180_vm1 = vmmov %vm5175_vm4  ;;  %v1080_v21 = vsel %vm3118_vm7, %v1049_v1, -1e+30 }
 0x35f   :  { %v5178_v40 = vsel %vm4036_vm0, 4294967295, %v5177_v40  ;;  %v4042_v57 = vsel %vm5180_vm1, %v4000_v13, -inf  ;;  %vm5181_vm4 = vmmov %vm5180_vm1  ;;  %2353 = vpow2.f32 %v874_v55  ;;  %v1181_v2 = vrot.slane %v1173_v61, %v2907_v26 }
 0x360   :  { %5179 = vst [vmem:[#allocation33_spill] sm:$0xff] %v5178_v40  ;;  %v1944_v37 = vsel %vm5181_vm4, %v1936_v33, 0.0  ;;  %vm5183_vm11 = vcmask 8192   ;;  %v773_v34 = vrot.slane %v772_v15, 2  ;;  %v4049_v11 = vadd.f32 %v806_v39, %v805_v9  ;;  %vm5184_vm14 = vmmov %vm5180_vm1 }
 0x361   :  { %1305 = vst.msk [vmem:[#allocation2] sm:$0x1] %vm5183_vm11, %v1173_v61  ;;  %2355 = vpow2.f32 %v844_v10  ;;  %v4052_v5 = vsel %vm5184_vm14, %v1942_v32, 0.0  ;;  %v1112_v48 = vsel %vm3118_vm7, %v1049_v1, 0.0  ;;  %v4059_v42 = vsel %vm4036_vm0, %v4028_v22, -1e+30  ;;  %vm5188_vm5 = vmmov %vm5180_vm1 }
 0x362   :  { %v1174_v31 = vsub.f32 %v1151_v50, %v1173_v61  ;;  %v1183_v33 = vsub.f32 %v5185_v0, %v1181_v2  ;;  %v1184_v4 = vsub.f32 %v5186_v38, %v1181_v2  ;;  %v1185_v45 = vsub.f32 %v3544_v52, %v1181_v2  ;;  %vm5189_vm4 = vmmov %vm5180_vm1 }
 0x363   :  { %v1186_v10 = vsub.f32 %v5187_v44, %v1181_v2  ;;  %v4068_v3 = vadd.f32 %v3976_v36, %v1944_v37  ;;  %v4071_v59 = vsel %vm5188_vm5, %v1080_v21, -inf  ;;  %v4073_v50 = vmax.f32 %v772_v15, %v773_v34  ;;  %vm5192_vm11 = vmmov %vm5180_vm1 }
 0x364   :  { %v1191_v54 = vmul.f32 1.442695, %v1183_v33  ;;  %v1193_v55 = vmul.f32 1.442695, %v1184_v4  ;;  %v1195_v29 = vmul.f32 1.442695, %v1185_v45  ;;  %v1187_v61 = vsub.f32 %v3733_v35, %v1181_v2  ;;  %vm5195_vm14 = vmmov %vm5180_vm1 }
 0x365   :  { %v1197_v8 = vmul.f32 1.442695, %v1186_v10  ;;  %v4077_v52 = vsel %vm5180_vm1, %v1112_v48, 0.0  ;;  %v4081_v1 = vsel %vm5189_vm4, %v4059_v42, -inf  ;;  %v2340_v36 = vpop.eup %2339  ;;  %v4083_v39 = vmul.f32 1.442695, %v1174_v31  ;;  %vm5208_vm5 = vmmov %vm5180_vm1 }
 0x366   :  { %v1188_v32 = vsub.f32 %v3692_v16, %v1181_v2  ;;  %2357 = vpow2.f32 %v1191_v54  ;;  %v2342_v15 = vpop.eup %2341  ;;  %v876_v21 = vsel %vm3151_vm12, %v2340_v36, 0.0  ;;  %v1189_v34 = vsub.f32 %v3739_v56, %v1181_v2  ;;  %v5193_v4 = vld [vmem:[#allocation22_spill] sm:$0xff]  ;;  %vm5201_vm12 = vmmov %vm5180_vm1 }
 0x367   :  { %v1190_v48 = vsub.f32 %v3849_v60, %v1181_v2  ;;  %2359 = vpow2.f32 %v1193_v55  ;;  %v2344_v0 = vpop.eup %2343  ;;  %v877_v38 = vsel %vm3023_vm10, %v2342_v15, 0.0  ;;  %v886_v31 = vsel %vm5192_vm11, %v876_v21, 0.0  ;;  %v5196_v54 = vld [vmem:[#allocation18_spill] sm:$0xff]  ;;  %vm5198_vm10 = vmmov %vm5180_vm1  ;;  %v5207_v2 = vld [vmem:[#allocation23_spill] sm:$0xff] }
 0x368   :  { %v911_v35 = vmul.f32 %v876_v21, %v5193_v4  ;;  %2361 = vpow2.f32 %v1195_v29  ;;  %v2346_v16 = vpop.eup %2345  ;;  %v878_v44 = vsel %vm3393_vm15, %v2344_v0, 0.0  ;;  %v887_v10 = vsel %vm5195_vm14, %v877_v38, 0.0 }
 0x369   :  { %v912_v56 = vmul.f32 %v877_v38, %v5196_v54  ;;  %2363 = vpow2.f32 %v1197_v8  ;;  %v2348_v60 = vpop.eup %2347  ;;  %v879_v55 = vsel %vm3204_vm6, %v2346_v16, 0.0  ;;  %v888_v36 = vadd.f32 %v887_v10, %v886_v31  ;;  %v5200_v54 = vld [vmem:[#allocation28_spill] sm:$0xff]  ;;  %vm5202_vm6 = vmmov %vm5180_vm1  ;;  %v5204_v10 = vld [vmem:[#allocation66_spill] sm:$0xff] }
 0x36a   :  { %v1199_v15 = vmul.f32 1.442695, %v1187_v61  ;;  %v1201_v37 = vmul.f32 1.442695, %v1188_v32  ;;  %v2350_v33 = vpop.eup %2349  ;;  %v880_v29 = vsel %vm3326_vm8, %v2348_v60, 0.0  ;;  %v889_v21 = vsel %vm5198_vm10, %v878_v44, 0.0  ;;  %vm5203_vm8 = vmmov %vm5180_vm1 }
 0x36b   :  { %v1203_v4 = vmul.f32 1.442695, %v1189_v34  ;;  %v1205_v0 = vmul.f32 1.442695, %v1190_v48  ;;  %v2352_v45 = vpop.eup %2351  ;;  %v881_v38 = vsel %vm3505_vm2, %v2350_v33, 0.0  ;;  %v890_v8 = vadd.f32 %v889_v21, %v888_v36  ;;  %vm5206_vm2 = vmmov %vm5180_vm1  ;;  %v5210_v21 = vld [vmem:[#allocation58_spill] sm:$0xff] }
 0x36c   :  { %v913_v9 = vmul.f32 %v878_v44, %v5200_v54  ;;  %v919_v16 = vsel %vm5201_vm12, %v911_v35, 0.0  ;;  %v2354_v31 = vpop.eup %2353  ;;  %v882_v61 = vsel %vm3555_vm9, %v2352_v45, 0.0  ;;  %v891_v12 = vsel %vm5202_vm6, %v879_v55, 0.0  ;;  %vm5212_vm4 = vmmov %vm5206_vm2 }
 0x36d   :  { %v920_v32 = vsel %vm5203_vm8, %v912_v56, 0.0  ;;  %v775_v34 = vrot.slane %v4073_v50, 1  ;;  %vm5205_vm15 = vnez %v5204_v10  ;;  %v892_v60 = vadd.f32 %v891_v12, %v890_v8  ;;  %v5211_v56 = vld [vmem:[#allocation37_spill] sm:$0xff]  ;;  %vm5214_vm11 = vmmov %vm5206_vm2 }
 0x36e   :  { %v4113_v48 = vpop.eup %2355  ;;  %v883_v63 = vsel %vm5205_vm15, %v2354_v31, 0.0  ;;  %v893_v44 = vsel %vm5206_vm2, %v880_v29, 0.0  ;;  %v914_v35 = vmul.f32 %v879_v55, %v5207_v2  ;;  %v895_v36 = vsel %vm5208_vm5, %v881_v38, 0.0  ;;  %v5213_v31 = vld [vmem:[#allocation64_spill] sm:$0xff]  ;;  %vm5215_vm10 = vmmov %vm5206_vm2 }
 0x36f   :  { %v915_v33 = vmul.f32 %v880_v29, %v5209_v7  ;;  %v916_v45 = vmul.f32 %v881_v38, %v5210_v21  ;;  %v921_v54 = vadd.f32 %v920_v32, %v919_v16  ;;  %vm1320_vm9 = vcmp.ge.s32.totalorder %v5211_v56, %v2912_v27  ;;  %v4132_v29 = vld [vmem:[%s4778_s0 + $0x2] ss:$0 sm:$0xff]  ;;  %vm5216_vm12 = vmmov %vm5206_vm2 }
 0x370   :  { %vm1328_vm1 = vcmp.lt.s32.totalorder %v5211_v56, %v2917_v28  ;;  %v894_v10 = vadd.f32 %v893_v44, %v892_v60  ;;  %v897_v8 = vsel %vm5212_vm4, %v882_v61, 0.0  ;;  %v917_v12 = vmul.f32 %v882_v61, %v5213_v31  ;;  %v746_v60 = vld [vmem:[#allocation6] sm:$0x1]  ;;  %vm5217_vm6 = vmmov %vm5206_vm2 }
 0x371   :  { %v922_v55 = vsel %vm5214_vm11, %v913_v9, 0.0  ;;  %vm1671_vm14 = vcmp.eq.s32.totalorder %v3158_v19, %v4132_v29  ;;  %v899_v38 = vsel %vm5215_vm10, %v883_v63, 0.0  ;;  %v918_v16 = vmul.f32 %v883_v63, %v3699_v17  ;;  %vm5218_vm8 = vmmov %vm5206_vm2 }
 0x372   :  { %v923_v32 = vadd.f32 %v922_v55, %v921_v54  ;;  %2365 = vpow2.f32 %v1199_v15  ;;  %v896_v44 = vadd.f32 %v895_v36, %v894_v10  ;;  %v924_v61 = vsel %vm5216_vm12, %v914_v35, 0.0  ;;  %vm5221_vm5 = vmmov %vm5212_vm4  ;;  %v5222_v36 = vld [vmem:[#allocation21_spill] sm:$0xff]  ;;  %v5223_v54 = vld [vmem:[#allocation60_spill] sm:$0xff] }
 0x373   :  { %2367 = vpow2.f32 %v1201_v37  ;;  %v776_v9 = vmax.f32 %v4073_v50, %v775_v34  ;;  %v2358_v2 = vpop.eup %2357  ;;  %v926_v21 = vsel %vm5217_vm6, %v915_v33, 0.0  ;;  %v928_v31 = vsel %vm5218_vm8, %v916_v45, 0.0  ;;  %v5219_v50 = vld [vmem:[#allocation32_spill] sm:$0xff]  ;;  %vm5225_vm11 = vmmov %vm5221_vm5 }
 0x374   :  { %v925_v7 = vadd.f32 %v924_v61, %v923_v32  ;;  %2369 = vpow2.f32 %v1203_v4  ;;  %v2360_v51 = vpop.eup %2359  ;;  %v898_v40 = vadd.f32 %v897_v8, %v896_v44  ;;  %v1207_v17 = vsel %vm3118_vm7, %v2358_v2, 0.0  ;;  %v5226_v10 = vld [vmem:[#allocation20_spill] sm:$0xff]  ;;  %v5228_v32 = vld [vmem:[#allocation46_spill] sm:$0xff]  ;;  %vm5231_vm12 = vmmov %vm5221_vm5 }
 0x375   :  { %2371 = vpow2.f32 %v1205_v0  ;;  %v777_v15 = vmax.f32 %v746_v60, %v776_v9  ;;  %vm1344_vm15 = vcmp.eq.s32.totalorder %v5211_v56, %v4132_v29  ;;  %v2362_v37 = vpop.eup %2361  ;;  %vm5220_vm2 = vnez %v5219_v50  ;;  %vm5232_vm6 = vmmov %vm5221_vm5  ;;  %v5233_v2 = vld [vmem:[#allocation40_spill] sm:$0xff] }
 0x376   :  { %v927_v63 = vadd.f32 %v926_v21, %v925_v7  ;;  %v1208_v34 = vsel %vm5220_vm2, %v2360_v51, 0.0  ;;  %v1217_v35 = vsel %vm5221_vm5, %v1207_v17, 0.0  ;;  %v1242_v33 = vmul.f32 %v1207_v17, %v5222_v36  ;;  %v2364_v4 = vpop.eup %2363  ;;  %v780_v21 = vld [vmem:[#allocation7] sm:$0x1]  ;;  %vm5234_vm8 = vmmov %vm5221_vm5  ;;  %v5236_v36 = vld [vmem:[#allocation26_spill] sm:$0xff] }
 0x377   :  { %v900_v45 = vadd.f32 %v899_v38, %v898_v40  ;;  %vm5224_vm4 = vnez %v5223_v54  ;;  %v1218_v14 = vsel %vm5225_vm11, %v1208_v34, 0.0  ;;  %v1243_v8 = vmul.f32 %v1208_v34, %v5226_v10  ;;  %vm5235_vm11 = vmmov %vm5221_vm5 }
 0x378   :  { %v1209_v0 = vsel %vm5224_vm4, %v2362_v37, 0.0  ;;  %vm5227_vm7 = vcmask 8192   ;;  %v929_v55 = vadd.f32 %v928_v31, %v927_v63  ;;  %vm5229_vm10 = vnez %v5228_v32  ;;  %v884_v63 = vld [vmem:[#allocation3] sm:$0x1] }
 0x379   :  { %779 = vst.msk [vmem:[#allocation6] sm:$0x1] %vm5227_vm7, %v777_v15  ;;  %v1210_v60 = vsel %vm5229_vm10, %v2364_v4, 0.0  ;;  %v1219_v51 = vadd.f32 %v1218_v14, %v1217_v35  ;;  %v5230_v44 = vrot.slane %v4049_v11, 1  ;;  %v901_v9 = vrot.slane %v900_v45, 4  ;;  %v4167_v14 = vpop.permute.xlu1 %1371  ;;  %vm4175_vm7 = vmand %vm1320_vm9, %vm1328_vm1 }
 0x37a   :  { %v930_v40 = vsel %vm5231_vm12, %v917_v12, 0.0  ;;  %v1220_v38 = vsel %vm5232_vm6, %v1209_v0, 0.0  ;;  %v1244_v7 = vmul.f32 %v1209_v0, %v5233_v2  ;;  %v1250_v31 = vsel %vm5234_vm8, %v1242_v33, 0.0  ;;  %v909_v33 = vld [vmem:[#allocation4] sm:$0x1]  ;;  %vm5239_vm12 = vmmov %vm5221_vm5 }
 0x37b   :  { %v809_v61 = vadd.f32 %v5230_v44, %v4049_v11  ;;  %v931_v17 = vadd.f32 %v930_v40, %v929_v55  ;;  %v1221_v37 = vadd.f32 %v1220_v38, %v1219_v51  ;;  %v1251_v15 = vsel %vm5221_vm5, %v1243_v8, 0.0  ;;  %vm5240_vm6 = vmmov %vm5221_vm5 }
 0x37c   :  { %v902_v34 = vadd.f32 %v901_v9, %v900_v45  ;;  %v932_v35 = vsel %vm5235_vm11, %v918_v16, 0.0  ;;  %v1245_v11 = vmul.f32 %v1210_v60, %v5236_v36  ;;  %v1252_v4 = vadd.f32 %v1251_v15, %v1250_v31  ;;  %vm5242_vm1 = vmmov %vm5221_vm5  ;;  %v4199_v31 = vpop.permute.xlu0 %1060 }
 0x37d   :  { %v933_v0 = vadd.f32 %v932_v35, %v931_v17  ;;  %v1253_v45 = vsel %vm5239_vm12, %v1244_v7, 0.0  ;;  %v810_v16 = vadd.f32 %v809_v61, %v780_v21  ;;  %v1938_v10 = vsel %vm1671_vm14, %v4028_v22, 0.0  ;;  %vm5243_vm14 = vmmov %vm5242_vm1  ;;  %v5246_v35 = vld [vmem:[#allocation68_spill] sm:$0xff] }
 0x37e   :  { %v903_v8 = vrot.slane %v902_v34, 2  ;;  %2373 = vpow2.f32 %v4083_v39  ;;  %v1222_v55 = vsel %vm5240_vm6, %v1210_v60, 0.0  ;;  %v1254_v51 = vadd.f32 %v1253_v45, %v1252_v4  ;;  %vm5248_vm12 = vmmov %vm5242_vm1 }
 0x37f   :  { %v885_v44 = vmul.f32 %v4113_v48, %v884_v63  ;;  %v934_v9 = vrot.slane %v933_v0, 4  ;;  %v1223_v40 = vadd.f32 %v1222_v55, %v1221_v37  ;;  %vm5241_vm9 = vcmask 8192   ;;  %v2366_v38 = vpop.eup %2365  ;;  %vm5254_vm6 = vmmov %vm5242_vm1 }
 0x380   :  { %811 = vst.msk [vmem:[#allocation7] sm:$0x1] %vm5241_vm9, %v810_v16  ;;  %v4191_v61 = vsel %vm4175_vm7, %v4167_v14, -1e+30  ;;  %v904_v19 = vadd.f32 %v903_v8, %v902_v34  ;;  %v910_v2 = vmul.f32 %v4113_v48, %v909_v33  ;;  %v1255_v39 = vsel %vm5242_vm1, %v1245_v11, 0.0  ;;  %v2368_v7 = vpop.eup %2367  ;;  %v5245_v48 = vld [vmem:[#allocation47_spill] sm:$0xff]  ;;  %vm5256_vm9 = vmmov %vm5242_vm1 }
 0x381   :  { %v1491_v60 = vsel %vm5243_vm14, %v4191_v61, -inf  ;;  %v935_v21 = vadd.f32 %v934_v9, %v933_v0  ;;  %vm5244_vm8 = vnez %v5082_v47  ;;  %v1256_v37 = vadd.f32 %v1255_v39, %v1254_v51  ;;  %v2370_v63 = vpop.eup %2369  ;;  %v5249_v0 = vld [vmem:[#allocation70_spill] sm:$0xff]  ;;  %v5251_v8 = vld [vmem:[#allocation67_spill] sm:$0xff]  ;;  %v5252_v51 = vld [vmem:[#allocation52_spill] sm:$0xff] }
 0x382   :  { %v1211_v17 = vsel %vm5244_vm8, %v2366_v38, 0.0  ;;  %v1611_v15 = vsel %vm1344_vm15, %v4167_v14, 0.0  ;;  %v905_v34 = vrot.slane %v904_v19, 1  ;;  %vm5247_vm11 = vnez %v5246_v35  ;;  %v2372_v56 = vpop.eup %2371  ;;  %v5255_v39 = vld [vmem:[#allocation63_spill] sm:$0xff]  ;;  %vm5257_vm5 = vmmov %vm5242_vm1 }
 0x383   :  { %v1212_v36 = vsel %vm5247_vm11, %v2368_v7, 0.0  ;;  %v1224_v11 = vsel %vm5248_vm12, %v1211_v17, 0.0  ;;  %v1246_v4 = vmul.f32 %v1211_v17, %v3630_v49  ;;  %v936_v33 = vrot.slane %v935_v21, 2  ;;  %vm5258_vm3 = vmmov %vm5242_vm1 }
 0x384   :  { %vm5250_vm15 = vnez %v5249_v0  ;;  %v1225_v16 = vadd.f32 %v1224_v11, %v1223_v40  ;;  %v1492_v55 = vmax.f32 %v5251_v8, %v1491_v60  ;;  %v906_v49 = vadd.f32 %v905_v34, %v904_v19  ;;  %v5259_v8 = vld [vmem:[#allocation69_spill] sm:$0xff] }
 0x385   :  { %v1213_v45 = vsel %vm5250_vm15, %v2370_v63, 0.0  ;;  %vm5253_vm12 = vnez %v5115_v24  ;;  %v1226_v38 = vsel %vm5254_vm6, %v1212_v36, 0.0  ;;  %v1247_v7 = vmul.f32 %v1212_v36, %v5255_v39  ;;  %vm5260_vm6 = vmmov %vm5242_vm1 }
 0x386   :  { %v1214_v9 = vsel %vm5253_vm12, %v2372_v56, 0.0  ;;  %v937_v17 = vadd.f32 %v936_v33, %v935_v21  ;;  %v1227_v22 = vadd.f32 %v1226_v38, %v1225_v16  ;;  %v1947_v40 = vsel %vm5256_vm9, %v1938_v10, 0.0  ;;  %v4234_v33 = vpop.permute.xlu0 %1068  ;;  %v5262_v10 = vld [vmem:[#allocation76_spill] sm:$0xff] }
 0x387   :  { %v1624_v60 = vsel %vm5257_vm5, %v1611_v15, 0.0  ;;  %v907_v63 = vadd.f32 %v906_v49, %v885_v44  ;;  %v1228_v11 = vsel %vm5258_vm3, %v1213_v45, 0.0  ;;  %v1248_v0 = vmul.f32 %v1213_v45, %v5259_v8  ;;  %vm5263_vm5 = vmmov %vm5242_vm1  ;;  %v4243_v49 = vpop.permute.xlu1 %1690 }
 0x388   :  { %v1257_v19 = vsel %vm5242_vm1, %v1246_v4, 0.0  ;;  %v938_v34 = vrot.slane %v937_v17, 1  ;;  %v1229_v56 = vadd.f32 %v1228_v11, %v1227_v22  ;;  %v1230_v36 = vsel %vm5260_vm6, %v1214_v9, 0.0  ;;  %v5265_v11 = vld [vmem:[#allocation57_spill] sm:$0xff]  ;;  %vm5266_vm6 = vmmov %vm5242_vm1 }
 0x389   :  { %v1258_v21 = vadd.f32 %v1257_v19, %v1256_v37  ;;  %vm5261_vm9 = vcmask 8192   ;;  %v1249_v44 = vmul.f32 %v1214_v9, %v5262_v10  ;;  %v1259_v15 = vsel %vm5263_vm5, %v1247_v7, 0.0  ;;  %vm5270_vm3 = vmmov %vm5242_vm1 }
 0x38a   :  { %908 = vst.msk [vmem:[#allocation3] sm:$0x1] %vm5261_vm9, %v907_v63  ;;  %v5264_v45 = vmax.f32 %v3399_v62, %v3889_v6  ;;  %v1625_v16 = vadd.f32 %v1624_v60, %v3971_v46  ;;  %v939_v22 = vadd.f32 %v938_v34, %v937_v17  ;;  %v1231_v38 = vadd.f32 %v1230_v36, %v1229_v56  ;;  %vm5267_vm9 = vmmov %vm5242_vm1  ;;  %v4281_v19 = vpop.permute.xlu0 %1076 }
 0x38b   :  { %v1260_v39 = vadd.f32 %v1259_v15, %v1258_v21  ;;  %v1948_v37 = vadd.f32 %v1947_v40, %v4068_v3  ;;  %v1261_v9 = vsel %vm5266_vm6, %v1248_v0, 0.0  ;;  %v1083_v62 = vsel %vm5229_vm10, %v4199_v31, -1e+30  ;;  %vm5275_vm14 = vmmov %vm5270_vm3  ;;  %v4288_v10 = vpop.permute.xlu1 %1698 }
 0x38c   :  { %v1496_v4 = vmax.f32 %v1492_v55, %v5264_v45  ;;  %v1627_v46 = vadd.f32 %v3910_v43, %v1625_v16  ;;  %v4256_v55 = vpop.eup %2373  ;;  %v940_v7 = vadd.f32 %v939_v22, %v910_v2  ;;  %v1232_v3 = vrot.slane %v1231_v38, 4 }
 0x38d   :  { %v1262_v17 = vadd.f32 %v1261_v9, %v1260_v39  ;;  %v1115_v40 = vsel %vm5229_vm10, %v4199_v31, 0.0  ;;  %v1263_v60 = vsel %vm5267_vm9, %v1249_v44, 0.0  ;;  %vm5268_vm5 = vcmp.eq.s32.totalorder %v5245_v48, %v4132_v29 }
 0x38e   :  { %v1497_v6 = vmax.f32 %v3963_v23, %v1496_v4  ;;  %v1628_v63 = vrot.slane %v1627_v46, 4  ;;  %v1939_v23 = vsel %vm5268_vm5, %v4243_v49, 0.0  ;;  %vm5269_vm6 = vcmask 8192  }
 0x38f   :  { %941 = vst.msk [vmem:[#allocation4] sm:$0x1] %vm5269_vm6, %v940_v7  ;;  %v1233_v43 = vadd.f32 %v1232_v3, %v1231_v38  ;;  %v1264_v8 = vadd.f32 %v1263_v60, %v1262_v17  ;;  %v4268_v2 = vsel %vm5270_vm3, %v1083_v62, -inf  ;;  %vm5271_vm1 = vcmp.lt.s32.totalorder %v5245_v48, %v2917_v28  ;;  %vm5276_vm6 = vmmov %vm5270_vm3 }
 0x390   :  { %v1498_v0 = vrot.slane %v1497_v6, 4  ;;  %vm5272_vm10 = vcmp.ge.s32.totalorder %v5245_v48, %v2912_v27  ;;  %v1949_v31 = vsel %vm5275_vm14, %v1939_v23, 0.0  ;;  %vm1676_vm5 = vcmp.eq.s32.totalorder %v5265_v11, %v4132_v29 }
 0x391   :  { %vm4276_vm9 = vmand %vm5272_vm10, %vm5271_vm1  ;;  %v4286_v34 = vsel %vm5276_vm6, %v1115_v40, 0.0  ;;  %v1629_v36 = vadd.f32 %v1628_v63, %v1627_v46  ;;  %v1950_v21 = vadd.f32 %v1949_v31, %v1948_v37  ;;  %vm5277_vm3 = vcmp.lt.s32.totalorder %v5252_v51, %v2917_v28  ;;  %v1215_v44 = vld [vmem:[#allocation3] sm:$0x1] }
 0x392   :  { %v1499_v56 = vmax.f32 %v1497_v6, %v1498_v0  ;;  %vm5278_vm1 = vcmp.ge.s32.totalorder %v5252_v51, %v2912_v27  ;;  %v1234_v15 = vrot.slane %v1233_v43, 2  ;;  %v1265_v45 = vrot.slane %v1264_v8, 4 }
 0x393   :  { %vm4296_vm14 = vmand %vm5278_vm1, %vm5277_vm3  ;;  %v1823_v4 = vmax.f32 %v4081_v1, %v4022_v41  ;;  %v1085_v16 = vsel %vm5247_vm11, %v4234_v33, -1e+30  ;;  %v1630_v38 = vrot.slane %v1629_v36, 2  ;;  %v4308_v39 = vsel %vm4276_vm9, %v4243_v49, -1e+30 }
 0x394   :  { %v1500_v22 = vrot.slane %v1499_v56, 2  ;;  %v1087_v37 = vsel %vm5253_vm12, %v4281_v19, -1e+30  ;;  %v1235_v9 = vadd.f32 %v1234_v15, %v1233_v43  ;;  %v1266_v62 = vadd.f32 %v1265_v45, %v1264_v8  ;;  %vm5282_vm3 = vmmov %vm5276_vm6 }
 0x395   :  { %v4316_v6 = vsel %vm4296_vm14, %v4288_v10, -1e+30  ;;  %vm5281_vm10 = vcmp.eq.s32.totalorder %v5252_v51, %v4132_v29  ;;  %v1216_v7 = vmul.f32 %v4256_v55, %v1215_v44  ;;  %v1631_v17 = vadd.f32 %v1630_v38, %v1629_v36  ;;  %vm5283_vm1 = vmmov %vm5282_vm3 }
 0x396   :  { %v1941_v46 = vsel %vm5281_vm10, %v4288_v10, 0.0  ;;  %v1501_v3 = vmax.f32 %v1499_v56, %v1500_v22  ;;  %v1952_v40 = vadd.f32 %v4017_v18, %v1950_v21  ;;  %v1236_v60 = vrot.slane %v1235_v9, 1  ;;  %v1240_v43 = vld [vmem:[#allocation4] sm:$0x1]  ;;  %v4333_v18 = vpop.permute.xlu1 %1706 }
 0x397   :  { %v1267_v0 = vrot.slane %v1266_v62, 2  ;;  %v1820_v63 = vsel %vm5276_vm6, %v4316_v6, -inf  ;;  %v1953_v23 = vsel %vm5282_vm3, %v1941_v46, 0.0  ;;  %v1632_v31 = vrot.slane %v1631_v17, 1 }
 0x398   :  { %v1502_v8 = vrot.slane %v1501_v3, 1  ;;  %v4328_v51 = vsel %vm5283_vm1, %v1085_v16, -inf  ;;  %v1117_v56 = vsel %vm5247_vm11, %v4234_v33, 0.0  ;;  %vm5284_vm10 = vcmp.lt.s32.totalorder %v5265_v11, %v2917_v28  ;;  %v4347_v33 = vpop.permute.xlu0 %1710  ;;  %v1604_v16 = vld [vmem:[#allocation5] sm:$0x1]  ;;  %vm5288_vm11 = vmmov %vm5283_vm1 }
 0x399   :  { %vm5285_vm6 = vcmp.ge.s32.totalorder %v5265_v11, %v2912_v27  ;;  %v1237_v21 = vadd.f32 %v1236_v60, %v1235_v9  ;;  %v1268_v44 = vadd.f32 %v1267_v0, %v1266_v62  ;;  %v1817_v15 = vsel %vm5283_vm1, %v4308_v39, -inf }
 0x39a   :  { %vm4341_vm3 = vmand %vm5285_vm6, %vm5284_vm10  ;;  %v1954_v35 = vadd.f32 %v1953_v23, %v1952_v40  ;;  %v1503_v45 = vmax.f32 %v1501_v3, %v1502_v8  ;;  %v1633_v22 = vadd.f32 %v1632_v31, %v1631_v17  ;;  %v4350_v28 = vsel %vm5288_vm11, %v1087_v37, -inf }
 0x39b   :  { %v1821_v27 = vmax.f32 %v3967_v30, %v1820_v63 }
 0x39c   :  { %2433 = shalt.err (!%p2430_p4)
}
 0x39d   :  { %s2519_s5 = smov 128   ;;  %s2520_s3 = smov 8   ;;  %v1238_v38 = vadd.f32 %v1237_v21, %v1216_v7  ;;  %v1241_v9 = vmul.f32 %v4256_v55, %v1240_v43  ;;  %v1269_v37 = vrot.slane %v1268_v44, 1  ;;  %v1482_v62 = vld [vmem:[#allocation2] sm:$0x1]  ;;  %v1634_v3 = vadd.f32 %v1633_v22, %v1604_v16  ;;  %vm5289_vm10 = vmmov %vm5283_vm1  ;;  %v1723_v21 = vpop.permute.xlu0 %1722  ;;  %v5296_v16 = vld [vmem:[#allocation35_spill] sm:$0xff] }
 0x39e   :  { %2006 = dma.vmem_to_hbm [thread:$0]  %s2001_s16, 1024, %s4787_s9, [#allocation9], %s2519_s5, %s2519_s5, %s2520_s3   ;;  %v4360_v30 = vsel %vm4341_vm3, %v4333_v18, -1e+30  ;;  %v1504_v46 = vmax.f32 %v1482_v62, %v1503_v45  ;;  %v1943_v40 = vsel %vm1676_vm5, %v4333_v18, 0.0  ;;  %vm5290_vm6 = vcmask 8192   ;;  %vm5293_vm5 = vmmov %vm5283_vm1 }
 0x39f   :  { %v1824_v17 = vsel %vm5289_vm10, %v4360_v30, -inf  ;;  %1239 = vst.msk [vmem:[#allocation3] sm:$0x1] %vm5290_vm6, %v1238_v38  ;;  %v1270_v55 = vadd.f32 %v1269_v37, %v1268_v44  ;;  %v4370_v7 = vsel %vm5283_vm1, %v1117_v56, 0.0  ;;  %v1956_v0 = vadd.f32 %v4052_v5, %v1954_v35  ;;  %vm5291_vm11 = vmmov %vm5290_vm6  ;;  %v1053_v44 = vpop.permute.xlu1 %1052  ;;  %v5295_v35 = vld [vmem:[#allocation48_spill] sm:$0xff]  ;;  %v5297_v38 = vld [vmem:[#allocation65_spill] sm:$0xff] }
 0x3a0   :  { %v1825_v60 = vmax.f32 %v1817_v15, %v1824_v17  ;;  %v1505_v63 = vsub.f32 %v1482_v62, %v1504_v46  ;;  %v1512_v23 = vrot.slane %v1504_v46, %v2907_v26  ;;  %1635 = vst.msk [vmem:[#allocation5] sm:$0x1] %vm5291_vm11, %v1634_v3  ;;  %vm5292_vm10 = vmmov %vm5290_vm6  ;;  %v1957_v11 = vsel %vm5293_vm5, %v1943_v40, 0.0  ;;  %v5298_v24 = vld [vmem:[#allocation50_spill] sm:$0xff] }
 0x3a1   :  { %1636 = vst.msk [vmem:[#allocation2] sm:$0x1] %vm5292_vm10, %v1504_v46  ;;  %v1271_v43 = vadd.f32 %v1270_v55, %v1241_v9  ;;  %v1119_v8 = vsel %vm5253_vm12, %v4281_v19, 0.0  ;;  %v5294_v5 = vmax.f32 %v4042_v57, %v3980_v58  ;;  %v5299_v37 = vld [vmem:[#allocation74_spill] sm:$0xff]  ;;  %v5300_v57 = vld [vmem:[#allocation56_spill] sm:$0xff]  ;;  %v1958_v62 = vadd.f32 %v1957_v11, %v1956_v0  ;;  %vm5301_vm12 = vmmov %vm5283_vm1 }
 0x3a2   :  { %v1827_v56 = vmax.f32 %v1823_v4, %v1825_v60  ;;  %v1506_v15 = vmul.f32 1.442695, %v1505_v63  ;;  %v1514_v45 = vsub.f32 %v5295_v35, %v1512_v23  ;;  %v1515_v22 = vsub.f32 %v5296_v16, %v1512_v23  ;;  %vm5302_vm11 = vmmov %vm5283_vm1 }
 0x3a3   :  { %v1826_v31 = vmax.f32 %v5294_v5, %v1821_v27  ;;  %v1516_v9 = vsub.f32 %v5297_v38, %v1512_v23  ;;  %1272 = vst.msk [vmem:[#allocation4] sm:$0x1] %vm5290_vm6, %v1271_v43  ;;  %v1517_v19 = vsub.f32 %v5298_v24, %v1512_v23  ;;  %v1518_v58 = vsub.f32 %v5299_v37, %v1512_v23  ;;  %v1384_v43 = vpop.permute.xlu0 %1383  ;;  %v1057_v5 = vpop.permute.xlu1 %1056  ;;  %vm5304_vm10 = vmmov %vm5283_vm1 }
 0x3a4   :  { %v1519_v27 = vsub.f32 %v5300_v57, %v1512_v23  ;;  %2375 = vpow2.f32 %v1506_v15  ;;  %v1520_v41 = vsub.f32 %v4191_v61, %v1512_v23  ;;  %v1522_v1 = vmul.f32 1.442695, %v1514_v45  ;;  %vm5306_vm5 = vmmov %vm5283_vm1 }
 0x3a5   :  { %v1524_v4 = vmul.f32 1.442695, %v1515_v22  ;;  %v1521_v46 = vsub.f32 %v3859_v20, %v1512_v23  ;;  %v1526_v3 = vmul.f32 1.442695, %v1516_v9  ;;  %v1528_v17 = vmul.f32 1.442695, %v1517_v19  ;;  %vm5308_vm6 = vmmov %vm5283_vm1 }
 0x3a6   :  { %v1828_v40 = vmax.f32 %v1826_v31, %v1827_v56  ;;  %2377 = vpow2.f32 %v1522_v1  ;;  %v1530_v55 = vmul.f32 1.442695, %v1518_v58  ;;  %v1742_v60 = vsel %vm3956_vm13, %v4347_v33, -1e+30  ;;  %vm5347_vm15 = vmmov %vm5283_vm1 }
 0x3a7   :  { %v1774_v0 = vsel %vm3956_vm13, %v4347_v33, 0.0  ;;  %2379 = vpow2.f32 %v1524_v4  ;;  %v1532_v63 = vmul.f32 1.442695, %v1519_v27  ;;  %v1959_v11 = vrot.slane %v1958_v62, 4  ;;  %v1065_v58 = vpop.permute.xlu1 %1064  ;;  %v1935_v57 = vld [vmem:[#allocation5] sm:$0x1] }
 0x3a8   :  { %v1829_v61 = vrot.slane %v1828_v40, 4  ;;  %2381 = vpow2.f32 %v1526_v3  ;;  %v1534_v20 = vmul.f32 1.442695, %v1520_v41  ;;  %v1745_v23 = vsel %vm4276_vm9, %v1723_v21, -1e+30  ;;  %v5311_v41 = vld [vmem:[#allocation31_spill] sm:$0xff] }
 0x3a9   :  { %v1113_v31 = vsel %vm5220_vm2, %v1053_v44, 0.0  ;;  %2383 = vpow2.f32 %v1528_v17  ;;  %v1536_v56 = vmul.f32 1.442695, %v1521_v46  ;;  %v1960_v35 = vadd.f32 %v1959_v11, %v1958_v62  ;;  %v1546_v11 = vld [vmem:[#allocation3] sm:$0x1] }
 0x3aa   :  { %v1830_v15 = vmax.f32 %v1828_v40, %v1829_v61  ;;  %2385 = vpow2.f32 %v1530_v55  ;;  %v4408_v33 = vsel %vm5301_vm12, %v1119_v8, 0.0  ;;  %v1777_v45 = vsel %vm4276_vm9, %v1723_v21, 0.0 }
 0x3ab   :  { %v1081_v16 = vsel %vm5220_vm2, %v1053_v44, -1e+30  ;;  %2387 = vpow2.f32 %v1532_v63  ;;  %v1961_v38 = vrot.slane %v1960_v35, 2  ;;  %v1121_v9 = vsel %vm5283_vm1, %v1113_v31, 0.0  ;;  %v1396_v44 = vpop.permute.xlu0 %1395  ;;  %vm5310_vm2 = vmmov %vm5283_vm1 }
 0x3ac   :  { %v1831_v22 = vrot.slane %v1830_v15, 2  ;;  %2389 = vpow2.f32 %v1534_v20  ;;  %v4416_v24 = vsel %vm5302_vm11, %v1742_v60, -inf  ;;  %v4419_v19 = vsel %vm5304_vm10, %v1774_v0, 0.0  ;;  %v5313_v60 = vld [vmem:[#allocation71_spill] sm:$0xff]  ;;  %vm5315_vm10 = vmmov %vm5283_vm1 }
 0x3ad   :  { %5303 = vst [vmem:[#allocation59_spill] sm:$0xff] %v4416_v24  ;;  %5305 = vst [vmem:[#allocation44_spill] sm:$0xff] %v4419_v19  ;;  %v4422_v8 = vsel %vm5306_vm5, %v1745_v23, -inf  ;;  %2391 = vpow2.f32 %v1536_v56  ;;  %v1962_v37 = vadd.f32 %v1961_v38, %v1960_v35  ;;  %v4425_v50 = vsel %vm5308_vm6, %v1777_v45, 0.0 }
 0x3ae   :  { %5307 = vst [vmem:[#allocation54_spill] sm:$0xff] %v4422_v8  ;;  %v1832_v21 = vmax.f32 %v1830_v15, %v1831_v22  ;;  %5309 = vst [vmem:[#allocation34_spill] sm:$0xff] %v4425_v50  ;;  %v1089_v27 = vsel %vm5310_vm2, %v1081_v16, -inf  ;;  %v1122_v62 = vadd.f32 %v1121_v9, %v4077_v52  ;;  %vm5312_vm12 = vnez %v5311_v41  ;;  %v1571_v16 = vld [vmem:[#allocation4] sm:$0x1]  ;;  %v5329_v41 = vld [vmem:[#allocation19_spill] sm:$0xff] }
 0x3af   :  { %v1412_v1 = vsel %vm5312_vm12, %v1384_v43, -1e+30  ;;  %v1114_v4 = vsel %vm5224_vm4, %v1057_v5, 0.0  ;;  %v1963_v3 = vrot.slane %v1962_v37, 1  ;;  %v1444_v17 = vsel %vm5312_vm12, %v1384_v43, 0.0  ;;  %vm5317_vm5 = vmmov %vm5283_vm1 }
 0x3b0   :  { %v1833_v46 = vrot.slane %v1832_v21, 1  ;;  %v1082_v40 = vsel %vm5224_vm4, %v1057_v5, -1e+30  ;;  %v1123_v55 = vsel %vm5283_vm1, %v1114_v4, 0.0  ;;  %vm5314_vm11 = vnez %v5313_v60  ;;  %v4447_v5 = vld [vmem:[#allocation2] sm:$0x1]  ;;  %vm5316_vm4 = vmmov %vm5283_vm1 }
 0x3b1   :  { %v1415_v0 = vsel %vm5314_vm11, %v1396_v44, -1e+30  ;;  %v1447_v52 = vsel %vm5314_vm11, %v1396_v44, 0.0  ;;  %v1084_v63 = vsel %vm5244_vm8, %v1065_v58, -1e+30  ;;  %v2376_v61 = vpop.eup %2375  ;;  %v1964_v23 = vadd.f32 %v1963_v3, %v1962_v37  ;;  %vm5318_vm6 = vmmov %vm5283_vm1  ;;  %v5324_v3 = vld [vmem:[#allocation24_spill] sm:$0xff] }
 0x3b2   :  { %v1834_v20 = vmax.f32 %v1832_v21, %v1833_v46  ;;  %v1092_v43 = vsel %vm5315_vm10, %v1084_v63, -inf  ;;  %v1116_v54 = vsel %vm5244_vm8, %v1065_v58, 0.0  ;;  %v1095_v31 = vmax.f32 %v1089_v27, %v4328_v51  ;;  %vm5319_vm8 = vmmov %vm5283_vm1  ;;  %v5320_v21 = vld [vmem:[#allocation43_spill] sm:$0xff] }
 0x3b3   :  { %v4451_v56 = vsel %vm5316_vm4, %v1412_v1, -inf  ;;  %v4454_v15 = vsel %vm5317_vm5, %v1444_v17, 0.0  ;;  %v4457_v35 = vsel %vm5318_vm6, %v1082_v40, -inf  ;;  %v2378_v45 = vpop.eup %2377  ;;  %v1965_v47 = vadd.f32 %v1964_v23, %v1935_v57  ;;  %vm5322_vm10 = vmmov %vm5283_vm1  ;;  %v4474_v1 = vpop.permute.xlu0 %1403  ;;  %v5327_v40 = vld [vmem:[#allocation62_spill] sm:$0xff] }
 0x3b4   :  { %v4460_v22 = vmax.f32 %v4447_v5, %v1834_v20  ;;  %v1124_v38 = vadd.f32 %v1123_v55, %v1122_v62  ;;  %v4463_v9 = vsel %vm5319_vm8, %v1415_v0, -inf  ;;  %v2380_v51 = vpop.eup %2379  ;;  %vm5321_vm2 = vnez %v5320_v21  ;;  %vm5323_vm4 = vmmov %vm5283_vm1  ;;  %v5330_v20 = vld [vmem:[#allocation45_spill] sm:$0xff] }
 0x3b5   :  { %v1538_v37 = vsel %vm5321_vm2, %v2378_v45, 0.0  ;;  %v4468_v44 = vsel %vm5283_vm1, %v1447_v52, 0.0  ;;  %v1093_v58 = vmax.f32 %v4071_v59, %v1092_v43  ;;  %v4472_v27 = vsel %vm5322_vm10, %v1116_v54, 0.0  ;;  %v2382_v4 = vpop.eup %2381  ;;  %vm5332_vm10 = vmmov %vm5283_vm1 }
 0x3b6   :  { %v1539_v57 = vsel %vm5312_vm12, %v2380_v51, 0.0  ;;  %v4478_v62 = vmul.f32 %v2376_v61, %v1546_v11  ;;  %v1548_v46 = vsel %vm5323_vm4, %v1538_v37, 0.0  ;;  %v1573_v17 = vmul.f32 %v1538_v37, %v5324_v3  ;;  %v2384_v59 = vpop.eup %2383  ;;  %v5333_v37 = vld [vmem:[#allocation49_spill] sm:$0xff] }
 0x3b7   :  { %vm5325_vm5 = vcmask 8192   ;;  %vm5328_vm8 = vnez %v5327_v40  ;;  %v1549_v0 = vsel %vm5283_vm1, %v1539_v57, 0.0  ;;  %v4488_v52 = vmul.f32 %v2376_v61, %v1571_v16  ;;  %v2386_v11 = vpop.eup %2385 }
 0x3b8   :  { %1966 = vst.msk [vmem:[#allocation5] sm:$0x1] %vm5325_vm5, %v1965_v47  ;;  %vm5326_vm6 = vmmov %vm5325_vm5  ;;  %v1540_v55 = vsel %vm5328_vm8, %v2382_v4, 0.0  ;;  %v1574_v63 = vmul.f32 %v1539_v57, %v5329_v41  ;;  %vm5331_vm12 = vnez %v5330_v20  ;;  %v1550_v43 = vadd.f32 %v1549_v0, %v1548_v46  ;;  %v2388_v47 = vpop.eup %2387  ;;  %v4506_v57 = vpop.permute.xlu1 %1379  ;;  %v5339_v4 = vld [vmem:[#allocation75_spill] sm:$0xff] }
 0x3b9   :  { %1967 = vst.msk [vmem:[#allocation2] sm:$0x1] %vm5326_vm6, %v4460_v22  ;;  %v1541_v23 = vsel %vm5331_vm12, %v2384_v59, 0.0  ;;  %v4494_v54 = vadd.f32 %v4286_v34, %v1124_v38  ;;  %v1551_v51 = vsel %vm5332_vm10, %v1540_v55, 0.0  ;;  %v1575_v61 = vmul.f32 %v1540_v55, %v5333_v37  ;;  %v2390_v46 = vpop.eup %2389  ;;  %v5334_v38 = vld [vmem:[#allocation51_spill] sm:$0xff]  ;;  %vm5336_vm5 = vmmov %vm5283_vm1  ;;  %v5338_v55 = vld [vmem:[#allocation25_spill] sm:$0xff] }
 0x3ba   :  { %v4501_v16 = vmax.f32 %v1093_v58, %v1095_v31  ;;  %v1542_v34 = vsel %vm5314_vm11, %v2386_v11, 0.0  ;;  %vm5335_vm4 = vnez %v5334_v38  ;;  %v1552_v59 = vadd.f32 %v1551_v51, %v1550_v43  ;;  %v2392_v41 = vpop.eup %2391  ;;  %vm5337_vm6 = vmmov %vm5283_vm1 }
 0x3bb   :  { %v1543_v3 = vsel %vm5335_vm4, %v2388_v47, 0.0  ;;  %v1581_v0 = vsel %vm5336_vm5, %v1573_v17, 0.0  ;;  %v1544_v31 = vsel %vm4175_vm7, %v2390_v46, 0.0  ;;  %v1553_v58 = vsel %vm5337_vm6, %v1541_v23, 0.0  ;;  %vm5341_vm11 = vmmov %vm5283_vm1  ;;  %v5343_v46 = vld [vmem:[#allocation72_spill] sm:$0xff] }
 0x3bc   :  { %v1576_v37 = vmul.f32 %v1541_v23, %v5338_v55  ;;  %v1582_v29 = vsel %vm5283_vm1, %v1574_v63, 0.0  ;;  %vm5340_vm10 = vnez %v5339_v4  ;;  %v1554_v11 = vadd.f32 %v1553_v58, %v1552_v59  ;;  %vm5342_vm5 = vmmov %vm5283_vm1  ;;  %v5345_v55 = vld [vmem:[#allocation30_spill] sm:$0xff] }
 0x3bd   :  { %v1545_v60 = vsel %vm5340_vm10, %v2392_v41, 0.0  ;;  %v1836_v47 = vsub.f32 %v4447_v5, %v4460_v22  ;;  %v1843_v17 = vrot.slane %v4460_v22, %v2907_v26  ;;  %v1555_v43 = vsel %vm5341_vm11, %v1542_v34, 0.0  ;;  %vm5344_vm6 = vmmov %vm5283_vm1  ;;  %v4533_v22 = vpop.permute.xlu1 %1387 }
 0x3be   :  { %v1557_v51 = vsel %vm5342_vm5, %v1543_v3, 0.0  ;;  %v1577_v45 = vmul.f32 %v1542_v34, %v5343_v46  ;;  %v1583_v50 = vadd.f32 %v1582_v29, %v1581_v0  ;;  %v1556_v23 = vadd.f32 %v1555_v43, %v1554_v11  ;;  %vm5346_vm10 = vmmov %vm5283_vm1  ;;  %v5348_v29 = vld [vmem:[#allocation81_spill] sm:$0xff] }
 0x3bf   :  { %v1559_v63 = vsel %vm5344_vm6, %v1544_v31, 0.0  ;;  %v1578_v24 = vmul.f32 %v1543_v3, %v5345_v55  ;;  %v1584_v59 = vsel %vm5283_vm1, %v1575_v61, 0.0  ;;  %v1561_v41 = vsel %vm5346_vm10, %v1545_v60, 0.0  ;;  %v5349_v43 = vld [vmem:[#allocation73_spill] sm:$0xff]  ;;  %v5350_v55 = vld [vmem:[#allocation82_spill] sm:$0xff]  ;;  %vm5351_vm10 = vmmov %vm5283_vm1 }
 0x3c0   :  { %v1579_v5 = vmul.f32 %v1544_v31, %v4167_v14  ;;  %v1585_v58 = vadd.f32 %v1584_v59, %v1583_v50  ;;  %v1586_v26 = vsel %vm5347_vm15, %v1576_v37, 0.0  ;;  %v1558_v19 = vadd.f32 %v1557_v51, %v1556_v23  ;;  %vm5352_vm15 = vmmov %vm5283_vm1 }
 0x3c1   :  { %v1845_v34 = vsub.f32 %v4000_v13, %v1843_v17  ;;  %v1846_v0 = vsub.f32 %v5348_v29, %v1843_v17  ;;  %v1847_v11 = vsub.f32 %v4059_v42, %v1843_v17  ;;  %v1580_v3 = vmul.f32 %v1545_v60, %v5349_v43  ;;  %vm5353_vm11 = vmmov %vm5283_vm1 }
 0x3c2   :  { %v1587_v46 = vadd.f32 %v1586_v26, %v1585_v58  ;;  %v1848_v61 = vsub.f32 %v4308_v39, %v1843_v17  ;;  %v1849_v8 = vsub.f32 %v5350_v55, %v1843_v17  ;;  %v1560_v14 = vadd.f32 %v1559_v63, %v1558_v19  ;;  %vm5354_vm5 = vmmov %vm5283_vm1 }
 0x3c3   :  { %v1588_v50 = vsel %vm5351_vm10, %v1577_v45, 0.0  ;;  %v1850_v31 = vsub.f32 %v4316_v6, %v1843_v17  ;;  %v1851_v37 = vsub.f32 %v3995_v53, %v1843_v17  ;;  %v1853_v13 = vmul.f32 1.442695, %v1845_v34  ;;  %v1392_v45 = vpop.permute.xlu1 %1391  ;;  %vm5356_vm6 = vmmov %vm5283_vm1 }
 0x3c4   :  { %v1589_v51 = vadd.f32 %v1588_v50, %v1587_v46  ;;  %v1855_v23 = vmul.f32 1.442695, %v1846_v0  ;;  %v1857_v59 = vmul.f32 1.442695, %v1847_v11  ;;  %v1562_v29 = vadd.f32 %v1561_v41, %v1560_v14  ;;  %v1731_v41 = vpop.permute.xlu0 %1730  ;;  %vm5358_vm10 = vmmov %vm5283_vm1 }
 0x3c5   :  { %v1590_v42 = vsel %vm5352_vm15, %v1578_v24, 0.0  ;;  %v1852_v60 = vsub.f32 %v4360_v30, %v1843_v17  ;;  %v1859_v58 = vmul.f32 1.442695, %v1848_v61  ;;  %v1592_v26 = vsel %vm5353_vm11, %v1579_v5, 0.0  ;;  %vm5360_vm15 = vmmov %vm5283_vm1 }
 0x3c6   :  { %v1591_v39 = vadd.f32 %v1590_v42, %v1589_v51  ;;  %2393 = vpow2.f32 %v1853_v13  ;;  %v1861_v19 = vmul.f32 1.442695, %v1849_v8  ;;  %v1563_v63 = vrot.slane %v1562_v29, 4  ;;  %vm5361_vm11 = vmmov %vm5283_vm1 }
 0x3c7   :  { %v1594_v6 = vsel %vm5354_vm5, %v1580_v3, 0.0  ;;  %2395 = vpow2.f32 %v1855_v23  ;;  %v1863_v53 = vmul.f32 1.442695, %v1850_v31  ;;  %v1865_v0 = vmul.f32 1.442695, %v1851_v37  ;;  %vm5364_vm5 = vmmov %vm5283_vm1 }
 0x3c8   :  { %v1593_v34 = vadd.f32 %v1592_v26, %v1591_v39  ;;  %2397 = vpow2.f32 %v1857_v59  ;;  %v1443_v24 = vsel %vm5321_vm2, %v4506_v57, 0.0  ;;  %v1564_v30 = vadd.f32 %v1563_v63, %v1562_v29  ;;  %v4596_v12 = vpop.permute.xlu0 %1738 }
 0x3c9   :  { %2399 = vpow2.f32 %v1859_v58  ;;  %v1867_v17 = vmul.f32 1.442695, %v1852_v60  ;;  %v1411_v8 = vsel %vm5321_vm2, %v4506_v57, -1e+30  ;;  %v1837_v11 = vmul.f32 1.442695, %v1836_v47  ;;  %vm5357_vm2 = vmmov %vm5283_vm1 }
 0x3ca   :  { %v1595_v5 = vadd.f32 %v1594_v6, %v1593_v34  ;;  %2401 = vpow2.f32 %v1861_v19  ;;  %v4556_v43 = vadd.f32 %v4472_v27, %v4494_v54  ;;  %v1565_v3 = vrot.slane %v1564_v30, 2  ;;  %v1400_v54 = vpop.permute.xlu1 %1399 }
 0x3cb   :  { %2403 = vpow2.f32 %v1863_v53  ;;  %v5355_v46 = vsel %vm4175_vm7, %v4474_v1, -1e+30  ;;  %v1451_v21 = vsel %vm5283_vm1, %v1443_v24, 0.0  ;;  %v4567_v47 = vsel %vm5357_vm2, %v1411_v8, -inf }
 0x3cc   :  { %v4563_v61 = vsel %vm5356_vm6, %v5355_v46, -inf  ;;  %v1596_v57 = vrot.slane %v1595_v5, 4  ;;  %2405 = vpow2.f32 %v1865_v0  ;;  %v1747_v27 = vsel %vm4296_vm14, %v1731_v41, -1e+30  ;;  %vm5365_vm6 = vmmov %vm5283_vm1 }
 0x3cd   :  { %v1566_v55 = vadd.f32 %v1565_v3, %v1564_v30  ;;  %2407 = vpow2.f32 %v1867_v17  ;;  %v1413_v14 = vsel %vm5328_vm8, %v4533_v22, -1e+30  ;;  %v1445_v50 = vsel %vm5328_vm8, %v4533_v22, 0.0  ;;  %vm5362_vm8 = vmmov %vm5283_vm1 }
 0x3ce   :  { %v1597_v31 = vadd.f32 %v1596_v57, %v1595_v5  ;;  %2409 = vpow2.f32 %v1837_v11  ;;  %v1453_v37 = vadd.f32 %v4454_v15, %v1451_v21  ;;  %v1454_v51 = vsel %vm5358_vm10, %v1445_v50, 0.0  ;;  %v4608_v34 = vpop.permute.xlu1 %1072  ;;  %v5368_v11 = vld [vmem:[#allocation78_spill] sm:$0xff]  ;;  %vm5370_vm10 = vmmov %vm5357_vm2  ;;  %v5373_v50 = vld [vmem:[#allocation85_spill] sm:$0xff] }
 0x3cf   :  { %v1567_v13 = vrot.slane %v1566_v55, 1  ;;  %v5359_v23 = vsel %vm4175_vm7, %v4474_v1, 0.0  ;;  %v1424_v29 = vmax.f32 %v4567_v47, %v4463_v9  ;;  %v4589_v40 = vsel %vm5361_vm11, %v1747_v27, -inf  ;;  %vm5363_vm7 = vmmov %vm5283_vm1 }
 0x3d0   :  { %v4584_v59 = vsel %vm5360_vm15, %v5359_v23, 0.0  ;;  %v1598_v22 = vrot.slane %v1597_v31, 2  ;;  %v1779_v15 = vsel %vm4296_vm14, %v1731_v41, 0.0  ;;  %v4594_v42 = vsel %vm5362_vm8, %v1413_v14, -inf  ;;  %v5374_v23 = vld [vmem:[#allocation70_spill] sm:$0xff]  ;;  %vm5378_vm8 = vmmov %vm5357_vm2 }
 0x3d1   :  { %v1455_v60 = vadd.f32 %v1454_v51, %v1453_v37  ;;  %v1568_v1 = vadd.f32 %v1567_v13, %v1566_v55  ;;  %v1414_v58 = vsel %vm5331_vm12, %v1392_v45, -1e+30  ;;  %v1446_v39 = vsel %vm5331_vm12, %v1392_v45, 0.0  ;;  %vm5366_vm12 = vmmov %vm5283_vm1 }
 0x3d2   :  { %v1416_v26 = vsel %vm5335_vm4, %v1400_v54, -1e+30  ;;  %v1599_v19 = vadd.f32 %v1598_v22, %v1597_v31  ;;  %v1456_v63 = vsel %vm5363_vm7, %v1446_v39, 0.0  ;;  %v1448_v53 = vsel %vm5335_vm4, %v1400_v54, 0.0 }
 0x3d3   :  { %v1425_v6 = vsel %vm5364_vm5, %v1416_v26, -inf  ;;  %v2394_v0 = vpop.eup %2393  ;;  %v1569_v24 = vadd.f32 %v1568_v1, %v4478_v62  ;;  %v4612_v30 = vsel %vm5365_vm6, %v1779_v15, 0.0  ;;  %v1428_v20 = vmax.f32 %v4594_v42, %v4563_v61  ;;  %v5376_v1 = vld [vmem:[#allocation80_spill] sm:$0xff]  ;;  %v5379_v26 = vld [vmem:[#allocation77_spill] sm:$0xff]  ;;  %vm5386_vm6 = vmmov %vm5357_vm2 }
 0x3d4   :  { %v1749_v45 = vsel %vm4341_vm3, %v4596_v12, -1e+30  ;;  %v2396_v17 = vpop.eup %2395  ;;  %v1600_v8 = vrot.slane %v1599_v19, 1  ;;  %v1869_v38 = vsel %vm3956_vm13, %v2394_v0, 0.0  ;;  %v4622_v41 = vsel %vm5366_vm12, %v1414_v58, -inf  ;;  %vm5372_vm13 = vmmov %vm5357_vm2 }
 0x3d5   :  { %v1457_v5 = vadd.f32 %v1456_v63, %v1455_v60  ;;  %v2398_v62 = vpop.eup %2397  ;;  %vm5367_vm4 = vcmask 8192   ;;  %vm5369_vm1 = vnez %v5368_v11  ;;  %v1879_v46 = vsel %vm5357_vm2, %v1869_v38, 0.0  ;;  %vm5388_vm12 = vmmov %vm5357_vm2 }
 0x3d6   :  { %1570 = vst.msk [vmem:[#allocation3] sm:$0x1] %vm5367_vm4, %v1569_v24  ;;  %v1870_v3 = vsel %vm5369_vm1, %v2396_v17, 0.0  ;;  %v1426_v21 = vmax.f32 %v4451_v56, %v1425_v6  ;;  %v1460_v57 = vsel %vm5370_vm10, %v1448_v53, 0.0  ;;  %v2400_v27 = vpop.eup %2399  ;;  %v1601_v54 = vadd.f32 %v1600_v8, %v1599_v19  ;;  %v1408_v19 = vpop.permute.xlu1 %1407  ;;  %v5381_v24 = vld [vmem:[#allocation42_spill] sm:$0xff]  ;;  %vm5382_vm7 = vmmov %vm5367_vm4 }
 0x3d7   :  { %v1871_v55 = vsel %vm4036_vm0, %v2398_v62, 0.0  ;;  %v1880_v14 = vsel %vm5372_vm13, %v1870_v3, 0.0  ;;  %v1904_v31 = vmul.f32 %v1869_v38, %v5373_v50  ;;  %v2402_v37 = vpop.eup %2401  ;;  %v1872_v51 = vsel %vm4276_vm9, %v2400_v27, 0.0  ;;  %vm5380_vm9 = vmmov %vm5357_vm2  ;;  %v5385_v62 = vld [vmem:[#allocation79_spill] sm:$0xff] }
 0x3d8   :  { %v1881_v13 = vadd.f32 %v1880_v14, %v1879_v46  ;;  %vm5375_vm15 = vnez %v5374_v23  ;;  %v2404_v15 = vpop.eup %2403  ;;  %v1602_v60 = vadd.f32 %v1601_v54, %v4488_v52  ;;  %vm5377_vm11 = vnez %v5376_v1  ;;  %v5383_v52 = vld [vmem:[#allocation83_spill] sm:$0xff]  ;;  %vm5389_vm4 = vmmov %vm5357_vm2  ;;  %v5391_v23 = vld [vmem:[#allocation84_spill] sm:$0xff] }
 0x3d9   :  { %v1086_v56 = vsel %vm5375_vm15, %v4608_v34, -1e+30  ;;  %v1118_v22 = vsel %vm5375_vm15, %v4608_v34, 0.0  ;;  %v1873_v58 = vsel %vm5377_vm11, %v2402_v37, 0.0  ;;  %v1882_v39 = vsel %vm5378_vm8, %v1871_v55, 0.0  ;;  %v2406_v63 = vpop.eup %2405  ;;  %vm5390_vm10 = vmmov %vm5357_vm2 }
 0x3da   :  { %v1905_v32 = vmul.f32 %v1870_v3, %v5379_v26  ;;  %v1874_v6 = vsel %vm4296_vm14, %v2404_v15, 0.0  ;;  %v1883_v53 = vadd.f32 %v1882_v39, %v1881_v13  ;;  %v1884_v0 = vsel %vm5380_vm9, %v1872_v51, 0.0  ;;  %v2408_v17 = vpop.eup %2407  ;;  %1603 = vst.msk [vmem:[#allocation4] sm:$0x1] %vm5382_vm7, %v1602_v60  ;;  %vm5387_vm14 = vmmov %vm5357_vm2 }
 0x3db   :  { %v1906_v34 = vmul.f32 %v1871_v55, %v5381_v24  ;;  %vm5384_vm5 = vnez %v5383_v52  ;;  %v1907_v38 = vmul.f32 %v1872_v51, %v4243_v49  ;;  %v1908_v3 = vmul.f32 %v1873_v58, %v5385_v62  ;;  %v4657_v27 = vpop.eup %2409  ;;  %vm5392_vm13 = vmmov %vm5357_vm2 }
 0x3dc   :  { %v1875_v8 = vsel %vm5384_vm5, %v2406_v63, 0.0  ;;  %v1912_v46 = vsel %vm5386_vm6, %v1904_v31, 0.0  ;;  %v1876_v48 = vsel %vm4341_vm3, %v2408_v17, 0.0  ;;  %v1885_v54 = vadd.f32 %v1884_v0, %v1883_v53  ;;  %vm5393_vm15 = vmmov %vm5357_vm2 }
 0x3dd   :  { %v1886_v55 = vsel %vm5387_vm14, %v1873_v58, 0.0  ;;  %v1431_v14 = vmax.f32 %v1424_v29, %v1426_v21  ;;  %v1888_v50 = vsel %vm5388_vm12, %v1874_v6, 0.0  ;;  %v1890_v49 = vsel %vm5389_vm4, %v1875_v8, 0.0  ;;  %vm5394_vm8 = vmmov %vm5357_vm2  ;;  %v4675_v29 = vpop.permute.xlu1 %1714 }
 0x3de   :  { %v1909_v37 = vmul.f32 %v1874_v6, %v4288_v10  ;;  %v1913_v31 = vsel %vm5357_vm2, %v1905_v32, 0.0  ;;  %v1887_v51 = vadd.f32 %v1886_v55, %v1885_v54  ;;  %v1892_v13 = vsel %vm5390_vm10, %v1876_v48, 0.0  ;;  %vm5395_vm9 = vmmov %vm5357_vm2  ;;  %v1877_v55 = vld [vmem:[#allocation3] sm:$0x1] }
 0x3df   :  { %v1910_v15 = vmul.f32 %v1875_v8, %v5391_v23  ;;  %v1914_v60 = vadd.f32 %v1913_v31, %v1912_v46  ;;  %v1911_v58 = vmul.f32 %v1876_v48, %v4333_v18  ;;  %v1915_v39 = vsel %vm5392_vm13, %v1906_v34, 0.0  ;;  %vm5396_vm7 = vmmov %vm5357_vm2 }
 0x3e0   :  { %v1917_v9 = vsel %vm5393_vm15, %v1907_v38, 0.0  ;;  %v1919_v47 = vsel %vm5394_vm8, %v1908_v3, 0.0  ;;  %v1889_v21 = vadd.f32 %v1888_v50, %v1887_v51  ;;  %v1459_v26 = vadd.f32 %v4468_v44, %v1457_v5  ;;  %vm5398_vm14 = vmmov %vm5357_vm2 }
 0x3e1   :  { %v1916_v10 = vadd.f32 %v1915_v39, %v1914_v60  ;;  %v1096_v32 = vsel %vm5395_vm9, %v1086_v56, -inf  ;;  %v1130_v6 = vadd.f32 %v4370_v7, %v4556_v43  ;;  %v1131_v18 = vsel %vm5396_vm7, %v1118_v22, 0.0  ;;  %vm5399_vm12 = vmmov %vm5357_vm2  ;;  %v1902_v50 = vld [vmem:[#allocation4] sm:$0x1] }
 0x3e2   :  { %v1097_v63 = vmax.f32 %v4457_v35, %v1096_v32  ;;  %vm5397_vm6 = vnez %v5339_v4  ;;  %v1891_v0 = vadd.f32 %v1890_v49, %v1889_v21  ;;  %v1461_v34 = vadd.f32 %v1460_v57, %v1459_v26  ;;  %vm5401_vm4 = vmmov %vm5357_vm2 }
 0x3e3   :  { %v1418_v53 = vsel %vm5397_vm6, %v1408_v19, -1e+30  ;;  %v1918_v24 = vadd.f32 %v1917_v9, %v1916_v10  ;;  %v1921_v8 = vsel %vm5399_vm12, %v1909_v37, 0.0  ;;  %v5400_v44 = vmax.f32 %v4268_v2, %v4350_v28  ;;  %v4700_v28 = vpop.permute.xlu1 %1718  ;;  %vm5402_vm10 = vmmov %vm5357_vm2 }
 0x3e4   :  { %v1429_v17 = vsel %vm5398_vm14, %v1418_v53, -inf  ;;  %v1132_v35 = vadd.f32 %v1131_v18, %v1130_v6  ;;  %v1893_v7 = vadd.f32 %v1892_v13, %v1891_v0  ;;  %v1450_v22 = vsel %vm5397_vm6, %v1408_v19, 0.0  ;;  %vm5403_vm13 = vmmov %vm5357_vm2  ;;  %v5406_v53 = vld [vmem:[#allocation44_spill] sm:$0xff] }
 0x3e5   :  { %v1101_v5 = vmax.f32 %v1097_v63, %v5400_v44  ;;  %v1430_v56 = vmax.f32 %v4622_v41, %v1429_v17  ;;  %v1920_v43 = vadd.f32 %v1919_v47, %v1918_v24  ;;  %v1463_v38 = vadd.f32 %v4584_v59, %v1461_v34  ;;  %vm5404_vm15 = vmmov %vm5357_vm2 }
 0x3e6   :  { %v1134_v62 = vadd.f32 %v4408_v33, %v1132_v35  ;;  %v1464_v2 = vsel %vm5401_vm4, %v1450_v22, 0.0  ;;  %v1894_v41 = vrot.slane %v1893_v7, 4  ;;  %v4707_v4 = vsel %vm5357_vm2, %v1749_v45, -inf  ;;  %vm5407_vm8 = vmmov %vm5357_vm2 }
 0x3e7   :  { %v1102_v57 = vmax.f32 %v4501_v16, %v1101_v5  ;;  %v1432_v3 = vmax.f32 %v1428_v20, %v1430_v56  ;;  %v1922_v46 = vadd.f32 %v1921_v8, %v1920_v43  ;;  %v1465_v16 = vadd.f32 %v1464_v2, %v1463_v38  ;;  %v1727_v47 = vpop.permute.xlu1 %1726  ;;  %vm5408_vm9 = vmmov %vm5357_vm2 }
 0x3e8   :  { %v1923_v33 = vsel %vm5402_vm10, %v1910_v15, 0.0  ;;  %v1135_v19 = vrot.slane %v1134_v62, 4  ;;  %v1895_v42 = vadd.f32 %v1894_v41, %v1893_v7  ;;  %v1925_v48 = vsel %vm5403_vm13, %v1911_v58, 0.0  ;;  %v1079_v41 = vld [vmem:[#allocation6] sm:$0x1] }
 0x3e9   :  { %v1103_v59 = vrot.slane %v1102_v57, 4  ;;  %v1433_v61 = vmax.f32 %v1431_v14, %v1432_v3  ;;  %v1924_v20 = vadd.f32 %v1923_v33, %v1922_v46  ;;  %v1466_v54 = vrot.slane %v1465_v16, 4  ;;  %v5405_v14 = vld [vmem:[#allocation54_spill] sm:$0xff]  ;;  %v1111_v46 = vld [vmem:[#allocation7] sm:$0x1] }
 0x3ea   :  { %v1136_v37 = vadd.f32 %v1135_v19, %v1134_v62  ;;  %v1775_v45 = vsel %vm5369_vm1, %v4675_v29, 0.0  ;;  %v1896_v51 = vrot.slane %v1895_v42, 2  ;;  %v1761_v60 = vmax.f32 %v5405_v14, %v4707_v4 }
 0x3eb   :  { %v1104_v49 = vmax.f32 %v1102_v57, %v1103_v59  ;;  %v1434_v31 = vrot.slane %v1433_v61, 4  ;;  %v1926_v13 = vadd.f32 %v1925_v48, %v1924_v20  ;;  %v1467_v23 = vadd.f32 %v1466_v54, %v1465_v16  ;;  %v1735_v62 = vpop.permute.xlu1 %1734  ;;  %v5412_v20 = vld [vmem:[#allocation34_spill] sm:$0xff] }
 0x3ec   :  { %v1783_v15 = vsel %vm5404_vm15, %v1775_v45, 0.0  ;;  %v1137_v58 = vrot.slane %v1136_v37, 2  ;;  %v1878_v21 = vmul.f32 %v4657_v27, %v1877_v55  ;;  %v1897_v10 = vadd.f32 %v1896_v51, %v1895_v42 }
 0x3ed   :  { %v1105_v39 = vrot.slane %v1104_v49, 2  ;;  %v1435_v9 = vmax.f32 %v1433_v61, %v1434_v31  ;;  %v1903_v26 = vmul.f32 %v4657_v27, %v1902_v50  ;;  %v1927_v32 = vrot.slane %v1926_v13, 4  ;;  %v5410_v61 = vld [vmem:[#allocation59_spill] sm:$0xff] }
 0x3ee   :  { %v1138_v6 = vadd.f32 %v1137_v58, %v1136_v37  ;;  %v1743_v18 = vsel %vm5369_vm1, %v4675_v29, -1e+30  ;;  %v1784_v0 = vadd.f32 %v1783_v15, %v5406_v53  ;;  %v1898_v24 = vrot.slane %v1897_v10, 1  ;;  %vm5409_vm1 = vmmov %vm5357_vm2 }
 0x3ef   :  { %v1106_v63 = vmax.f32 %v1104_v49, %v1105_v39  ;;  %v1928_v34 = vadd.f32 %v1927_v32, %v1926_v13  ;;  %v1468_v17 = vrot.slane %v1467_v23, 2  ;;  %v1776_v8 = vsel %vm4036_vm0, %v4700_v28, 0.0  ;;  %vm5415_vm14 = vmmov %vm5409_vm1 }
 0x3f0   :  { %v1139_v5 = vrot.slane %v1138_v6, 1  ;;  %v1436_v35 = vrot.slane %v1435_v9, 2  ;;  %v1785_v27 = vsel %vm5407_vm8, %v1776_v8, 0.0  ;;  %v1899_v56 = vadd.f32 %v1898_v24, %v1897_v10  ;;  %vm5416_vm12 = vmmov %vm5409_vm1 }
 0x3f1   :  { %v1107_v44 = vrot.slane %v1106_v63, 1  ;;  %v1929_v7 = vrot.slane %v1928_v34, 2  ;;  %v1751_v43 = vsel %vm5408_vm9, %v1743_v18, -inf  ;;  %v1786_v11 = vadd.f32 %v1785_v27, %v1784_v0  ;;  %vm5417_vm4 = vmmov %vm5409_vm1 }
 0x3f2   :  { %v1140_v22 = vadd.f32 %v1139_v5, %v1138_v6  ;;  %v1744_v38 = vsel %vm4036_vm0, %v4700_v28, -1e+30  ;;  %v1746_v57 = vsel %vm5377_vm11, %v1727_v47, -1e+30  ;;  %v1900_v3 = vadd.f32 %v1899_v56, %v1878_v21 }
 0x3f3   :  { %v1108_v29 = vmax.f32 %v1106_v63, %v1107_v44  ;;  %v1930_v2 = vadd.f32 %v1929_v7, %v1928_v34  ;;  %v1469_v4 = vadd.f32 %v1468_v17, %v1467_v23  ;;  %v1754_v16 = vsel %vm5409_vm1, %v1746_v57, -inf }
 0x3f4   :  { %v1141_v59 = vadd.f32 %v1140_v22, %v1111_v46  ;;  %v1437_v19 = vmax.f32 %v1435_v9, %v1436_v35  ;;  %v1755_v42 = vmax.f32 %v5410_v61, %v1754_v16  ;;  %vm5411_vm7 = vcmask 8192   ;;  %v1981_v46 = vld [vmem:[#allocation2] sm:$0x1] }
 0x3f5   :  { %v1109_v33 = vmax.f32 %v1079_v41, %v1108_v29  ;;  %1901 = vst.msk [vmem:[#allocation3] sm:$0x1] %vm5411_vm7, %v1900_v3  ;;  %v1931_v25 = vrot.slane %v1930_v2, 1  ;;  %v1778_v28 = vsel %vm5377_vm11, %v1727_v47, 0.0  ;;  %v1788_v48 = vadd.f32 %v5412_v20, %v1786_v11  ;;  %vm5413_vm0 = vmmov %vm5411_vm7 }
 0x3f6   :  { %v1748_v54 = vsel %vm5384_vm5, %v1735_v62, -1e+30  ;;  %vm5414_vm6 = vmmov %vm5413_vm0  ;;  %v1752_v55 = vsel %vm5415_vm14, %v1744_v38, -inf  ;;  %v1789_v50 = vsel %vm5416_vm12, %v1778_v28, 0.0  ;;  %v1780_v37 = vsel %vm5384_vm5, %v1735_v62, 0.0 }
 0x3f7   :  { %1110 = vst.msk [vmem:[#allocation6] sm:$0x1] %vm5413_vm0, %v1109_v33  ;;  %v1758_v49 = vsel %vm5417_vm4, %v1748_v54, -inf  ;;  %v1932_v1 = vadd.f32 %v1931_v25, %v1930_v2  ;;  %v1757_v31 = vmax.f32 %v1751_v43, %v4589_v40  ;;  %v1790_v45 = vadd.f32 %v1789_v50, %v1788_v48  ;;  %vm5418_vm11 = vmmov %vm5409_vm1 }
 0x3f8   :  { %1142 = vst.msk [vmem:[#allocation7] sm:$0x1] %vm5414_vm6, %v1141_v59  ;;  %v1759_v51 = vmax.f32 %v1752_v55, %v1758_v49  ;;  %v1781_v13 = vsel %vm4341_vm3, %v4596_v12, 0.0  ;;  %v1438_v23 = vrot.slane %v1437_v19, 1  ;;  %v1470_v15 = vrot.slane %v1469_v4, 1  ;;  %vm5419_vm2 = vmmov %vm5413_vm0 }
 0x3f9   :  { %v1793_v14 = vsel %vm5418_vm11, %v1780_v37, 0.0  ;;  %v1933_v39 = vadd.f32 %v1932_v1, %v1903_v26  ;;  %v1762_v58 = vmax.f32 %v1755_v42, %v1757_v31  ;;  %v1792_v47 = vadd.f32 %v4612_v30, %v1790_v45  ;;  %vm5420_vm5 = vmmov %vm5409_vm1  ;;  %v2419_v30 = vld [vmem:[%s4778_s0 + $0x1] sm:$0x1]  ;;  %v1986_v59 = vld [vmem:[#allocation5] sm:$0x1] }
 0x3fa   :  { %v1763_v9 = vmax.f32 %v1759_v51, %v1761_v60  ;;  %v1795_v40 = vsel %vm5420_vm5, %v1781_v13, 0.0  ;;  %v1439_v10 = vmax.f32 %v1437_v19, %v1438_v23  ;;  %v1471_v32 = vadd.f32 %v1470_v15, %v1469_v4  ;;  %v2418_v60 = vld [vmem:[%s4778_s0] sm:$0x1]  ;;  %vm5421_vm3 = vmmov %vm5413_vm0  ;;  %s2521_s0 = smov [#allocation13]  }
 0x3fb   :  { %1934 = vst.msk [vmem:[#allocation4] sm:$0x1] %vm5419_vm2, %v1933_v39  ;;  %v1794_v21 = vadd.f32 %v1793_v14, %v1792_v47  ;;  %v1971_v26 = vsub.s32 %v2419_v30, %v2418_v60  ;;  %vm5422_vm10 = vmmov %vm5413_vm0  ;;  %s2033_s21 = sshll.u32 %s2521_s0, 4  ;;  %s2034_s21 = int_to_ptr.vmem [resolvable:$true] %s2033_s21 }
 0x3fc   :  { %v1764_v52 = vmax.f32 %v1762_v58, %v1763_v9  ;;  %v1982_v63 = vld [vmem:[#allocation3] sm:$0x1]  ;;  %vm5423_vm13 = vmmov %vm5413_vm0  ;;  %s2442_s22 = scalar_lea.vmem %s2034_s21, 16  ;;  %s2446_s23 = scalar_lea.vmem %s2034_s21, 32 }
 0x3fd   :  { %v1990_v36 = vld [vmem:[#allocation3] sm:$0x1]  ;;  %v1796_v53 = vadd.f32 %v1795_v40, %v1794_v21  ;;  %2411 = vlog2.f32 %v1982_v63  ;;  %v1972_v5 = vcvt.s32.f32 %v1971_v26  ;;  %vm5424_vm15 = vmmov %vm5413_vm0  ;;  %p2443_p5 = scmp.ne.s32.totalorder %s2034_s21, %s2442_s22  ;;  %p2447_p6 = scmp.lt.s32.totalorder %s2034_s21, %s2034_s21 }
 0x3fe   :  { %v1410_v12 = vld [vmem:[#allocation6] sm:$0x1]  ;;  %v1765_v18 = vrot.slane %v1764_v52, 4  ;;  %2413 = vrcp.f32 %v1990_v36  ;;  %vm5425_vm8 = vmmov %vm5413_vm0  ;;  %p2448_p7 = scmp.lt.s32.totalorder %s2446_s23, %s2442_s22 }
 0x3ff   :  { %v1442_v6 = vld [vmem:[#allocation7] sm:$0x1]  ;;  %v1440_v0 = vmax.f32 %v1410_v12, %v1439_v10  ;;  %v1797_v17 = vrot.slane %v1796_v53, 4  ;;  %2415 = vrcp.f32 %v1972_v5  ;;  %vm5426_vm9 = vmmov %vm5413_vm0 }
 0x400   :  { %v1472_v24 = vadd.f32 %v1471_v32, %v1442_v6  ;;  %v1766_v34 = vmax.f32 %v1764_v52, %v1765_v18  ;;  %p2449_p8 = por %p2448_p7, %p2447_p6 }
 0x401   :  { %1441 = vst.msk [vmem:[#allocation6] sm:$0x1] %vm5421_vm3, %v1440_v0  ;;  %v1798_v44 = vadd.f32 %v1797_v17, %v1796_v53 }
 0x402   :  { %1473 = vst.msk [vmem:[#allocation7] sm:$0x1] %vm5422_vm10, %v1472_v24  ;;  %v1767_v8 = vrot.slane %v1766_v34, 2  ;;  %v1989_v4 = vld [vmem:[#allocation4] sm:$0x1]  ;;  %p2450_p9 = pnand %p2449_p8, %p2443_p5 }
 0x403   :  { %v1799_v27 = vrot.slane %v1798_v44, 2 }
 0x404   :  { %v1768_v35 = vmax.f32 %v1766_v34, %v1767_v8 }
 0x405   :  { %v1800_v7 = vadd.f32 %v1799_v27, %v1798_v44 }
 0x406   :  { %v1769_v56 = vrot.slane %v1768_v35, 1 }
 0x407   :  { %v1801_v11 = vrot.slane %v1800_v7, 1 }
 0x408   :  { %v1770_v43 = vmax.f32 %v1768_v35, %v1769_v56  ;;  %v1741_v29 = vld [vmem:[#allocation6] sm:$0x1] }
 0x409   :  { %v1802_v38 = vadd.f32 %v1801_v11, %v1800_v7  ;;  %v1773_v62 = vld [vmem:[#allocation7] sm:$0x1] }
 0x40a   :  { %v1771_v22 = vmax.f32 %v1741_v29, %v1770_v43  ;;  %v2412_v57 = vpop.eup %2411 }
 0x40b   :  { %v2414_v3 = vpop.eup %2413  ;;  %v1803_v2 = vadd.f32 %v1802_v38, %v1773_v62  ;;  %v1984_v41 = vmul.f32 0.6931472, %v2412_v57 }
 0x40c   :  { %1772 = vst.msk [vmem:[#allocation6] sm:$0x1] %vm5423_vm13, %v1771_v22  ;;  %v1992_v33 = vmul.f32 %v2414_v3, %v1989_v4  ;;  %v2416_v42 = vpop.eup %2415 }
 0x40d   :  { %1804 = vst.msk [vmem:[#allocation7] sm:$0x1] %vm5424_vm15, %v1803_v2  ;;  %v1985_v16 = vadd.f32 %v1984_v41, %v1981_v46 }
 0x40f   :  { %v1987_v19 = vsub.f32 %v1986_v59, %v1985_v16  ;;  %v1993_v61 = vsub.f32 %v1985_v16, %v1992_v33 }
 0x411   :  { %1988 = vst.msk [vmem:[#allocation12] sm:$0x1] %vm5425_vm8, %v1987_v19 }
 0x412   :  { %1994 = vst.msk [vmem:[#allocation13] sm:$0x1] %vm5426_vm9, %v1993_v61 }
 0x413   :  { %v1976_v25 = vld [vmem:[#allocation6] sm:$0x1] }
 0x414   :  { %2453 = shalt.err (!%p2450_p9)
}
 0x415   :  { %2036 = dma.vmem_to_hbm [thread:$0]  %s2034_s21, 16, %s4790_s12, [#allocation14]   ;;  %v1973_v28 = vld [vmem:[#allocation7] sm:$0x1]  ;;  %v1977_v48 = vmul.f32 0.6, %v1976_v25  ;;  %vm5427_vm1 = vmmov %vm5413_vm0 }
 0x416   :  { %v1975_v20 = vmul.f32 %v2416_v42, %v1973_v28  ;;  %s2522_s2 = smov [#allocation10]   ;;  %s2523_s7 = smov [#allocation12]  }
 0x417   :  { %s2013_s6 = sshll.u32 %s2522_s2, 4  ;;  %s2023_s8 = sshll.u32 %s2523_s7, 4  ;;  %s2014_s6 = int_to_ptr.vmem [resolvable:$true] %s2013_s6  ;;  %s2024_s8 = int_to_ptr.vmem [resolvable:$true] %s2023_s8 }
 0x418   :  { %v1978_v54 = vmul.f32 0.4, %v1975_v20  ;;  %s2462_s26 = scalar_lea.vmem %s2014_s6, 16  ;;  %s2466_s27 = scalar_lea.vmem %s2014_s6, 32 }
 0x419   :  { %p2463_p10 = scmp.ne.s32.totalorder %s2014_s6, %s2462_s26  ;;  %p2467_p11 = scmp.lt.s32.totalorder %s2014_s6, %s2014_s6 }
 0x41a   :  { %v1979_v55 = vadd.f32 %v1978_v54, %v1977_v48  ;;  %p2468_p12 = scmp.lt.s32.totalorder %s2466_s27, %s2462_s26 }
 0x41c   :  { %1980 = vst.msk [vmem:[#allocation10] sm:$0x1] %vm5427_vm1, %v1979_v55  ;;  %p2469_p13 = por %p2468_p12, %p2467_p11 }
 0x41e   :  { %p2470_p0 = pnand %p2469_p13, %p2463_p10 }
 0x420   :  { %2473 = shalt.err (!%p2470_p0)
}
 0x421   :  { %2016 = dma.vmem_to_hbm [thread:$0]  %s2014_s6, 16, %s4788_s10, [#allocation11]  }
 0x422   :  { %s2482_s29 = scalar_lea.vmem %s2024_s8, 16  ;;  %s2486_s30 = scalar_lea.vmem %s2024_s8, 32 }
 0x423   :  { %p2483_p1 = scmp.ne.s32.totalorder %s2024_s8, %s2482_s29  ;;  %p2487_p2 = scmp.lt.s32.totalorder %s2024_s8, %s2024_s8 }
 0x424   :  { %p2488_p3 = scmp.lt.s32.totalorder %s2486_s30, %s2482_s29 }
 0x426   :  { %p2489_p4 = por %p2488_p3, %p2487_p2 }
 0x428   :  { %p2490_p5 = pnand %p2489_p4, %p2483_p1 }
 0x42a   :  { %2493 = shalt.err (!%p2490_p5)
}
 0x42b   :  { %2026 = dma.vmem_to_hbm [thread:$0]  %s2024_s8, 16, %s4789_s11, [#allocation11]  }
 0x42c   :  { %2502 = dma.done.wait [#allocation9], 1024  }
 0x42d   :  { %2503 = vsyncadd [#allocation9], 4294966272 }
 0x42e   :  { %2504 = dma.done.wait [#allocation11], 32  }
 0x42f   :  { %2505 = vsyncadd [#allocation11], 4294967264 }
 0x430   :  { %2506 = dma.done.wait [#allocation14], 16  }
 0x431   :  { %2507 = vsyncadd [#allocation14], 4294967280 }
 0x432   :  { %2049 = vsyncpa [#allocation9], 1 }
 0x433   :  { %2050 = vsyncpa [#allocation11], 1 }
 0x434   :  { %2051 = vsyncpa [#allocation14], 1 }

</bundles_post_ra>
